<compile_context>
chip_gen: v7x
topology: tpu7x:2x2x1
jax: 0.10.0
libtpu: 0.0.40
codegen_flags: <defaults>
</compile_context>

<pallas_src>
import functools

import jax
import jax.numpy as jnp
from jax import lax
from jax.experimental import pallas as pl
from jax.experimental.pallas import tpu as pltpu

EPS = 1e-5  # PyTorch BatchNorm default eps


def point_home_kernel(flag_ref, x_ref,
                      w1_ref, w2_ref, w3_ref, p1_ref, p2_ref,
                      out_ref, *, B, N, H2, lambd1, lambd2, batch_size):
    M = B * N                       # points per view
    C1 = w1_ref.shape[1]            # 64
    C2 = w2_ref.shape[1]            # 128
    C3 = w3_ref.shape[1]            # 1024

    def _bn_views(x):
        # x: (2, rows, C) -- fused single-pass BatchNorm (training mode,
        # gamma=1 / beta=0, biased variance); statistics strictly per view.
        m = jnp.mean(x, axis=1, keepdims=True)
        msq = jnp.mean(x * x, axis=1, keepdims=True)
        var = jnp.maximum(msq - m * m, 0.0)
        return (x - m) * lax.rsqrt(var + EPS)

    def _bn(x):
        # x: (rows, C) -- same BN for a single view.
        m = jnp.mean(x, axis=0, keepdims=True)
        msq = jnp.mean(x * x, axis=0, keepdims=True)
        var = jnp.maximum(msq - m * m, 0.0)
        return (x - m) * lax.rsqrt(var + EPS)

    # ---- PointNet backbone, both views stacked along rows ----
    x = x_ref[...]                                                # (2M, 3) f32
    # conv1 (1x1): 3 -> 64 as three VPU broadcast-FMAs
    h = (x[:, 0:1] * w1_ref[0:1, :]
         + x[:, 1:2] * w1_ref[1:2, :]
         + x[:, 2:3] * w1_ref[2:3, :])                            # (2M, 64) f32
    h = jnp.maximum(_bn_views(h.reshape(2, M, C1)), 0.0)
    h = jnp.dot(h.reshape(2 * M, C1).astype(jnp.bfloat16), w2_ref[...],
                preferred_element_type=jnp.float32)               # (2M, 128)
    h = jnp.maximum(_bn_views(h.reshape(2, M, C2)), 0.0)
    h = jnp.dot(h.reshape(2 * M, C2).astype(jnp.bfloat16), w3_ref[...],
                preferred_element_type=jnp.float32)               # (2M, 1024)
    h = _bn_views(h.reshape(2, M, C3))                            # bn3, no relu
    # global max-pool over the N points of each cloud
    # (N multiple of 8 so the reshape stays a cheap layout split)
    feat = jnp.max(h.reshape(2 * B, N, C3), axis=1)               # (2B, 1024)

    # ---- projector: Linear -> BN -> ReLU -> Linear (bias-free) + final BN ----
    z = jnp.dot(feat.astype(jnp.bfloat16), p1_ref[...],
                preferred_element_type=jnp.float32)               # (2B, H1)
    za = jnp.maximum(_bn(z[:B]), 0.0)                             # view 1, (B, H1)
    zb = jnp.maximum(_bn(z[B:]), 0.0)                             # view 2, (B, H1)
    z1 = _bn(jnp.dot(za.astype(jnp.bfloat16), p2_ref[...],
                     preferred_element_type=jnp.float32))         # (B, H2)
    z2 = _bn(jnp.dot(zb.astype(jnp.bfloat16), p2_ref[...],
                     preferred_element_type=jnp.float32))         # (B, H2)

    # torch.randn(1).item() > 0.5  ->  deterministic scalar flag from SMEM
    zsel = jnp.where(flag_ref[0] > 0, z1, z2)

    # loss_inv (torch.distributed.all_reduce is the identity on one device)
    c_inv = jnp.sum(z1 * z2, axis=0, keepdims=True) / batch_size  # (1, H2)
    loss = lambd1 * jnp.mean((c_inv - 1.0) ** 2)

    # loss2: mean of squared off-diagonals of z^T z / batch_size
    C = lax.dot_general(zsel, zsel, (((0,), (0,)), ((), ())),
                        preferred_element_type=jnp.float32) / batch_size
    rows = lax.broadcasted_iota(jnp.int32, (H2, H2), 0)
    cols = lax.broadcasted_iota(jnp.int32, (H2, H2), 1)
    off_sq = jnp.where(rows == cols, 0.0, C * C)
    loss = loss + lambd2 * (jnp.sum(off_sq) / float(H2 * H2 - H2))

    # lambd3 == 0 here, so the loss3 branch (3rd-order einsum) is not taken.
    out_ref[0, 0] = loss


def point_home_forward(x1, x2, params, flag, *, B, N, lambd1, lambd2, batch_size):
    """x1, x2: (B*N, 3) float32 point clouds (channels-last, un-padded)."""
    w1, w2, w3, p1, p2 = params
    x = jnp.concatenate([x1, x2], axis=0)          # stack views outside the kernel
    kernel = functools.partial(
        point_home_kernel, B=B, N=N, H2=p2.shape[1],
        lambd1=lambd1, lambd2=lambd2, batch_size=float(batch_size))
    vmem = pl.BlockSpec(memory_space=pltpu.MemorySpace.VMEM)
    smem = pl.BlockSpec(memory_space=pltpu.MemorySpace.SMEM)
    loss = pl.pallas_call(
        kernel,
        out_shape=jax.ShapeDtypeStruct((1, 1), jnp.float32),
        in_specs=[smem, vmem, vmem, vmem, vmem, vmem, vmem],
        out_specs=smem,
        compiler_params=pltpu.CompilerParams(
            vmem_limit_bytes=32 * 1024 * 1024),
    )(flag, x,
      w1,                              # f32, used on the VPU
      w2.astype(jnp.bfloat16), w3.astype(jnp.bfloat16),
      p1.astype(jnp.bfloat16), p2.astype(jnp.bfloat16))
    return loss[0, 0]


def _reference(x1, x2, params, flag, *, B, N, lambd1, lambd2, batch_size):
    """Pure-JAX f32 reference of the same forward pass (sanity check)."""
    w1, w2, w3, p1, p2 = params

    def bn(x):
        m = jnp.mean(x, axis=0, keepdims=True)
        v = jnp.mean((x - m) ** 2, axis=0, keepdims=True)
        return (x - m) / jnp.sqrt(v + EPS)

    def backbone(x):
        h = jnp.maximum(bn(x @ w1), 0.0)
        h = jnp.maximum(bn(h @ w2), 0.0)
        h = bn(h @ w3)
        return jnp.max(h.reshape(B, N, -1), axis=1)

    def proj(f):
        return jnp.maximum(bn(f @ p1), 0.0) @ p2

    z1 = bn(proj(backbone(x1)))
    z2 = bn(proj(backbone(x2)))
    z = jnp.where(flag[0] > 0, z1, z2)

    c = jnp.sum(z1 * z2, axis=0) / batch_size
    loss = lambd1 * jnp.mean((c - 1.0) ** 2)
    C = z.T @ z / batch_size
    n = C.shape[0]
    mask = 1.0 - jnp.eye(n, dtype=C.dtype)
    loss = loss + lambd2 * jnp.sum((C * mask) ** 2) / (n * n - n)
    return loss


if __name__ == "__main__":
    # args: projector="128-128", batch_size=4, lambd1=1.0, lambd2=0.0051, lambd3=0.0
    B, N = 4, 16            # batch, points per cloud (N multiple of 8)
    C_IN = 3                # xyz coords (no padding)
    H1, H2 = 128, 128       # projector sizes: [1024, 128, 128]
    LAMBD1, LAMBD2 = 1.0, 0.0051
    BATCH_SIZE = B

    key = jax.random.PRNGKey(0)
    kx1, kx2, kw1, kw2, kw3, kp1, kp2, ksel = jax.random.split(key, 8)

    x1 = jax.random.normal(kx1, (B * N, C_IN), jnp.float32)
    x2 = jax.random.normal(kx2, (B * N, C_IN), jnp.float32)

    def init_w(k, fan_in, fan_out):
        return jax.random.normal(k, (fan_in, fan_out), jnp.float32) / jnp.sqrt(
            jnp.float32(fan_in))

    params = (
        init_w(kw1, C_IN, 64),     # conv1 (1x1): 3 -> 64
        init_w(kw2, 64, 128),      # conv2: 64 -> 128
        init_w(kw3, 128, 1024),    # conv3: 128 -> 1024
        init_w(kp1, 1024, H1),     # projector Linear(1024, 128, bias=False)
        init_w(kp2, H1, H2),       # projector Linear(128, 128, bias=False)
    )

    # deterministic stand-in for `torch.randn(1).item() > 0.5`
    flag = (jax.random.normal(ksel, ()) > 0.5).astype(jnp.int32).reshape(1)

    loss = point_home_forward(x1, x2, params, flag, B=B, N=N,
                              lambd1=LAMBD1, lambd2=LAMBD2,
                              batch_size=BATCH_SIZE)
    loss = jax.block_until_ready(loss)

    ref = _reference(x1, x2, params, flag, B=B, N=N,
                     lambd1=LAMBD1, lambd2=LAMBD2, batch_size=BATCH_SIZE)

    assert jnp.isfinite(loss), "kernel produced non-finite loss"
    assert jnp.allclose(loss, ref, rtol=5e-2, atol=1e-2), (loss, ref)
    print("KERNEL_OK")
</pallas_src>

<mosaic_0001>
module attributes {stable_mosaic.version = 11 : i64} {
  func.func @point_home_kernel(%arg0: memref<1xi32, #tpu.memory_space<smem>>, %arg1: memref<128x3xf32, #tpu.memory_space<vmem>>, %arg2: memref<3x64xf32, #tpu.memory_space<vmem>>, %arg3: memref<64x128xbf16, #tpu.memory_space<vmem>>, %arg4: memref<128x1024xbf16, #tpu.memory_space<vmem>>, %arg5: memref<1024x128xbf16, #tpu.memory_space<vmem>>, %arg6: memref<128x128xbf16, #tpu.memory_space<vmem>>, %arg7: memref<1x1xf32, #tpu.memory_space<smem>>) attributes {dimension_semantics = [], scalar_prefetch = 0 : i64, scratch_operands = 0 : i64, tpu.core_type = #tpu.core_type<tc>} {
    %c0 = arith.constant 0 : index
    %c0_0 = arith.constant 0 : index
    %0 = vector.load %arg1[%c0, %c0_0] : memref<128x3xf32, #tpu.memory_space<vmem>>, vector<128x3xf32>
    %1 = vector.extract_strided_slice %0 {offsets = [0, 0], sizes = [128, 1], strides = [1, 1]} : vector<128x3xf32> to vector<128x1xf32>
    %c0_1 = arith.constant 0 : index
    %c0_2 = arith.constant 0 : index
    %2 = vector.load %arg2[%c0_1, %c0_2] : memref<3x64xf32, #tpu.memory_space<vmem>>, vector<1x64xf32>
    %3 = vector.broadcast %1 : vector<128x1xf32> to vector<128x64xf32>
    %4 = vector.broadcast %2 : vector<1x64xf32> to vector<128x64xf32>
    %5 = arith.mulf %3, %4 : vector<128x64xf32>
    %6 = vector.extract_strided_slice %0 {offsets = [0, 1], sizes = [128, 1], strides = [1, 1]} : vector<128x3xf32> to vector<128x1xf32>
    %c1 = arith.constant 1 : index
    %c0_3 = arith.constant 0 : index
    %7 = vector.load %arg2[%c1, %c0_3] : memref<3x64xf32, #tpu.memory_space<vmem>>, vector<1x64xf32>
    %8 = vector.broadcast %6 : vector<128x1xf32> to vector<128x64xf32>
    %9 = vector.broadcast %7 : vector<1x64xf32> to vector<128x64xf32>
    %10 = arith.mulf %8, %9 : vector<128x64xf32>
    %11 = arith.addf %5, %10 : vector<128x64xf32>
    %12 = vector.extract_strided_slice %0 {offsets = [0, 2], sizes = [128, 1], strides = [1, 1]} : vector<128x3xf32> to vector<128x1xf32>
    %c2 = arith.constant 2 : index
    %c0_4 = arith.constant 0 : index
    %13 = vector.load %arg2[%c2, %c0_4] : memref<3x64xf32, #tpu.memory_space<vmem>>, vector<1x64xf32>
    %14 = vector.broadcast %12 : vector<128x1xf32> to vector<128x64xf32>
    %15 = vector.broadcast %13 : vector<1x64xf32> to vector<128x64xf32>
    %16 = arith.mulf %14, %15 : vector<128x64xf32>
    %17 = arith.addf %11, %16 : vector<128x64xf32>
    %18 = vector.shape_cast %17 : vector<128x64xf32> to vector<2x64x64xf32>
    %cst = arith.constant dense<0.000000e+00> : vector<2x64xf32>
    %19 = vector.multi_reduction <add>, %18, %cst [1] : vector<2x64x64xf32> to vector<2x64xf32>
    %20 = vector.shape_cast %19 : vector<2x64xf32> to vector<2x1x64xf32>
    %cst_5 = arith.constant 6.400000e+01 : f32
    %21 = vector.broadcast %cst_5 : f32 to vector<2x1x64xf32>
    %22 = arith.divf %20, %21 : vector<2x1x64xf32>
    %23 = arith.mulf %18, %18 : vector<2x64x64xf32>
    %cst_6 = arith.constant dense<0.000000e+00> : vector<2x64xf32>
    %24 = vector.multi_reduction <add>, %23, %cst_6 [1] : vector<2x64x64xf32> to vector<2x64xf32>
    %25 = vector.shape_cast %24 : vector<2x64xf32> to vector<2x1x64xf32>
    %cst_7 = arith.constant 6.400000e+01 : f32
    %26 = vector.broadcast %cst_7 : f32 to vector<2x1x64xf32>
    %27 = arith.divf %25, %26 : vector<2x1x64xf32>
    %28 = arith.mulf %22, %22 : vector<2x1x64xf32>
    %29 = arith.subf %27, %28 : vector<2x1x64xf32>
    %cst_8 = arith.constant 0.000000e+00 : f32
    %30 = vector.broadcast %cst_8 : f32 to vector<2x1x64xf32>
    %31 = arith.maximumf %29, %30 : vector<2x1x64xf32>
    %32 = vector.broadcast %22 : vector<2x1x64xf32> to vector<2x64x64xf32>
    %33 = arith.subf %18, %32 : vector<2x64x64xf32>
    %cst_9 = arith.constant 9.99999974E-6 : f32
    %34 = vector.broadcast %cst_9 : f32 to vector<2x1x64xf32>
    %35 = arith.addf %31, %34 : vector<2x1x64xf32>
    %36 = math.rsqrt %35 : vector<2x1x64xf32>
    %37 = vector.broadcast %36 : vector<2x1x64xf32> to vector<2x64x64xf32>
    %38 = arith.mulf %33, %37 : vector<2x64x64xf32>
    %cst_10 = arith.constant 0.000000e+00 : f32
    %39 = vector.broadcast %cst_10 : f32 to vector<2x64x64xf32>
    %40 = arith.maximumf %38, %39 : vector<2x64x64xf32>
    %41 = vector.shape_cast %40 : vector<2x64x64xf32> to vector<128x64xf32>
    %42 = arith.truncf %41 : vector<128x64xf32> to vector<128x64xbf16>
    %c0_11 = arith.constant 0 : index
    %c0_12 = arith.constant 0 : index
    %43 = vector.load %arg3[%c0_11, %c0_12] : memref<64x128xbf16, #tpu.memory_space<vmem>>, vector<64x128xbf16>
    %cst_13 = arith.constant dense<0.000000e+00> : vector<128x128xf32>
    %44 = tpu.matmul %42, %43, %cst_13 {dimension_numbers = #tpu.dot_dimension_numbers<[1], [0], [0], [1], [0, 0, 1, 1], [], []>} : vector<128x64xbf16>, vector<64x128xbf16>, vector<128x128xf32> -> vector<128x128xf32>
    %45 = vector.shape_cast %44 : vector<128x128xf32> to vector<2x64x128xf32>
    %cst_14 = arith.constant dense<0.000000e+00> : vector<2x128xf32>
    %46 = vector.multi_reduction <add>, %45, %cst_14 [1] : vector<2x64x128xf32> to vector<2x128xf32>
    %47 = vector.shape_cast %46 : vector<2x128xf32> to vector<2x1x128xf32>
    %cst_15 = arith.constant 6.400000e+01 : f32
    %48 = vector.broadcast %cst_15 : f32 to vector<2x1x128xf32>
    %49 = arith.divf %47, %48 : vector<2x1x128xf32>
    %50 = arith.mulf %45, %45 : vector<2x64x128xf32>
    %cst_16 = arith.constant dense<0.000000e+00> : vector<2x128xf32>
    %51 = vector.multi_reduction <add>, %50, %cst_16 [1] : vector<2x64x128xf32> to vector<2x128xf32>
    %52 = vector.shape_cast %51 : vector<2x128xf32> to vector<2x1x128xf32>
    %cst_17 = arith.constant 6.400000e+01 : f32
    %53 = vector.broadcast %cst_17 : f32 to vector<2x1x128xf32>
    %54 = arith.divf %52, %53 : vector<2x1x128xf32>
    %55 = arith.mulf %49, %49 : vector<2x1x128xf32>
    %56 = arith.subf %54, %55 : vector<2x1x128xf32>
    %cst_18 = arith.constant 0.000000e+00 : f32
    %57 = vector.broadcast %cst_18 : f32 to vector<2x1x128xf32>
    %58 = arith.maximumf %56, %57 : vector<2x1x128xf32>
    %59 = vector.broadcast %49 : vector<2x1x128xf32> to vector<2x64x128xf32>
    %60 = arith.subf %45, %59 : vector<2x64x128xf32>
    %cst_19 = arith.constant 9.99999974E-6 : f32
    %61 = vector.broadcast %cst_19 : f32 to vector<2x1x128xf32>
    %62 = arith.addf %58, %61 : vector<2x1x128xf32>
    %63 = math.rsqrt %62 : vector<2x1x128xf32>
    %64 = vector.broadcast %63 : vector<2x1x128xf32> to vector<2x64x128xf32>
    %65 = arith.mulf %60, %64 : vector<2x64x128xf32>
    %cst_20 = arith.constant 0.000000e+00 : f32
    %66 = vector.broadcast %cst_20 : f32 to vector<2x64x128xf32>
    %67 = arith.maximumf %65, %66 : vector<2x64x128xf32>
    %68 = vector.shape_cast %67 : vector<2x64x128xf32> to vector<128x128xf32>
    %69 = arith.truncf %68 : vector<128x128xf32> to vector<128x128xbf16>
    %c0_21 = arith.constant 0 : index
    %c0_22 = arith.constant 0 : index
    %70 = vector.load %arg4[%c0_21, %c0_22] : memref<128x1024xbf16, #tpu.memory_space<vmem>>, vector<128x1024xbf16>
    %cst_23 = arith.constant dense<0.000000e+00> : vector<128x1024xf32>
    %71 = tpu.matmul %69, %70, %cst_23 {dimension_numbers = #tpu.dot_dimension_numbers<[1], [0], [0], [1], [0, 0, 1, 1], [], []>} : vector<128x128xbf16>, vector<128x1024xbf16>, vector<128x1024xf32> -> vector<128x1024xf32>
    %72 = vector.shape_cast %71 : vector<128x1024xf32> to vector<2x64x1024xf32>
    %cst_24 = arith.constant dense<0.000000e+00> : vector<2x1024xf32>
    %73 = vector.multi_reduction <add>, %72, %cst_24 [1] : vector<2x64x1024xf32> to vector<2x1024xf32>
    %74 = vector.shape_cast %73 : vector<2x1024xf32> to vector<2x1x1024xf32>
    %cst_25 = arith.constant 6.400000e+01 : f32
    %75 = vector.broadcast %cst_25 : f32 to vector<2x1x1024xf32>
    %76 = arith.divf %74, %75 : vector<2x1x1024xf32>
    %77 = arith.mulf %72, %72 : vector<2x64x1024xf32>
    %cst_26 = arith.constant dense<0.000000e+00> : vector<2x1024xf32>
    %78 = vector.multi_reduction <add>, %77, %cst_26 [1] : vector<2x64x1024xf32> to vector<2x1024xf32>
    %79 = vector.shape_cast %78 : vector<2x1024xf32> to vector<2x1x1024xf32>
    %cst_27 = arith.constant 6.400000e+01 : f32
    %80 = vector.broadcast %cst_27 : f32 to vector<2x1x1024xf32>
    %81 = arith.divf %79, %80 : vector<2x1x1024xf32>
    %82 = arith.mulf %76, %76 : vector<2x1x1024xf32>
    %83 = arith.subf %81, %82 : vector<2x1x1024xf32>
    %cst_28 = arith.constant 0.000000e+00 : f32
    %84 = vector.broadcast %cst_28 : f32 to vector<2x1x1024xf32>
    %85 = arith.maximumf %83, %84 : vector<2x1x1024xf32>
    %86 = vector.broadcast %76 : vector<2x1x1024xf32> to vector<2x64x1024xf32>
    %87 = arith.subf %72, %86 : vector<2x64x1024xf32>
    %cst_29 = arith.constant 9.99999974E-6 : f32
    %88 = vector.broadcast %cst_29 : f32 to vector<2x1x1024xf32>
    %89 = arith.addf %85, %88 : vector<2x1x1024xf32>
    %90 = math.rsqrt %89 : vector<2x1x1024xf32>
    %91 = vector.broadcast %90 : vector<2x1x1024xf32> to vector<2x64x1024xf32>
    %92 = arith.mulf %87, %91 : vector<2x64x1024xf32>
    %93 = vector.shape_cast %92 : vector<2x64x1024xf32> to vector<8x16x1024xf32>
    %cst_30 = arith.constant dense<0xFF800000> : vector<8x1024xf32>
    %94 = vector.multi_reduction <maximumf>, %93, %cst_30 [1] : vector<8x16x1024xf32> to vector<8x1024xf32>
    %95 = arith.truncf %94 : vector<8x1024xf32> to vector<8x1024xbf16>
    %c0_31 = arith.constant 0 : index
    %c0_32 = arith.constant 0 : index
    %96 = vector.load %arg5[%c0_31, %c0_32] : memref<1024x128xbf16, #tpu.memory_space<vmem>>, vector<1024x128xbf16>
    %cst_33 = arith.constant dense<0.000000e+00> : vector<8x128xf32>
    %97 = tpu.matmul %95, %96, %cst_33 {dimension_numbers = #tpu.dot_dimension_numbers<[1], [0], [0], [1], [0, 0, 1, 1], [], []>} : vector<8x1024xbf16>, vector<1024x128xbf16>, vector<8x128xf32> -> vector<8x128xf32>
    %98 = vector.extract_strided_slice %97 {offsets = [0, 0], sizes = [4, 128], strides = [1, 1]} : vector<8x128xf32> to vector<4x128xf32>
    %cst_34 = arith.constant dense<0.000000e+00> : vector<128xf32>
    %99 = vector.multi_reduction <add>, %98, %cst_34 [0] : vector<4x128xf32> to vector<128xf32>
    %100 = vector.shape_cast %99 : vector<128xf32> to vector<1x128xf32>
    %cst_35 = arith.constant 4.000000e+00 : f32
    %101 = vector.broadcast %cst_35 : f32 to vector<1x128xf32>
    %102 = arith.divf %100, %101 : vector<1x128xf32>
    %103 = arith.mulf %98, %98 : vector<4x128xf32>
    %cst_36 = arith.constant dense<0.000000e+00> : vector<128xf32>
    %104 = vector.multi_reduction <add>, %103, %cst_36 [0] : vector<4x128xf32> to vector<128xf32>
    %105 = vector.shape_cast %104 : vector<128xf32> to vector<1x128xf32>
    %cst_37 = arith.constant 4.000000e+00 : f32
    %106 = vector.broadcast %cst_37 : f32 to vector<1x128xf32>
    %107 = arith.divf %105, %106 : vector<1x128xf32>
    %108 = arith.mulf %102, %102 : vector<1x128xf32>
    %109 = arith.subf %107, %108 : vector<1x128xf32>
    %cst_38 = arith.constant 0.000000e+00 : f32
    %110 = vector.broadcast %cst_38 : f32 to vector<1x128xf32>
    %111 = arith.maximumf %109, %110 : vector<1x128xf32>
    %112 = vector.broadcast %102 : vector<1x128xf32> to vector<4x128xf32>
    %113 = arith.subf %98, %112 : vector<4x128xf32>
    %cst_39 = arith.constant 9.99999974E-6 : f32
    %114 = vector.broadcast %cst_39 : f32 to vector<1x128xf32>
    %115 = arith.addf %111, %114 : vector<1x128xf32>
    %116 = math.rsqrt %115 : vector<1x128xf32>
    %117 = vector.broadcast %116 : vector<1x128xf32> to vector<4x128xf32>
    %118 = arith.mulf %113, %117 : vector<4x128xf32>
    %cst_40 = arith.constant 0.000000e+00 : f32
    %119 = vector.broadcast %cst_40 : f32 to vector<4x128xf32>
    %120 = arith.maximumf %118, %119 : vector<4x128xf32>
    %121 = vector.extract_strided_slice %97 {offsets = [4, 0], sizes = [4, 128], strides = [1, 1]} : vector<8x128xf32> to vector<4x128xf32>
    %cst_41 = arith.constant dense<0.000000e+00> : vector<128xf32>
    %122 = vector.multi_reduction <add>, %121, %cst_41 [0] : vector<4x128xf32> to vector<128xf32>
    %123 = vector.shape_cast %122 : vector<128xf32> to vector<1x128xf32>
    %cst_42 = arith.constant 4.000000e+00 : f32
    %124 = vector.broadcast %cst_42 : f32 to vector<1x128xf32>
    %125 = arith.divf %123, %124 : vector<1x128xf32>
    %126 = arith.mulf %121, %121 : vector<4x128xf32>
    %cst_43 = arith.constant dense<0.000000e+00> : vector<128xf32>
    %127 = vector.multi_reduction <add>, %126, %cst_43 [0] : vector<4x128xf32> to vector<128xf32>
    %128 = vector.shape_cast %127 : vector<128xf32> to vector<1x128xf32>
    %cst_44 = arith.constant 4.000000e+00 : f32
    %129 = vector.broadcast %cst_44 : f32 to vector<1x128xf32>
    %130 = arith.divf %128, %129 : vector<1x128xf32>
    %131 = arith.mulf %125, %125 : vector<1x128xf32>
    %132 = arith.subf %130, %131 : vector<1x128xf32>
    %cst_45 = arith.constant 0.000000e+00 : f32
    %133 = vector.broadcast %cst_45 : f32 to vector<1x128xf32>
    %134 = arith.maximumf %132, %133 : vector<1x128xf32>
    %135 = vector.broadcast %125 : vector<1x128xf32> to vector<4x128xf32>
    %136 = arith.subf %121, %135 : vector<4x128xf32>
    %cst_46 = arith.constant 9.99999974E-6 : f32
    %137 = vector.broadcast %cst_46 : f32 to vector<1x128xf32>
    %138 = arith.addf %134, %137 : vector<1x128xf32>
    %139 = math.rsqrt %138 : vector<1x128xf32>
    %140 = vector.broadcast %139 : vector<1x128xf32> to vector<4x128xf32>
    %141 = arith.mulf %136, %140 : vector<4x128xf32>
    %cst_47 = arith.constant 0.000000e+00 : f32
    %142 = vector.broadcast %cst_47 : f32 to vector<4x128xf32>
    %143 = arith.maximumf %141, %142 : vector<4x128xf32>
    %144 = arith.truncf %120 : vector<4x128xf32> to vector<4x128xbf16>
    %c0_48 = arith.constant 0 : index
    %c0_49 = arith.constant 0 : index
    %145 = vector.load %arg6[%c0_48, %c0_49] : memref<128x128xbf16, #tpu.memory_space<vmem>>, vector<128x128xbf16>
    %cst_50 = arith.constant dense<0.000000e+00> : vector<4x128xf32>
    %146 = tpu.matmul %144, %145, %cst_50 {dimension_numbers = #tpu.dot_dimension_numbers<[1], [0], [0], [1], [0, 0, 1, 1], [], []>} : vector<4x128xbf16>, vector<128x128xbf16>, vector<4x128xf32> -> vector<4x128xf32>
    %cst_51 = arith.constant dense<0.000000e+00> : vector<128xf32>
    %147 = vector.multi_reduction <add>, %146, %cst_51 [0] : vector<4x128xf32> to vector<128xf32>
    %148 = vector.shape_cast %147 : vector<128xf32> to vector<1x128xf32>
    %cst_52 = arith.constant 4.000000e+00 : f32
    %149 = vector.broadcast %cst_52 : f32 to vector<1x128xf32>
    %150 = arith.divf %148, %149 : vector<1x128xf32>
    %151 = arith.mulf %146, %146 : vector<4x128xf32>
    %cst_53 = arith.constant dense<0.000000e+00> : vector<128xf32>
    %152 = vector.multi_reduction <add>, %151, %cst_53 [0] : vector<4x128xf32> to vector<128xf32>
    %153 = vector.shape_cast %152 : vector<128xf32> to vector<1x128xf32>
    %cst_54 = arith.constant 4.000000e+00 : f32
    %154 = vector.broadcast %cst_54 : f32 to vector<1x128xf32>
    %155 = arith.divf %153, %154 : vector<1x128xf32>
    %156 = arith.mulf %150, %150 : vector<1x128xf32>
    %157 = arith.subf %155, %156 : vector<1x128xf32>
    %cst_55 = arith.constant 0.000000e+00 : f32
    %158 = vector.broadcast %cst_55 : f32 to vector<1x128xf32>
    %159 = arith.maximumf %157, %158 : vector<1x128xf32>
    %160 = vector.broadcast %150 : vector<1x128xf32> to vector<4x128xf32>
    %161 = arith.subf %146, %160 : vector<4x128xf32>
    %cst_56 = arith.constant 9.99999974E-6 : f32
    %162 = vector.broadcast %cst_56 : f32 to vector<1x128xf32>
    %163 = arith.addf %159, %162 : vector<1x128xf32>
    %164 = math.rsqrt %163 : vector<1x128xf32>
    %165 = vector.broadcast %164 : vector<1x128xf32> to vector<4x128xf32>
    %166 = arith.mulf %161, %165 : vector<4x128xf32>
    %167 = arith.truncf %143 : vector<4x128xf32> to vector<4x128xbf16>
    %c0_57 = arith.constant 0 : index
    %c0_58 = arith.constant 0 : index
    %168 = vector.load %arg6[%c0_57, %c0_58] : memref<128x128xbf16, #tpu.memory_space<vmem>>, vector<128x128xbf16>
    %cst_59 = arith.constant dense<0.000000e+00> : vector<4x128xf32>
    %169 = tpu.matmul %167, %168, %cst_59 {dimension_numbers = #tpu.dot_dimension_numbers<[1], [0], [0], [1], [0, 0, 1, 1], [], []>} : vector<4x128xbf16>, vector<128x128xbf16>, vector<4x128xf32> -> vector<4x128xf32>
    %cst_60 = arith.constant dense<0.000000e+00> : vector<128xf32>
    %170 = vector.multi_reduction <add>, %169, %cst_60 [0] : vector<4x128xf32> to vector<128xf32>
    %171 = vector.shape_cast %170 : vector<128xf32> to vector<1x128xf32>
    %cst_61 = arith.constant 4.000000e+00 : f32
    %172 = vector.broadcast %cst_61 : f32 to vector<1x128xf32>
    %173 = arith.divf %171, %172 : vector<1x128xf32>
    %174 = arith.mulf %169, %169 : vector<4x128xf32>
    %cst_62 = arith.constant dense<0.000000e+00> : vector<128xf32>
    %175 = vector.multi_reduction <add>, %174, %cst_62 [0] : vector<4x128xf32> to vector<128xf32>
    %176 = vector.shape_cast %175 : vector<128xf32> to vector<1x128xf32>
    %cst_63 = arith.constant 4.000000e+00 : f32
    %177 = vector.broadcast %cst_63 : f32 to vector<1x128xf32>
    %178 = arith.divf %176, %177 : vector<1x128xf32>
    %179 = arith.mulf %173, %173 : vector<1x128xf32>
    %180 = arith.subf %178, %179 : vector<1x128xf32>
    %cst_64 = arith.constant 0.000000e+00 : f32
    %181 = vector.broadcast %cst_64 : f32 to vector<1x128xf32>
    %182 = arith.maximumf %180, %181 : vector<1x128xf32>
    %183 = vector.broadcast %173 : vector<1x128xf32> to vector<4x128xf32>
    %184 = arith.subf %169, %183 : vector<4x128xf32>
    %cst_65 = arith.constant 9.99999974E-6 : f32
    %185 = vector.broadcast %cst_65 : f32 to vector<1x128xf32>
    %186 = arith.addf %182, %185 : vector<1x128xf32>
    %187 = math.rsqrt %186 : vector<1x128xf32>
    %188 = vector.broadcast %187 : vector<1x128xf32> to vector<4x128xf32>
    %189 = arith.mulf %184, %188 : vector<4x128xf32>
    %c0_66 = arith.constant 0 : index
    %190 = memref.load %arg0[%c0_66] : memref<1xi32, #tpu.memory_space<smem>>
    %c0_i32 = arith.constant 0 : i32
    %191 = arith.cmpi sgt, %190, %c0_i32 : i32
    %192 = arith.select %191, %166, %189 : vector<4x128xf32>
    %193 = arith.mulf %166, %189 : vector<4x128xf32>
    %cst_67 = arith.constant dense<0.000000e+00> : vector<128xf32>
    %194 = vector.multi_reduction <add>, %193, %cst_67 [0] : vector<4x128xf32> to vector<128xf32>
    %195 = vector.shape_cast %194 : vector<128xf32> to vector<1x128xf32>
    %cst_68 = arith.constant 4.000000e+00 : f32
    %196 = vector.broadcast %cst_68 : f32 to vector<1x128xf32>
    %197 = arith.divf %195, %196 : vector<1x128xf32>
    %cst_69 = arith.constant 1.000000e+00 : f32
    %198 = vector.broadcast %cst_69 : f32 to vector<1x128xf32>
    %199 = arith.subf %197, %198 : vector<1x128xf32>
    %200 = arith.mulf %199, %199 : vector<1x128xf32>
    %201 = vector.shape_cast %200 : vector<1x128xf32> to vector<1x1x128xf32>
    %cst_70 = arith.constant dense<0.000000e+00> : vector<1xf32>
    %202 = vector.multi_reduction <add>, %201, %cst_70 [1, 2] : vector<1x1x128xf32> to vector<1xf32>
    %203 = vector.shape_cast %202 : vector<1xf32> to vector<1x1x1xf32>
    %204 = vector.extract %203[0, 0, 0] : f32 from vector<1x1x1xf32>
    %cst_71 = arith.constant 1.280000e+02 : f32
    %205 = arith.divf %204, %cst_71 : f32
    %cst_72 = arith.constant 1.000000e+00 : f32
    %206 = arith.mulf %cst_72, %205 : f32
    %cst_73 = arith.constant dense<0.000000e+00> : vector<128x128xf32>
    %207 = tpu.matmul %192, %192, %cst_73 {dimension_numbers = #tpu.dot_dimension_numbers<[0], [0], [1], [1], [0, 1, 1, 1], [], []>} : vector<4x128xf32>, vector<4x128xf32>, vector<128x128xf32> -> vector<128x128xf32>
    %cst_74 = arith.constant 4.000000e+00 : f32
    %208 = vector.broadcast %cst_74 : f32 to vector<128x128xf32>
    %209 = arith.divf %207, %208 : vector<128x128xf32>
    %210 = tpu.iota {dimensions = array<i32: 0>} : vector<128x128xi32>
    %211 = tpu.iota {dimensions = array<i32: 1>} : vector<128x128xi32>
    %212 = arith.cmpi eq, %210, %211 : vector<128x128xi32>
    %213 = arith.mulf %209, %209 : vector<128x128xf32>
    %cst_75 = arith.constant 0.000000e+00 : f32
    %214 = vector.broadcast %cst_75 : f32 to vector<128x128xf32>
    %215 = arith.select %212, %214, %213 : vector<128x128xi1>, vector<128x128xf32>
    %216 = vector.shape_cast %215 : vector<128x128xf32> to vector<1x128x128xf32>
    %cst_76 = arith.constant dense<0.000000e+00> : vector<1xf32>
    %217 = vector.multi_reduction <add>, %216, %cst_76 [1, 2] : vector<1x128x128xf32> to vector<1xf32>
    %218 = vector.shape_cast %217 : vector<1xf32> to vector<1x1x1xf32>
    %219 = vector.extract %218[0, 0, 0] : f32 from vector<1x1x1xf32>
    %cst_77 = arith.constant 1.625600e+04 : f32
    %220 = arith.divf %219, %cst_77 : f32
    %cst_78 = arith.constant 5.100000e-03 : f32
    %221 = arith.mulf %cst_78, %220 : f32
    %222 = arith.addf %206, %221 : f32
    %c0_79 = arith.constant 0 : index
    %c0_80 = arith.constant 0 : index
    %223 = memref.load %arg7[%c0_79, %c0_80] : memref<1x1xf32, #tpu.memory_space<smem>>
    memref.store %222, %arg7[%c0_79, %c0_80] : memref<1x1xf32, #tpu.memory_space<smem>>
    return
  }
}

</mosaic_0001>

<bundles_post_ra>
// kernel: tpu_custom_call.1
= control target key start
LH: loop header
LB: loop body
LE: loop exit
PB: predicated region body
PF: predicated region fallthrough
CT: control target
= control target key end

     0   :  { %13 = vsyncpa [#allocation4], 0  ;;  %s7284_s0 = inlined_call_operand.<no memory space> [shape: s32[1], index: 0, kind: input, shape index: {}]   ;;  %s7285_s1 = inlined_call_operand.vmem [shape: f32[128,3], index: 1, kind: input, shape index: {}]   ;;  %s7286_s2 = inlined_call_operand.vmem [shape: f32[3,64], index: 2, kind: input, shape index: {}]   ;;  %s7287_s3 = inlined_call_operand.vmem [shape: bf16[64,128], index: 3, kind: input, shape index: {}]   ;;  %s7288_s4 = inlined_call_operand.hbm [shape: bf16[128,1024], index: 4, kind: input, shape index: {}]   ;;  %s7289_s5 = inlined_call_operand.hbm [shape: bf16[1024,128], index: 5, kind: input, shape index: {}]   ;;  %s7290_s6 = inlined_call_operand.vmem [shape: bf16[128,128], index: 6, kind: input, shape index: {}]   ;;  %s7291_s7 = inlined_call_operand.hbm [shape: f32[1,1], index: 7, kind: output, shape index: {}]  }
   0x1   :  { %14 = vsyncpa [#allocation7], 0 }
   0x2   :  { %15 = vsyncpa [#allocation5], 0  ;;  %s5249_s24 = smov [#allocation3]   ;;  %s5189_s28 = scalar_lea.hbm %s7288_s4, 8192 }
   0x3   :  { %s29_s25 = sshll.u32 %s5249_s24, 4  ;;  %p5190_p0 = scmp.ne.s32.totalorder %s7288_s4, %s5189_s28  ;;  %s30_s25 = int_to_ptr.vmem [resolvable:$true] %s29_s25 }
   0x4   :  { %p5193_p1 = scmp.lt.u32.totalorder %s5189_s28, %s7288_s4 }
   0x6   :  { %p5195_p2 = pnand %p5193_p1, %p5190_p0 }
   0x8   :  { %5198 = shalt.err (!%p5195_p2)
}
   0x9   :  { %s5199_s10 = scalar_lea.vmem %s30_s25, 8192  ;;  %p5204_p4 = scmp.lt.s32.totalorder %s30_s25, %s30_s25 }
   0xa   :  { %p5200_p3 = scmp.ne.s32.totalorder %s30_s25, %s5199_s10  ;;  %p5205_p5 = scmp.lt.s32.totalorder %s5199_s10, %s5199_s10 }
   0xc   :  { %p5206_p6 = por %p5205_p5, %p5204_p4 }
   0xe   :  { %p5207_p7 = pnand %p5206_p6, %p5200_p3 }
  0x10   :  { %5210 = shalt.err (!%p5207_p7)
}
  0x11   :  { %s5250_s11 = smov 512   ;;  %s5251_s12 = smov 32  }
  0x12   :  { %35 = dma.hbm_to_vmem [thread:$0]  %s7288_s4, 8192, %s30_s25, [#allocation4], %s5250_s11, %s5250_s11, %s5251_s12  }
  0x13   :  { %s5252_s15 = smov [#allocation6]   ;;  %s5211_s19 = scalar_lea.hbm %s7289_s5, 8192 }
  0x14   :  { %s41_s16 = sshll.u32 %s5252_s15, 4  ;;  %p5212_p8 = scmp.ne.s32.totalorder %s7289_s5, %s5211_s19  ;;  %s42_s16 = int_to_ptr.vmem [resolvable:$true] %s41_s16 }
  0x15   :  { %p5215_p9 = scmp.lt.u32.totalorder %s5211_s19, %s7289_s5 }
  0x17   :  { %p5217_p10 = pnand %p5215_p9, %p5212_p8 }
  0x19   :  { %5220 = shalt.err (!%p5217_p10)
}
  0x1a   :  { %s5221_s24 = scalar_lea.vmem %s42_s16, 8192  ;;  %p5226_p12 = scmp.lt.s32.totalorder %s42_s16, %s42_s16 }
  0x1b   :  { %p5222_p11 = scmp.ne.s32.totalorder %s42_s16, %s5221_s24  ;;  %p5227_p13 = scmp.lt.s32.totalorder %s5221_s24, %s5221_s24 }
  0x1d   :  { %p5228_p0 = por %p5227_p13, %p5226_p12 }
  0x1f   :  { %p5229_p1 = pnand %p5228_p0, %p5222_p11 }
  0x21   :  { %5232 = shalt.err (!%p5229_p1)
}
  0x22   :  { %s5253_s4 = smov 64   ;;  %s5254_s25 = smov 4  }
  0x23   :  { %47 = dma.hbm_to_vmem [thread:$0]  %s7289_s5, 8192, %s42_s16, [#allocation7], %s5253_s4, %s5253_s4, %s5254_s25  }
  0x24   :  { %5243 = dma.done.wait [#allocation4], 8192  }
  0x25   :  { %5244 = vsyncadd [#allocation4], 4294959104 }
  0x26   :  { %5245 = dma.done.wait [#allocation7], 8192  }
  0x27   :  { %5246 = vsyncadd [#allocation7], 4294959104  ;;  %v5255_v0 = vmov 1   ;;  %v5256_v1 = vmov 0   ;;  %v57_v2 = vld [vmem:[%s7285_s1] sm:$0xff]  ;;  %v58_v3 = vld [vmem:[%s7285_s1 + $0x8] sm:$0xff] }
  0x28   :  { %5034 = vset.pattern.permute.xlu1 %v5255_v0  ;;  %5033 = vset.pattern.permute.xlu0 %v5256_v1  ;;  %v59_v4 = vld [vmem:[%s7285_s1 + $0x10] sm:$0xff]  ;;  %v62_v5 = vld [vmem:[%s7285_s1 + $0x28] sm:$0xff]  ;;  %v5257_v7 = vmov 2   ;;  %v60_v8 = vld [vmem:[%s7285_s1 + $0x18] sm:$0xff]  ;;  %vm376_vm0 = vcmask 523264   ;;  %vm3355_vm1 = vcmask 1041409  }
  0x29   :  { %1255 = vmatprep.mubr.bf16.mxu1 %v5256_v1  ;;  %176 = vperm.xlu1 %5034, %v57_v2   ;;  %v63_v6 = vld [vmem:[%s7285_s1 + $0x30] sm:$0xff]  ;;  %v61_v9 = vld [vmem:[%s7285_s1 + $0x20] sm:$0xff]  ;;  %v66_v11 = vld [vmem:[%s7285_s1 + $0x48] sm:$0xff]  ;;  %vm3357_vm2 = vcmask 1042434   ;;  %vm3359_vm3 = vcmask 1043459   ;;  %vm3361_vm4 = vcmask 1044484  }
  0x2a   :  { %76 = vperm.xlu0 %5033, %v57_v2   ;;  %v65_v10 = vld [vmem:[%s7285_s1 + $0x40] sm:$0xff]  ;;  %v68_v12 = vld [vmem:[%s7285_s1 + $0x58] sm:$0xff]  ;;  %v70_v15 = vld [vmem:[%s7285_s1 + $0x68] sm:$0xff]  ;;  %vm3363_vm5 = vcmask 1045509   ;;  %vm3365_vm6 = vcmask 1046534   ;;  %vm3367_vm7 = vcmask 1047559  }
  0x2b   :  { %v64_v13 = vld [vmem:[%s7285_s1 + $0x38] sm:$0xff]  ;;  %v69_v14 = vld [vmem:[%s7285_s1 + $0x60] sm:$0xff]  ;;  %v71_v16 = vld [vmem:[%s7285_s1 + $0x70] sm:$0xff]  ;;  %vm5259_vm8 = vmmov 0   ;;  %vm3978_vm9 = vcmask 1043456   ;;  %p4233_p2 = scmp.gt.s32.totalorder %s7284_s0, 0 }
  0x2c   :  { %v67_v17 = vld [vmem:[%s7285_s1 + $0x50] sm:$0xff]  ;;  %v5065_v18 = vld [vmem:[%s7287_s3] sm:$0xff]   ;;  %v5066_v19 = vld [vmem:[%s7287_s3 + $0x8] sm:$0xff]   ;;  %vm4249_vm11 = vcmask 1040384   ;;  %vm4295_vm12 = vcmask 31744   ;;  %s5233_s20 = scalar_lea.hbm %s7291_s7, 16 }
  0x2d   :  { %180 = vperm.xlu1 %5034, %v58_v3   ;;  %4925 = vmatprep.subr.bf16.mxu0 %v5065_v18  ;;  %v5067_v20 = vld [vmem:[%s7287_s3 + $0x10] sm:$0xff]   ;;  %v5068_v21 = vld [vmem:[%s7287_s3 + $0x18] sm:$0xff]   ;;  %v5423_v40 = vld [vmem:[%s7286_s2 + $0x1] ss:$0 sm:$0xff]  ;;  %s4234_s14 = scalar_select %p4233_p2, 1, 0 }
  0x2e   :  { %81 = vperm.xlu0 %5033, %v58_v3   ;;  %4926 = vmatpush3.bf16.msra.mxu0 %v5065_v18  ;;  %v72_v22 = vld [vmem:[%s7285_s1 + $0x78] sm:$0xff]  ;;  %v5428_v41 = vld [vmem:[%s7286_s2] ss:$0 sm:$0xff]  ;;  %v5435_v44 = vld [vmem:[%s7286_s2 + $0x2] ss:$0 sm:$0xff]  ;;  %p5234_p3 = scmp.ne.s32.totalorder %s7291_s7, %s5233_s20  ;;  %p5237_p4 = scmp.lt.u32.totalorder %s5233_s20, %s7291_s7 }
  0x2f   :  { %4927 = vmatprep.subr.bf16.mxu0 %v5066_v19 }
  0x30   :  { %p5239_p5 = pnand %p5237_p4, %p5234_p3 }
  0x31   :  { %184 = vperm.xlu1 %5034, %v59_v4  }
  0x32   :  { %86 = vperm.xlu0 %5033, %v59_v4   ;;  %4928 = vmatpush3.bf16.msra.mxu0 %v5066_v19 }
  0x33   :  { %4929 = vmatprep.subr.bf16.mxu0 %v5067_v20 }
  0x35   :  { %5035 = vset.pattern.permute.xlu1 %v5257_v7 }
  0x36   :  { %101 = vperm.xlu0 %5033, %v62_v5   ;;  %281 = vperm.xlu1 %5035, %v58_v3  }
  0x37   :  { %4930 = vmatpush3.bf16.msra.mxu0 %v5067_v20 }
  0x38   :  { %4931 = vmatprep.subr.bf16.mxu0 %v5068_v21 }
  0x3a   :  { %106 = vperm.xlu0 %5033, %v63_v6   ;;  %5036 = vset.pattern.permute.xlu1 %v5256_v1 }
  0x3b   :  { %91 = vperm.xlu1 %5036, %v60_v8   ;;  %4932 = vmatpush3.bf16.msra.mxu0 %v5068_v21 }
  0x3e   :  { %5042 = vset.pattern.permute.xlu0 %v5257_v7 }
  0x3f   :  { %277 = vperm.xlu0 %5042, %v57_v2   ;;  %5037 = vset.pattern.permute.xlu1 %v5257_v7 }
  0x40   :  { %285 = vperm.xlu1 %5037, %v59_v4  }
  0x43   :  { %297 = vperm.xlu0 %5042, %v62_v5  }
  0x44   :  { %5038 = vset.pattern.permute.xlu1 %v5256_v1 }
  0x45   :  { %96 = vperm.xlu1 %5038, %v61_v9  }
  0x47   :  { %301 = vperm.xlu0 %5042, %v63_v6  }
  0x49   :  { %5039 = vset.pattern.permute.xlu1 %v5257_v7 }
  0x4a   :  { %289 = vperm.xlu1 %5039, %v60_v8  }
  0x4b   :  { %309 = vperm.xlu0 %5042, %v65_v10  }
  0x4e   :  { %5040 = vset.pattern.permute.xlu1 %v5255_v0 }
  0x4f   :  { %5051 = vset.pattern.permute.xlu0 %v5255_v0  ;;  %196 = vperm.xlu1 %5040, %v62_v5  }
  0x50   :  { %188 = vperm.xlu0 %5051, %v60_v8  }
  0x53   :  { %5041 = vset.pattern.permute.xlu1 %v5257_v7 }
  0x54   :  { %192 = vperm.xlu0 %5051, %v61_v9   ;;  %293 = vperm.xlu1 %5041, %v61_v9  }
  0x58   :  { %212 = vperm.xlu0 %5051, %v66_v11   ;;  %5043 = vset.pattern.permute.xlu1 %v5255_v0 }
  0x59   :  { %200 = vperm.xlu1 %5043, %v63_v6  }
  0x5c   :  { %220 = vperm.xlu0 %5051, %v68_v12  }
  0x5d   :  { %5044 = vset.pattern.permute.xlu1 %v5256_v1 }
  0x5e   :  { %111 = vperm.xlu1 %5044, %v64_v13  }
  0x60   :  { %224 = vperm.xlu0 %5051, %v69_v14  }
  0x62   :  { %5045 = vset.pattern.permute.xlu1 %v5255_v0 }
  0x63   :  { %204 = vperm.xlu1 %5045, %v64_v13  }
  0x64   :  { %5056 = vset.pattern.permute.xlu0 %v5256_v1 }
  0x65   :  { %116 = vperm.xlu0 %5056, %v65_v10  }
  0x67   :  { %5046 = vset.pattern.permute.xlu1 %v5257_v7 }
  0x68   :  { %305 = vperm.xlu1 %5046, %v64_v13  }
  0x69   :  { %141 = vperm.xlu0 %5056, %v70_v15  }
  0x6c   :  { %5047 = vset.pattern.permute.xlu1 %v5256_v1 }
  0x6d   :  { %146 = vperm.xlu0 %5056, %v71_v16   ;;  %121 = vperm.xlu1 %5047, %v66_v11  }
  0x71   :  { %5061 = vset.pattern.permute.xlu0 %v5257_v7  ;;  %5048 = vset.pattern.permute.xlu1 %v5255_v0 }
  0x72   :  { %329 = vperm.xlu0 %5061, %v70_v15   ;;  %208 = vperm.xlu1 %5048, %v65_v10  }
  0x76   :  { %333 = vperm.xlu0 %5061, %v71_v16   ;;  %5049 = vset.pattern.permute.xlu1 %v5256_v1 }
  0x77   :  { %126 = vperm.xlu1 %5049, %v67_v17  }
  0x7b   :  { %5050 = vset.pattern.permute.xlu1 %v5255_v0 }
  0x7c   :  { %216 = vperm.xlu1 %5050, %v67_v17  }
  0x80   :  { %5052 = vset.pattern.permute.xlu1 %v5257_v7 }
  0x81   :  { %313 = vperm.xlu1 %5052, %v66_v11  }
  0x85   :  { %5053 = vset.pattern.permute.xlu1 %v5256_v1 }
  0x86   :  { %131 = vperm.xlu1 %5053, %v68_v12  }
  0x8a   :  { %5054 = vset.pattern.permute.xlu1 %v5257_v7 }
  0x8b   :  { %317 = vperm.xlu1 %5054, %v67_v17  }
  0x8f   :  { %5055 = vset.pattern.permute.xlu1 %v5256_v1 }
  0x90   :  { %136 = vperm.xlu1 %5055, %v69_v14  }
  0x94   :  { %5057 = vset.pattern.permute.xlu1 %v5257_v7 }
  0x95   :  { %321 = vperm.xlu1 %5057, %v68_v12  }
  0x99   :  { %5058 = vset.pattern.permute.xlu1 %v5255_v0 }
  0x9a   :  { %228 = vperm.xlu1 %5058, %v70_v15  }
  0x9e   :  { %5059 = vset.pattern.permute.xlu1 %v5257_v7 }
  0x9f   :  { %325 = vperm.xlu1 %5059, %v69_v14  }
  0xa3   :  { %5060 = vset.pattern.permute.xlu1 %v5255_v0 }
  0xa4   :  { %232 = vperm.xlu1 %5060, %v71_v16  }
  0xa8   :  { %5062 = vset.pattern.permute.xlu1 %v5256_v1  ;;  %v177_v23 = vpop.permute.xlu1 %176 }
  0xa9   :  { %v77_v24 = vpop.permute.xlu0 %76  ;;  %151 = vperm.xlu1 %5062, %v72_v22   ;;  %v243_v42 = vmul.f32 %v5423_v40, %v177_v23 }
  0xaa   :  { %v158_v43 = vmul.f32 %v5428_v41, %v77_v24 }
  0xac   :  { %v181_v25 = vpop.permute.xlu1 %180  ;;  %v259_v50 = vadd.f32 %v243_v42, %v158_v43 }
  0xad   :  { %v82_v26 = vpop.permute.xlu0 %81  ;;  %5063 = vset.pattern.permute.xlu1 %v5255_v0  ;;  %v244_v47 = vmul.f32 %v5423_v40, %v181_v25 }
  0xae   :  { %236 = vperm.xlu1 %5063, %v72_v22   ;;  %v159_v48 = vmul.f32 %v5428_v41, %v82_v26 }
  0xb0   :  { %v185_v27 = vpop.permute.xlu1 %184  ;;  %v260_v56 = vadd.f32 %v244_v47, %v159_v48 }
  0xb1   :  { %v87_v28 = vpop.permute.xlu0 %86  ;;  %v245_v52 = vmul.f32 %v5423_v40, %v185_v27 }
  0xb2   :  { %5064 = vset.pattern.permute.xlu1 %v5257_v7  ;;  %v160_v53 = vmul.f32 %v5428_v41, %v87_v28 }
  0xb3   :  { %337 = vperm.xlu1 %5064, %v72_v22  }
  0xb4   :  { %v261_v63 = vadd.f32 %v245_v52, %v160_v53 }
  0xb5   :  { %v102_v29 = vpop.permute.xlu0 %101  ;;  %v282_v30 = vpop.permute.xlu1 %281 }
  0xb6   :  { %v345_v51 = vmul.f32 %v5435_v44, %v282_v30  ;;  %v163_v10 = vmul.f32 %v5428_v41, %v102_v29 }
  0xb8   :  { %v5449_v62 = vadd.f32 %v345_v51, %v260_v56 }
  0xb9   :  { %v107_v31 = vpop.permute.xlu0 %106 }
  0xba   :  { %v92_v32 = vpop.permute.xlu1 %91  ;;  %v423_v9 = vmul.f32 %v5449_v62, %v5449_v62  ;;  %v164_v11 = vmul.f32 %v5428_v41, %v107_v31  ;;  %v378_v16 = vsel %vm376_vm0, %v5449_v62, 0.0 }
  0xbb   :  { %v161_v59 = vmul.f32 %v5428_v41, %v92_v32 }
  0xbc   :  { %v439_v20 = vsel %vm376_vm0, %v423_v9, 0.0 }
  0xbe   :  { %v278_v33 = vpop.permute.xlu0 %277 }
  0xbf   :  { %v286_v34 = vpop.permute.xlu1 %285  ;;  %v344_v49 = vmul.f32 %v5435_v44, %v278_v33 }
  0xc0   :  { %v346_v60 = vmul.f32 %v5435_v44, %v286_v34 }
  0xc1   :  { %v5444_v57 = vadd.f32 %v344_v49, %v259_v50 }
  0xc2   :  { %v298_v35 = vpop.permute.xlu0 %297  ;;  %v5454_v4 = vadd.f32 %v346_v60, %v261_v63 }
  0xc3   :  { %v422_v3 = vmul.f32 %v5444_v57, %v5444_v57  ;;  %v377_v12 = vsel %vm376_vm0, %v5444_v57, 0.0  ;;  %v349_v23 = vmul.f32 %v5435_v44, %v298_v35 }
  0xc4   :  { %v97_v36 = vpop.permute.xlu1 %96  ;;  %v424_v18 = vmul.f32 %v5454_v4, %v5454_v4  ;;  %v379_v21 = vadd.f32 %v378_v16, %v377_v12  ;;  %v380_v22 = vsel %vm376_vm0, %v5454_v4, 0.0 }
  0xc5   :  { %v162_v0 = vmul.f32 %v5428_v41, %v97_v36  ;;  %v438_v17 = vsel %vm376_vm0, %v422_v3, 0.0 }
  0xc6   :  { %v302_v37 = vpop.permute.xlu0 %301  ;;  %v440_v29 = vadd.f32 %v439_v20, %v438_v17  ;;  %v441_v30 = vsel %vm376_vm0, %v424_v18, 0.0  ;;  %v381_v33 = vadd.f32 %v380_v22, %v379_v21 }
  0xc7   :  { %v350_v25 = vmul.f32 %v5435_v44, %v302_v37 }
  0xc8   :  { %v442_v42 = vadd.f32 %v441_v30, %v440_v29 }
  0xc9   :  { %v290_v38 = vpop.permute.xlu1 %289 }
  0xca   :  { %v5418_v39 = vpop.permute.xlu0 %309  ;;  %v347_v5 = vmul.f32 %v5435_v44, %v290_v38 }
  0xce   :  { %v197_v45 = vpop.permute.xlu1 %196 }
  0xcf   :  { %v189_v46 = vpop.permute.xlu0 %188  ;;  %v248_v13 = vmul.f32 %v5423_v40, %v197_v45 }
  0xd0   :  { %v246_v54 = vmul.f32 %v5423_v40, %v189_v46 }
  0xd1   :  { %v264_v26 = vadd.f32 %v248_v13, %v163_v10 }
  0xd2   :  { %v262_v2 = vadd.f32 %v246_v54, %v161_v59 }
  0xd3   :  { %v193_v55 = vpop.permute.xlu0 %192  ;;  %v294_v58 = vpop.permute.xlu1 %293  ;;  %v5487_v34 = vadd.f32 %v349_v23, %v264_v26 }
  0xd4   :  { %v247_v61 = vmul.f32 %v5423_v40, %v193_v55  ;;  %v348_v7 = vmul.f32 %v5435_v44, %v294_v58  ;;  %v5465_v14 = vadd.f32 %v347_v5, %v262_v2 }
  0xd5   :  { %v427_v49 = vmul.f32 %v5487_v34, %v5487_v34  ;;  %v386_v54 = vsel %vm376_vm0, %v5487_v34, 0.0 }
  0xd6   :  { %v263_v6 = vadd.f32 %v247_v61, %v162_v0  ;;  %v425_v27 = vmul.f32 %v5465_v14, %v5465_v14  ;;  %v382_v31 = vsel %vm376_vm0, %v5465_v14, 0.0 }
  0xd7   :  { %v383_v43 = vadd.f32 %v382_v31, %v381_v33  ;;  %v447_v60 = vsel %vm376_vm0, %v427_v49, 0.0  ;;  %v213_v31 = vpop.permute.xlu0 %212 }
  0xd8   :  { %v201_v8 = vpop.permute.xlu1 %200  ;;  %v5473_v19 = vadd.f32 %v348_v7, %v263_v6  ;;  %v443_v35 = vsel %vm376_vm0, %v425_v27, 0.0 }
  0xd9   :  { %v249_v15 = vmul.f32 %v5423_v40, %v201_v8  ;;  %v444_v48 = vadd.f32 %v443_v35, %v442_v42 }
  0xda   :  { %v426_v32 = vmul.f32 %v5473_v19, %v5473_v19  ;;  %v384_v36 = vsel %vm376_vm0, %v5473_v19, 0.0 }
  0xdb   :  { %v265_v28 = vadd.f32 %v249_v15, %v164_v11  ;;  %v385_v47 = vadd.f32 %v384_v36, %v383_v43 }
  0xdc   :  { %v445_v45 = vsel %vm376_vm0, %v426_v32, 0.0 }
  0xdd   :  { %v112_v24 = vpop.permute.xlu1 %111  ;;  %v5492_v37 = vadd.f32 %v350_v25, %v265_v28  ;;  %v446_v52 = vadd.f32 %v445_v45, %v444_v48  ;;  %v387_v59 = vadd.f32 %v386_v54, %v385_v47 }
  0xde   :  { %v165_v51 = vmul.f32 %v5428_v41, %v112_v24 }
  0xdf   :  { %v428_v50 = vmul.f32 %v5492_v37, %v5492_v37  ;;  %v388_v55 = vsel %vm376_vm0, %v5492_v37, 0.0  ;;  %v448_v0 = vadd.f32 %v447_v60, %v446_v52 }
  0xe0   :  { %v389_v2 = vadd.f32 %v388_v55, %v387_v59 }
  0xe1   :  { %v449_v61 = vsel %vm376_vm0, %v428_v50, 0.0 }
  0xe2   :  { %v205_v38 = vpop.permute.xlu1 %204  ;;  %v450_v8 = vadd.f32 %v449_v61, %v448_v0 }
  0xe3   :  { %v250_v46 = vmul.f32 %v5423_v40, %v205_v38  ;;  %v221_v38 = vpop.permute.xlu0 %220 }
  0xe5   :  { %v266_v56 = vadd.f32 %v250_v46, %v165_v51 }
  0xe7   :  { %v306_v53 = vpop.permute.xlu1 %305  ;;  %v225_v45 = vpop.permute.xlu0 %224 }
  0xe8   :  { %v351_v58 = vmul.f32 %v5435_v44, %v306_v53 }
  0xea   :  { %v5508_v63 = vadd.f32 %v351_v58, %v266_v56 }
  0xeb   :  { %v117_v54 = vpop.permute.xlu0 %116 }
  0xec   :  { %v390_v3 = vsel %vm376_vm0, %v5508_v63, 0.0  ;;  %v429_v5 = vmul.f32 %v5508_v63, %v5508_v63  ;;  %v5514_v6 = vpop.permute.xlu1 %121 }
  0xed   :  { %v391_v7 = vadd.f32 %v390_v3, %v389_v2 }
  0xee   :  { %v451_v9 = vsel %vm376_vm0, %v429_v5, 0.0 }
  0xef   :  { %v392_v10 = vrot.slane %v391_v7, 4  ;;  %v452_v11 = vadd.f32 %v451_v9, %v450_v8 }
  0xf1   :  { %v393_v12 = vadd.f32 %v392_v10, %v391_v7  ;;  %v453_v13 = vrot.slane %v452_v11, 4  ;;  %v5517_v15 = vpop.permute.xlu1 %208  ;;  %v142_v7 = vpop.permute.xlu0 %141 }
  0xf3   :  { %v394_v16 = vrot.slane %v393_v12, 2  ;;  %v454_v17 = vadd.f32 %v453_v13, %v452_v11  ;;  %v167_v13 = vmul.f32 %v5428_v41, %v5514_v6 }
  0xf5   :  { %v395_v18 = vadd.f32 %v394_v16, %v393_v12  ;;  %v455_v20 = vrot.slane %v454_v17, 2 }
  0xf6   :  { %v5519_v21 = vpop.permute.xlu1 %126 }
  0xf7   :  { %v396_v22 = vrot.slane %v395_v18, 1  ;;  %v456_v23 = vadd.f32 %v455_v20, %v454_v17  ;;  %v251_v17 = vmul.f32 %v5423_v40, %v5517_v15  ;;  %v147_v20 = vpop.permute.xlu0 %146 }
  0xf9   :  { %v397_v24 = vadd.f32 %v396_v22, %v395_v18  ;;  %v457_v25 = vrot.slane %v456_v23, 1  ;;  %v166_v18 = vmul.f32 %v5428_v41, %v117_v54 }
  0xfb   :  { %v420_v26 = vmul.f32 0.015625, %v397_v24  ;;  %v458_v27 = vadd.f32 %v457_v25, %v456_v23  ;;  %v217_v28 = vpop.permute.xlu1 %216  ;;  %v352_v24 = vmul.f32 %v5435_v44, %v5418_v39  ;;  %v254_v25 = vmul.f32 %v5423_v40, %v221_v38 }
  0xfc   :  { %v253_v23 = vmul.f32 %v5423_v40, %v217_v28 }
  0xfd   :  { %v480_v29 = vmul.f32 0.015625, %v458_v27  ;;  %v482_v30 = vmul.f32 %v420_v26, %v420_v26  ;;  %v488_v46 = vsub.f32 %v5444_v57, %v420_v26  ;;  %v489_v49 = vsub.f32 %v5449_v62, %v420_v26 }
  0xfe   :  { %v490_v50 = vsub.f32 %v5454_v4, %v420_v26  ;;  %v491_v51 = vsub.f32 %v5465_v14, %v420_v26  ;;  %v492_v53 = vsub.f32 %v5473_v19, %v420_v26  ;;  %v493_v59 = vsub.f32 %v5487_v34, %v420_v26 }
  0xff   :  { %v484_v32 = vsub.f32 %v480_v29, %v482_v30  ;;  %v495_v62 = vsub.f32 %v5508_v63, %v420_v26  ;;  %v494_v14 = vsub.f32 %v5492_v37, %v420_v26  ;;  %v252_v63 = vmul.f32 %v5423_v40, %v213_v31 }
 0x100   :  { %v314_v33 = vpop.permute.xlu1 %313  ;;  %v267_v29 = vadd.f32 %v251_v17, %v166_v18  ;;  %v168_v30 = vmul.f32 %v5428_v41, %v5519_v21 }
 0x101   :  { %v486_v35 = vmax.f32 %v484_v32, 0.0  ;;  %v353_v22 = vmul.f32 %v5435_v44, %v314_v33  ;;  %v268_v26 = vadd.f32 %v252_v63, %v167_v13 }
 0x102   :  { %v269_v28 = vadd.f32 %v253_v23, %v168_v30  ;;  %v5553_v38 = vadd.f32 %v352_v24, %v267_v29 }
 0x103   :  { %v504_v36 = vadd.f32 1e-05, %v486_v35  ;;  %v5547_v32 = vadd.f32 %v353_v22, %v268_v26  ;;  %v330_v35 = vpop.permute.xlu0 %329 }
 0x104   :  { %v430_v54 = vmul.f32 %v5553_v38, %v5553_v38 }
 0x105   :  { %5141 = vrsqrt.f32 %v504_v36  ;;  %v132_v42 = vpop.permute.xlu1 %131  ;;  %v255_v36 = vmul.f32 %v5423_v40, %v225_v45 }
 0x106   :  { %v169_v15 = vmul.f32 %v5428_v41, %v132_v42 }
 0x10a   :  { %v318_v43 = vpop.permute.xlu1 %317 }
 0x10b   :  { %v354_v31 = vmul.f32 %v5435_v44, %v318_v43 }
 0x10d   :  { %v5555_v21 = vadd.f32 %v354_v31, %v269_v28 }
 0x10f   :  { %v5142_v47 = vpop.eup %5141  ;;  %v137_v48 = vpop.permute.xlu1 %136 }
 0x110   :  { %v508_v52 = vmul.f32 %v5142_v47, %v488_v46  ;;  %v509_v55 = vmul.f32 %v5142_v47, %v489_v49  ;;  %v510_v56 = vmul.f32 %v5142_v47, %v490_v50  ;;  %v511_v58 = vmul.f32 %v5142_v47, %v491_v51 }
 0x111   :  { %v512_v61 = vmul.f32 %v5142_v47, %v492_v53  ;;  %v513_v3 = vmul.f32 %v5142_v47, %v493_v59  ;;  %v515_v10 = vmul.f32 %v5142_v47, %v495_v62  ;;  %v514_v11 = vmul.f32 %v5142_v47, %v494_v14 }
 0x112   :  { %v524_v60 = vmax.f32 %v508_v52, 0.0  ;;  %v525_v57 = vmax.f32 %v509_v55, 0.0  ;;  %v526_v0 = vmax.f32 %v510_v56, 0.0  ;;  %v527_v2 = vmax.f32 %v511_v58, 0.0  ;;  %v334_v52 = vpop.permute.xlu0 %333 }
 0x113   :  { %v528_v5 = vmax.f32 %v512_v61, 0.0  ;;  %v529_v9 = vmax.f32 %v513_v3, 0.0  ;;  %v530_v37 = vmax.f32 %v514_v11, 0.0  ;;  %v531_v16 = vmax.f32 %v515_v10, 0.0 }
 0x114   :  { %v322_v4 = vpop.permute.xlu1 %321  ;;  %v540_v19 = vpack.c.bf16 %v525_v57, %v524_v60  ;;  %v541_v8 = vpack.c.bf16 %v527_v2, %v526_v0  ;;  %v170_v39 = vmul.f32 %v5428_v41, %v137_v48  ;;  %v270_v46 = vadd.f32 %v254_v25, %v169_v15 }
 0x115   :  { %v542_v34 = vpack.c.bf16 %v529_v9, %v528_v5  ;;  %v543_v6 = vpack.c.bf16 %v531_v16, %v530_v37  ;;  %v355_v33 = vmul.f32 %v5435_v44, %v322_v4  ;;  %v431_v47 = vmul.f32 %v5547_v32, %v5547_v32 }
 0x116   :  { %4933 = vmatprep.mubr.msk.bf16.mxu0 %vm376_vm0, %v540_v19  ;;  %v171_v49 = vmul.f32 %v5428_v41, %v142_v7  ;;  %v271_v50 = vadd.f32 %v255_v36, %v170_v39  ;;  %v172_v53 = vmul.f32 %v5428_v41, %v147_v20  ;;  %v399_v55 = vsel %vm376_vm0, %v5547_v32, 0.0 }
 0x117   :  { %4934 = vmatmul.mubr.msk.bf16.vlgmr.msra.gmra.mrb[0].mxu0 %vm376_vm0, %v541_v8  ;;  %v5561_v48 = vadd.f32 %v355_v33, %v270_v46  ;;  %v432_v56 = vmul.f32 %v5555_v21, %v5555_v21  ;;  %v398_v59 = vsel %vm376_vm0, %v5553_v38, 0.0  ;;  %v460_v60 = vsel %vm376_vm0, %v431_v47, 0.0 }
 0x118   :  { %4937 = vmatprep.mubr.msk.bf16.mxu0 %vm376_vm0, %v542_v34  ;;  %v357_v61 = vmul.f32 %v5435_v44, %v330_v35  ;;  %v358_v57 = vmul.f32 %v5435_v44, %v334_v52  ;;  %v401_v2 = vsel %vm376_vm0, %v5555_v21, 0.0  ;;  %v400_v5 = vadd.f32 %v399_v55, %v398_v59 }
 0x119   :  { %v229_v12 = vpop.permute.xlu1 %228  ;;  %v433_v3 = vmul.f32 %v5561_v48, %v5561_v48  ;;  %v459_v14 = vsel %vm376_vm0, %v430_v54, 0.0  ;;  %v462_v7 = vsel %vm376_vm0, %v432_v56, 0.0  ;;  %v403_v19 = vsel %vm376_vm0, %v5561_v48, 0.0 }
 0x11a   :  { %v256_v51 = vmul.f32 %v5423_v40, %v229_v12  ;;  %v461_v9 = vadd.f32 %v460_v60, %v459_v14  ;;  %v402_v10 = vadd.f32 %v401_v2, %v400_v5 }
 0x11b   :  { %v464_v11 = vsel %vm376_vm0, %v433_v3, 0.0 }
 0x11c   :  { %v272_v62 = vadd.f32 %v256_v51, %v171_v49  ;;  %v463_v37 = vadd.f32 %v462_v7, %v461_v9  ;;  %v404_v16 = vadd.f32 %v403_v19, %v402_v10 }
 0x11e   :  { %v326_v27 = vpop.permute.xlu1 %325  ;;  %v5590_v34 = vadd.f32 %v357_v61, %v272_v62  ;;  %v465_v20 = vadd.f32 %v464_v11, %v463_v37 }
 0x11f   :  { %4938 = vmatmul.mubr.msk.bf16.gmra.mrb[4].mxu0 %vm376_vm0, %v543_v6  ;;  %v356_v42 = vmul.f32 %v5435_v44, %v326_v27 }
 0x120   :  { %v435_v23 = vmul.f32 %v5590_v34, %v5590_v34  ;;  %v407_v6 = vsel %vm376_vm0, %v5590_v34, 0.0 }
 0x121   :  { %v5572_v58 = vadd.f32 %v356_v42, %v271_v50 }
 0x122   :  { %v468_v31 = vsel %vm376_vm0, %v435_v23, 0.0 }
 0x123   :  { %v233_v43 = vpop.permute.xlu1 %232  ;;  %v434_v8 = vmul.f32 %v5572_v58, %v5572_v58  ;;  %v405_v12 = vsel %vm376_vm0, %v5572_v58, 0.0 }
 0x124   :  { %v257_v45 = vmul.f32 %v5423_v40, %v233_v43  ;;  %v406_v22 = vadd.f32 %v405_v12, %v404_v16 }
 0x125   :  { %v466_v17 = vsel %vm376_vm0, %v434_v8, 0.0 }
 0x126   :  { %v273_v4 = vadd.f32 %v257_v45, %v172_v53  ;;  %v467_v26 = vadd.f32 %v466_v17, %v465_v20  ;;  %v408_v15 = vadd.f32 %v407_v6, %v406_v22 }
 0x128   :  { %v152_v0 = vpop.permute.xlu1 %151  ;;  %v5594_v63 = vadd.f32 %v358_v57, %v273_v4  ;;  %v469_v33 = vadd.f32 %v468_v31, %v467_v26 }
 0x129   :  { %v173_v25 = vmul.f32 %v5428_v41, %v152_v0 }
 0x12a   :  { %v436_v24 = vmul.f32 %v5594_v63, %v5594_v63  ;;  %v409_v29 = vsel %vm376_vm0, %v5594_v63, 0.0 }
 0x12b   :  { %v410_v35 = vadd.f32 %v409_v29, %v408_v15  ;;  %v839_v29 = vld [vmem:[#allocation3] sm:$0xff]  ;;  %v844_v15 = vld [vmem:[#allocation3 + $0x28] sm:$0xff] }
 0x12c   :  { %v470_v28 = vsel %vm376_vm0, %v436_v24, 0.0 }
 0x12d   :  { %v237_v13 = vpop.permute.xlu1 %236  ;;  %v471_v46 = vadd.f32 %v470_v28, %v469_v33  ;;  %v847_v33 = vld [vmem:[#allocation3 + $0x40] sm:$0xff] }
 0x12e   :  { %v258_v18 = vmul.f32 %v5423_v40, %v237_v13 }
 0x130   :  { %v274_v30 = vadd.f32 %v258_v18, %v173_v25 }
 0x132   :  { %v338_v27 = vpop.permute.xlu1 %337 }
 0x133   :  { %v359_v40 = vmul.f32 %v5435_v44, %v338_v27 }
 0x135   :  { %v375_v39 = vadd.f32 %v359_v40, %v274_v30  ;;  %v840_v30 = vld [vmem:[#allocation3 + $0x8] sm:$0xff] }
 0x136   :  { %v4638_v31 = vcombine.low %v840_v30, %v844_v15  ;;  %v4639_v28 = vcombine.high %v840_v30, %v844_v15  ;;  %v5626_v30 = vld [vmem:[#allocation3 + $0x30] sm:$0xff] }
 0x137   :  { %v411_v41 = vsel %vm376_vm0, %v375_v39, 0.0  ;;  %v437_v36 = vmul.f32 %v375_v39, %v375_v39 }
 0x138   :  { %v412_v42 = vadd.f32 %v411_v41, %v410_v35  ;;  %1336 = vmatprep.subr.bf16.mxu0 %v4639_v28  ;;  %v851_v35 = vld [vmem:[#allocation3 + $0x60] sm:$0xff]  ;;  %v848_v41 = vld [vmem:[#allocation3 + $0x48] sm:$0xff]  ;;  %v5634_v28 = vld [vmem:[#allocation3 + $0x38] sm:$0xff] }
 0x139   :  { %v472_v43 = vsel %vm376_vm0, %v437_v36, 0.0  ;;  %1337 = vmatpush1.bf16.msra.mxu0 %v4638_v31  ;;  %v4645_v36 = vcombine.high %v847_v33, %v851_v35 }
 0x13a   :  { %v413_v47 = vrot.slane %v412_v42, 4  ;;  %v473_v49 = vadd.f32 %v472_v43, %v471_v46  ;;  %v852_v46 = vld [vmem:[#allocation3 + $0x68] sm:$0xff] }
 0x13b   :  { %v4647_v43 = vcombine.high %v848_v41, %v852_v46 }
 0x13c   :  { %v414_v50 = vadd.f32 %v413_v47, %v412_v42  ;;  %v474_v51 = vrot.slane %v473_v49, 4  ;;  %v4646_v42 = vcombine.low %v848_v41, %v852_v46  ;;  %v4644_v47 = vcombine.low %v847_v33, %v851_v35 }
 0x13d   :  { %1338 = vmatprep.subr.bf16.mxu0 %v4647_v43 }
 0x13e   :  { %v415_v44 = vrot.slane %v414_v50, 2  ;;  %v475_v45 = vadd.f32 %v474_v51, %v473_v49  ;;  %v855_v49 = vld [vmem:[#allocation3 + $0x80] sm:$0xff]  ;;  %v856_v51 = vld [vmem:[#allocation3 + $0x88] sm:$0xff]  ;;  %1339 = vmatpush1.bf16.msra.mxu0 %v4646_v42 }
 0x140   :  { %v416_v52 = vadd.f32 %v415_v44, %v414_v50  ;;  %v476_v53 = vrot.slane %v475_v45, 2  ;;  %v859_v50 = vld [vmem:[#allocation3 + $0xa0] sm:$0xff] }
 0x141   :  { %v4653_v44 = vcombine.high %v855_v49, %v859_v50 }
 0x142   :  { %v417_v54 = vrot.slane %v416_v52, 1  ;;  %v477_v55 = vadd.f32 %v476_v53, %v475_v45  ;;  %v860_v45 = vld [vmem:[#allocation3 + $0xa8] sm:$0xff] }
 0x143   :  { %v4655_v53 = vcombine.high %v856_v51, %v860_v45 }
 0x144   :  { %v418_v56 = vadd.f32 %v417_v54, %v416_v52  ;;  %v478_v59 = vrot.slane %v477_v55, 1  ;;  %v4654_v52 = vcombine.low %v856_v51, %v860_v45  ;;  %v4652_v54 = vcombine.low %v855_v49, %v859_v50 }
 0x145   :  { %1340 = vmatprep.subr.bf16.mxu0 %v4655_v53 }
 0x146   :  { %v421_v60 = vmul.f32 0.015625, %v418_v56  ;;  %v479_v61 = vadd.f32 %v478_v59, %v477_v55  ;;  %v863_v55 = vld [vmem:[#allocation3 + $0xc0] sm:$0xff]  ;;  %v864_v59 = vld [vmem:[#allocation3 + $0xc8] sm:$0xff]  ;;  %1341 = vmatpush1.bf16.msra.mxu0 %v4654_v52 }
 0x147   :  { %v867_v56 = vld [vmem:[#allocation3 + $0xe0] sm:$0xff] }
 0x148   :  { %v481_v57 = vmul.f32 0.015625, %v479_v61  ;;  %v483_v0 = vmul.f32 %v421_v60, %v421_v60  ;;  %v496_v4 = vsub.f32 %v5553_v38, %v421_v60  ;;  %v497_v5 = vsub.f32 %v5547_v32, %v421_v60  ;;  %v868_v61 = vld [vmem:[#allocation3 + $0xe8] sm:$0xff] }
 0x149   :  { %v498_v14 = vsub.f32 %v5555_v21, %v421_v60  ;;  %v499_v19 = vsub.f32 %v5561_v48, %v421_v60  ;;  %v500_v8 = vsub.f32 %v5572_v58, %v421_v60  ;;  %v501_v9 = vsub.f32 %v5590_v34, %v421_v60 }
 0x14a   :  { %v485_v2 = vsub.f32 %v481_v57, %v483_v0  ;;  %v503_v17 = vsub.f32 %v375_v39, %v421_v60  ;;  %v502_v23 = vsub.f32 %v5594_v63, %v421_v60  ;;  %v843_v63 = vld [vmem:[#allocation3 + $0x20] sm:$0xff]  ;;  %v4661_v60 = vcombine.high %v863_v55, %v867_v56 }
 0x14b   :  { %v4637_v40 = vcombine.high %v839_v29, %v843_v63  ;;  %v4636_v39 = vcombine.low %v839_v29, %v843_v63  ;;  %v4662_v57 = vcombine.low %v864_v59, %v868_v61  ;;  %v4663_v0 = vcombine.high %v864_v59, %v868_v61  ;;  %v5624_v63 = vld [vmem:[#allocation3 + $0x10] sm:$0xff] }
 0x14c   :  { %v487_v3 = vmax.f32 %v485_v2, 0.0  ;;  %v4660_v2 = vcombine.low %v863_v55, %v867_v56  ;;  %v4641_v31 = vcombine.high %v5624_v63, %v5626_v30 }
 0x14d   :  { %1223 = vmatprep.subr.bf16.mxu1 %v4637_v40  ;;  %1342 = vmatprep.subr.bf16.mxu0 %v4663_v0  ;;  %v5628_v40 = vld [vmem:[#allocation3 + $0x18] sm:$0xff] }
 0x14e   :  { %v505_v62 = vadd.f32 1e-05, %v487_v3  ;;  %1224 = vmatpush1.bf16.msra.mxu1 %v4636_v39  ;;  %v871_v3 = vld [vmem:[#allocation3 + $0x100] sm:$0xff]  ;;  %1343 = vmatpush1.bf16.msra.mxu0 %v4662_v57  ;;  %v4643_v33 = vcombine.high %v5628_v40, %v5634_v28 }
 0x14f   :  { %1225 = vmatprep.subr.bf16.mxu1 %v4645_v36 }
 0x150   :  { %5143 = vrsqrt.f32 %v505_v62  ;;  %v875_v62 = vld [vmem:[#allocation3 + $0x120] sm:$0xff] }
 0x152   :  { %1226 = vmatpush1.bf16.msra.mxu1 %v4644_v47 }
 0x153   :  { %1227 = vmatprep.subr.bf16.mxu1 %v4653_v44 }
 0x156   :  { %1228 = vmatpush1.bf16.msra.mxu1 %v4652_v54 }
 0x157   :  { %1229 = vmatprep.subr.bf16.mxu1 %v4661_v60 }
 0x15a   :  { %v5144_v7 = vpop.eup %5143  ;;  %1230 = vmatpush1.bf16.msra.mxu1 %v4660_v2 }
 0x15b   :  { %v516_v10 = vmul.f32 %v5144_v7, %v496_v4  ;;  %v517_v11 = vmul.f32 %v5144_v7, %v497_v5  ;;  %v518_v12 = vmul.f32 %v5144_v7, %v498_v14  ;;  %v519_v13 = vmul.f32 %v5144_v7, %v499_v19  ;;  %v872_v4 = vld [vmem:[#allocation3 + $0x108] sm:$0xff] }
 0x15c   :  { %v520_v37 = vmul.f32 %v5144_v7, %v500_v8  ;;  %v521_v16 = vmul.f32 %v5144_v7, %v501_v9  ;;  %v523_v24 = vmul.f32 %v5144_v7, %v503_v17  ;;  %v522_v25 = vmul.f32 %v5144_v7, %v502_v23  ;;  %v876_v14 = vld [vmem:[#allocation3 + $0x128] sm:$0xff]  ;;  %v879_v9 = vld [vmem:[#allocation3 + $0x140] sm:$0xff] }
 0x15d   :  { %v532_v18 = vmax.f32 %v516_v10, 0.0  ;;  %v533_v38 = vmax.f32 %v517_v11, 0.0  ;;  %v534_v20 = vmax.f32 %v518_v12, 0.0  ;;  %v535_v32 = vmax.f32 %v519_v13, 0.0  ;;  %v883_v10 = vld [vmem:[#allocation3 + $0x160] sm:$0xff]  ;;  %v880_v11 = vld [vmem:[#allocation3 + $0x148] sm:$0xff] }
 0x15e   :  { %v536_v22 = vmax.f32 %v520_v37, 0.0  ;;  %v537_v21 = vmax.f32 %v521_v16, 0.0  ;;  %v538_v26 = vmax.f32 %v522_v25, 0.0  ;;  %v539_v27 = vmax.f32 %v523_v24, 0.0  ;;  %v884_v13 = vld [vmem:[#allocation3 + $0x168] sm:$0xff]  ;;  %v895_v24 = vld [vmem:[#allocation3 + $0x1c0] sm:$0xff] }
 0x15f   :  { %v544_v48 = vpack.c.bf16 %v533_v38, %v532_v18  ;;  %v545_v58 = vpack.c.bf16 %v535_v32, %v534_v20  ;;  %v4669_v5 = vcombine.high %v871_v3, %v875_v62  ;;  %v4670_v7 = vcombine.low %v872_v4, %v876_v14  ;;  %v887_v18 = vld [vmem:[#allocation3 + $0x180] sm:$0xff]  ;;  %v888_v20 = vld [vmem:[#allocation3 + $0x188] sm:$0xff] }
 0x160   :  { %v546_v34 = vpack.c.bf16 %v537_v21, %v536_v22  ;;  %v547_v6 = vpack.c.bf16 %v539_v27, %v538_v26  ;;  %v4671_v19 = vcombine.high %v872_v4, %v876_v14  ;;  %v4668_v8 = vcombine.low %v871_v3, %v875_v62  ;;  %v891_v38 = vld [vmem:[#allocation3 + $0x1a0] sm:$0xff]  ;;  %v892_v22 = vld [vmem:[#allocation3 + $0x1a8] sm:$0xff] }
 0x161   :  { %4941 = vmatprep.mubr.msk.bf16.mxu0 %vm376_vm0, %v544_v48  ;;  %1231 = vmatprep.subr.bf16.mxu1 %v4669_v5  ;;  %v4677_v12 = vcombine.high %v879_v9, %v883_v10  ;;  %v4678_v37 = vcombine.low %v880_v11, %v884_v13  ;;  %v4679_v16 = vcombine.high %v880_v11, %v884_v13  ;;  %v896_v25 = vld [vmem:[#allocation3 + $0x1c8] sm:$0xff] }
 0x162   :  { %4942 = vmatmul.mubr.msk.bf16.gmra.mrb[8].mxu0 %vm376_vm0, %v545_v58  ;;  %1344 = vmatprep.subr.bf16.mxu0 %v4671_v19  ;;  %v4676_v17 = vcombine.low %v879_v9, %v883_v10  ;;  %v4685_v32 = vcombine.high %v887_v18, %v891_v38  ;;  %v4686_v21 = vcombine.low %v888_v20, %v892_v22  ;;  %v899_v58 = vld [vmem:[#allocation3 + $0x1e0] sm:$0xff]  ;;  %v900_v26 = vld [vmem:[#allocation3 + $0x1e8] sm:$0xff] }
 0x163   :  { %4945 = vmatprep.mubr.msk.bf16.mxu0 %vm376_vm0, %v546_v34  ;;  %1232 = vmatpush1.bf16.msra.mxu1 %v4668_v8  ;;  %v4687_v23 = vcombine.high %v888_v20, %v892_v22  ;;  %v4684_v48 = vcombine.low %v887_v18, %v891_v38  ;;  %v4693_v34 = vcombine.high %v895_v24, %v899_v58 }
 0x164   :  { %1345 = vmatpush1.bf16.msra.mxu0 %v4670_v7  ;;  %1233 = vmatprep.subr.bf16.mxu1 %v4677_v12  ;;  %v4692_v27 = vcombine.low %v895_v24, %v899_v58  ;;  %v4695_v29 = vcombine.high %v896_v25, %v900_v26 }
 0x165   :  { %1346 = vmatprep.subr.bf16.mxu0 %v4679_v16 }
 0x167   :  { %1234 = vmatpush1.bf16.msra.mxu1 %v4676_v17 }
 0x168   :  { %1347 = vmatpush1.bf16.msra.mxu0 %v4678_v37  ;;  %1235 = vmatprep.subr.bf16.mxu1 %v4685_v32 }
 0x169   :  { %1348 = vmatprep.subr.bf16.mxu0 %v4687_v23 }
 0x16a   :  { %4946 = vmatmul.mubr.msk.bf16.gmra.mrb[12].mxu0 %vm376_vm0, %v547_v6  ;;  %v4694_v6 = vcombine.low %v896_v25, %v900_v26 }
 0x16b   :  { %1368 = vmatprep.mubr.bf16.mxu0 %v5256_v1  ;;  %1236 = vmatpush1.bf16.msra.mxu1 %v4684_v48 }
 0x16c   :  { %1349 = vmatpush1.bf16.msra.mxu0 %v4686_v21  ;;  %1237 = vmatprep.subr.bf16.mxu1 %v4693_v34 }
 0x16d   :  { %1350 = vmatprep.subr.bf16.mxu0 %v4695_v29 }
 0x16f   :  { %1238 = vmatpush1.bf16.msra.mxu1 %v4692_v27 }
 0x170   :  { %1351 = vmatpush1.bf16.msra.mxu0 %v4694_v6  ;;  %1449 = vmatprep.subr.bf16.mxu1 %v4641_v31 }
 0x171   :  { %1562 = vmatprep.subr.bf16.mxu0 %v4643_v33 }
 0x1ea   :  { %v5630_v15 = vpop.f32.mrb[0].mxu0 }
 0x1eb   :  { %v638_v39 = vpop.f32.mrb[1].mxu0  ;;  %v731_v43 = vmul.f32 %v5630_v15, %v5630_v15 }
 0x1ec   :  { %v5638_v35 = vpop.f32.mrb[2].mxu0  ;;  %v729_v36 = vmul.f32 %v638_v39, %v638_v39 }
 0x1ed   :  { %v641_v41 = vpop.f32.mrb[3].mxu0  ;;  %v732_v50 = vmul.f32 %v5638_v35, %v5638_v35 }
 0x1ee   :  { %v701_v46 = vadd.f32 %v641_v41, %v638_v39  ;;  %v730_v42 = vmul.f32 %v641_v41, %v641_v41 }
 0x1f0   :  { %v702_v47 = vadd.f32 %v5630_v15, %v701_v46  ;;  %v745_v49 = vadd.f32 %v730_v42, %v729_v36 }
 0x1f2   :  { %v746_v51 = vadd.f32 %v745_v49, %v731_v43  ;;  %v4939_v44 = vpop.f32.mrb[4].mxu0  ;;  %v703_v45 = vadd.f32 %v5638_v35, %v702_v47  ;;  %v849_v47 = vld [vmem:[#allocation3 + $0x50] sm:$0xff] }
 0x1f3   :  { %v654_v52 = vpop.f32.mrb[5].mxu0  ;;  %v735_v0 = vmul.f32 %v4939_v44, %v4939_v44 }
 0x1f4   :  { %v704_v53 = vadd.f32 %v703_v45, %v654_v52  ;;  %v733_v54 = vmul.f32 %v654_v52, %v654_v52  ;;  %v747_v55 = vadd.f32 %v746_v51, %v732_v50  ;;  %v4940_v56 = vpop.f32.mrb[6].mxu0  ;;  %v854_v45 = vld [vmem:[#allocation3 + $0x78] sm:$0xff] }
 0x1f5   :  { %v657_v59 = vpop.f32.mrb[7].mxu0  ;;  %v736_v62 = vmul.f32 %v4940_v56, %v4940_v56 }
 0x1f6   :  { %v748_v60 = vadd.f32 %v747_v55, %v733_v54  ;;  %v705_v61 = vadd.f32 %v704_v53, %v657_v59  ;;  %v734_v57 = vmul.f32 %v657_v59, %v657_v59 }
 0x1f8   :  { %v706_v2 = vadd.f32 %v4939_v44, %v705_v61  ;;  %v749_v3 = vadd.f32 %v748_v60, %v734_v57  ;;  %v4642_v60 = vcombine.low %v5628_v40, %v5634_v28 }
 0x1fa   :  { %v707_v4 = vadd.f32 %v4940_v56, %v706_v2  ;;  %v750_v5 = vadd.f32 %v749_v3, %v735_v0 }
 0x1fc   :  { %v708_v14 = vrot.slane %v707_v4, 4  ;;  %v751_v7 = vadd.f32 %v750_v5, %v736_v62  ;;  %v857_v62 = vld [vmem:[#allocation3 + $0x90] sm:$0xff]  ;;  %v858_v5 = vld [vmem:[#allocation3 + $0x98] sm:$0xff] }
 0x1fe   :  { %v709_v19 = vadd.f32 %v708_v14, %v707_v4  ;;  %v752_v8 = vrot.slane %v751_v7, 4  ;;  %v861_v4 = vld [vmem:[#allocation3 + $0xb0] sm:$0xff]  ;;  %v862_v14 = vld [vmem:[#allocation3 + $0xb8] sm:$0xff] }
 0x1ff   :  { %v4657_v40 = vcombine.high %v857_v62, %v861_v4  ;;  %v4659_v28 = vcombine.high %v858_v5, %v862_v14 }
 0x200   :  { %v710_v9 = vrot.slane %v709_v19, 2  ;;  %v753_v10 = vadd.f32 %v752_v8, %v751_v7  ;;  %v865_v7 = vld [vmem:[#allocation3 + $0xd0] sm:$0xff]  ;;  %v866_v8 = vld [vmem:[#allocation3 + $0xd8] sm:$0xff] }
 0x202   :  { %v711_v11 = vadd.f32 %v710_v9, %v709_v19  ;;  %v754_v12 = vrot.slane %v753_v10, 2  ;;  %v869_v19 = vld [vmem:[#allocation3 + $0xf0] sm:$0xff]  ;;  %v870_v9 = vld [vmem:[#allocation3 + $0xf8] sm:$0xff] }
 0x204   :  { %v712_v13 = vrot.slane %v711_v11, 1  ;;  %v755_v37 = vadd.f32 %v754_v12, %v753_v10  ;;  %v4656_v10 = vcombine.low %v857_v62, %v861_v4  ;;  %v4665_v12 = vcombine.high %v865_v7, %v869_v19 }
 0x206   :  { %v713_v16 = vadd.f32 %v712_v13, %v711_v11  ;;  %v756_v17 = vrot.slane %v755_v37, 1  ;;  %v4658_v11 = vcombine.low %v858_v5, %v862_v14  ;;  %v4667_v13 = vcombine.high %v866_v8, %v870_v9 }
 0x208   :  { %v727_v18 = vmul.f32 0.015625, %v713_v16  ;;  %v757_v38 = vadd.f32 %v756_v17, %v755_v37  ;;  %v873_v37 = vld [vmem:[#allocation3 + $0x110] sm:$0xff]  ;;  %v874_v17 = vld [vmem:[#allocation3 + $0x118] sm:$0xff] }
 0x209   :  { %v877_v16 = vld [vmem:[#allocation3 + $0x130] sm:$0xff] }
 0x20a   :  { %v771_v20 = vmul.f32 0.015625, %v757_v38  ;;  %v773_v32 = vmul.f32 %v727_v18, %v727_v18  ;;  %v784_v22 = vsub.f32 %v657_v59, %v727_v18  ;;  %v779_v21 = vsub.f32 %v638_v39, %v727_v18 }
 0x20b   :  { %v780_v23 = vsub.f32 %v641_v41, %v727_v18  ;;  %v781_v48 = vsub.f32 %v5630_v15, %v727_v18  ;;  %v782_v24 = vsub.f32 %v5638_v35, %v727_v18  ;;  %v783_v58 = vsub.f32 %v654_v52, %v727_v18  ;;  %v853_v15 = vld [vmem:[#allocation3 + $0x70] sm:$0xff] }
 0x20c   :  { %v775_v25 = vsub.f32 %v771_v20, %v773_v32  ;;  %v785_v34 = vsub.f32 %v4939_v44, %v727_v18  ;;  %v786_v26 = vsub.f32 %v4940_v56, %v727_v18  ;;  %v850_v44 = vld [vmem:[#allocation3 + $0x58] sm:$0xff]  ;;  %v4640_v59 = vcombine.low %v5624_v63, %v5626_v30 }
 0x20d   :  { %v4649_v61 = vcombine.high %v849_v47, %v853_v15  ;;  %v4651_v3 = vcombine.high %v850_v44, %v854_v45  ;;  %v4648_v63 = vcombine.low %v849_v47, %v853_v15  ;;  %v4650_v30 = vcombine.low %v850_v44, %v854_v45  ;;  %v878_v18 = vld [vmem:[#allocation3 + $0x138] sm:$0xff]  ;;  %v901_v15 = vld [vmem:[#allocation3 + $0x1f0] sm:$0xff] }
 0x20e   :  { %v777_v27 = vmax.f32 %v775_v25, 0.0  ;;  %v4664_v38 = vcombine.low %v865_v7, %v869_v19  ;;  %v4666_v20 = vcombine.low %v866_v8, %v870_v9  ;;  %v4673_v32 = vcombine.high %v873_v37, %v877_v16 }
 0x20f   :  { %v4674_v25 = vcombine.low %v874_v17, %v878_v18 }
 0x210   :  { %v795_v6 = vadd.f32 1e-05, %v777_v27  ;;  %v889_v27 = vld [vmem:[#allocation3 + $0x190] sm:$0xff] }
 0x212   :  { %5145 = vrsqrt.f32 %v795_v6  ;;  %v893_v6 = vld [vmem:[#allocation3 + $0x1b0] sm:$0xff] }
 0x21c   :  { %v5146_v29 = vpop.eup %5145 }
 0x21d   :  { %v804_v31 = vmul.f32 %v5146_v29, %v784_v22  ;;  %v799_v33 = vmul.f32 %v5146_v29, %v779_v21  ;;  %v800_v36 = vmul.f32 %v5146_v29, %v780_v23  ;;  %v801_v46 = vmul.f32 %v5146_v29, %v781_v48  ;;  %v881_v21 = vld [vmem:[#allocation3 + $0x150] sm:$0xff]  ;;  %v882_v48 = vld [vmem:[#allocation3 + $0x158] sm:$0xff] }
 0x21e   :  { %v802_v42 = vmul.f32 %v5146_v29, %v782_v24  ;;  %v803_v43 = vmul.f32 %v5146_v29, %v783_v58  ;;  %v805_v39 = vmul.f32 %v5146_v29, %v785_v34  ;;  %v806_v41 = vmul.f32 %v5146_v29, %v786_v26  ;;  %v885_v23 = vld [vmem:[#allocation3 + $0x170] sm:$0xff]  ;;  %v886_v24 = vld [vmem:[#allocation3 + $0x178] sm:$0xff] }
 0x21f   :  { %v820_v49 = vmax.f32 %v804_v31, 0.0  ;;  %v815_v35 = vmax.f32 %v799_v33, 0.0  ;;  %v816_v50 = vmax.f32 %v800_v36, 0.0  ;;  %v817_v51 = vmax.f32 %v801_v46, 0.0  ;;  %v890_v29 = vld [vmem:[#allocation3 + $0x198] sm:$0xff] }
 0x220   :  { %v818_v52 = vmax.f32 %v802_v42, 0.0  ;;  %v819_v53 = vmax.f32 %v803_v43, 0.0  ;;  %v821_v54 = vmax.f32 %v805_v39, 0.0  ;;  %v822_v55 = vmax.f32 %v806_v41, 0.0  ;;  %v894_v31 = vld [vmem:[#allocation3 + $0x1b8] sm:$0xff]  ;;  %v897_v43 = vld [vmem:[#allocation3 + $0x1d0] sm:$0xff] }
 0x221   :  { %v5648_v56 = vpack.c.bf16 %v816_v50, %v815_v35  ;;  %v4675_v22 = vcombine.high %v874_v17, %v878_v18  ;;  %v4672_v58 = vcombine.low %v873_v37, %v877_v16  ;;  %v4681_v34 = vcombine.high %v881_v21, %v885_v23  ;;  %v902_v35 = vld [vmem:[#allocation3 + $0x1f8] sm:$0xff] }
 0x222   :  { %v5654_v57 = vpack.c.bf16 %v818_v52, %v817_v51  ;;  %v5656_v0 = vpack.c.bf16 %v820_v49, %v819_v53  ;;  %v5658_v2 = vpack.c.bf16 %v822_v55, %v821_v54  ;;  %v4683_v26 = vcombine.high %v882_v48, %v886_v24  ;;  %v898_v49 = vld [vmem:[#allocation3 + $0x1d8] sm:$0xff] }
 0x223   :  { %1256 = vmatmul.mubr.bf16.vlgmr.msra.gmra.mrb[0].mxu1 %v5648_v56  ;;  %1369 = vmatmul.mubr.bf16.vlgmr.msra.gmra.mrb[16].mxu0 %v5648_v56  ;;  %v4680_v46 = vcombine.low %v881_v21, %v885_v23  ;;  %v4682_v42 = vcombine.low %v882_v48, %v886_v24  ;;  %v4689_v41 = vcombine.high %v889_v27, %v893_v6 }
 0x224   :  { %1265 = vmatprep.mubr.bf16.mxu1 %v5256_v1  ;;  %1378 = vmatprep.mubr.bf16.mxu0 %v5256_v1  ;;  %v4691_v47 = vcombine.high %v890_v29, %v894_v31  ;;  %v4688_v52 = vcombine.low %v889_v27, %v893_v6  ;;  %v4690_v53 = vcombine.low %v890_v29, %v894_v31 }
 0x225   :  { %1450 = vmatpush1.bf16.msra.mxu1 %v4640_v59  ;;  %1563 = vmatpush1.bf16.msra.mxu0 %v4642_v60  ;;  %v4697_v54 = vcombine.high %v897_v43, %v901_v15  ;;  %v4699_v55 = vcombine.high %v898_v49, %v902_v35 }
 0x226   :  { %1451 = vmatprep.subr.bf16.mxu1 %v4649_v61  ;;  %1564 = vmatprep.subr.bf16.mxu0 %v4651_v3 }
 0x229   :  { %1452 = vmatpush1.bf16.msra.mxu1 %v4648_v63  ;;  %1565 = vmatpush1.bf16.msra.mxu0 %v4650_v30  ;;  %v4696_v63 = vcombine.low %v897_v43, %v901_v15  ;;  %v4698_v30 = vcombine.low %v898_v49, %v902_v35 }
 0x22a   :  { %1453 = vmatprep.subr.bf16.mxu1 %v4657_v40  ;;  %1566 = vmatprep.subr.bf16.mxu0 %v4659_v28 }
 0x22b   :  { %1266 = vmatmul.mubr.bf16.gmra.mrb[4].mxu1 %v5654_v57  ;;  %1379 = vmatmul.mubr.bf16.gmra.mrb[20].mxu0 %v5654_v57 }
 0x22c   :  { %1275 = vmatprep.mubr.bf16.mxu1 %v5256_v1  ;;  %1388 = vmatprep.mubr.bf16.mxu0 %v5256_v1 }
 0x22d   :  { %1454 = vmatpush1.bf16.msra.mxu1 %v4656_v10  ;;  %1567 = vmatpush1.bf16.msra.mxu0 %v4658_v11 }
 0x22e   :  { %1455 = vmatprep.subr.bf16.mxu1 %v4665_v12  ;;  %1568 = vmatprep.subr.bf16.mxu0 %v4667_v13 }
 0x231   :  { %1456 = vmatpush1.bf16.msra.mxu1 %v4664_v38  ;;  %1569 = vmatpush1.bf16.msra.mxu0 %v4666_v20 }
 0x232   :  { %1457 = vmatprep.subr.bf16.mxu1 %v4673_v32  ;;  %1570 = vmatprep.subr.bf16.mxu0 %v4675_v22 }
 0x233   :  { %1276 = vmatmul.mubr.bf16.gmra.mrb[8].mxu1 %v5656_v0  ;;  %1389 = vmatmul.mubr.bf16.gmra.mrb[24].mxu0 %v5656_v0 }
 0x234   :  { %1285 = vmatprep.mubr.bf16.mxu1 %v5256_v1  ;;  %1398 = vmatprep.mubr.bf16.mxu0 %v5256_v1 }
 0x235   :  { %v5670_v33 = vpop.f32.mrb[8].mxu0  ;;  %1458 = vmatpush1.bf16.msra.mxu1 %v4672_v58  ;;  %1571 = vmatpush1.bf16.msra.mxu0 %v4674_v25 }
 0x236   :  { %v5674_v36 = vpop.f32.mrb[9].mxu0  ;;  %1459 = vmatprep.subr.bf16.mxu1 %v4681_v34  ;;  %1572 = vmatprep.subr.bf16.mxu0 %v4683_v26  ;;  %v739_v59 = vmul.f32 %v5670_v33, %v5670_v33 }
 0x237   :  { %v5676_v39 = vpop.f32.mrb[10].mxu0  ;;  %v737_v51 = vmul.f32 %v5674_v36, %v5674_v36 }
 0x238   :  { %v5678_v50 = vpop.f32.mrb[11].mxu0  ;;  %v740_v3 = vmul.f32 %v5676_v39, %v5676_v39 }
 0x239   :  { %v714_v44 = vadd.f32 %v5678_v50, %v5674_v36  ;;  %v738_v45 = vmul.f32 %v5678_v50, %v5678_v50  ;;  %1460 = vmatpush1.bf16.msra.mxu1 %v4680_v46  ;;  %1573 = vmatpush1.bf16.msra.mxu0 %v4682_v42 }
 0x23a   :  { %1461 = vmatprep.subr.bf16.mxu1 %v4689_v41  ;;  %1574 = vmatprep.subr.bf16.mxu0 %v4691_v47 }
 0x23b   :  { %v715_v60 = vadd.f32 %v5670_v33, %v714_v44  ;;  %v758_v61 = vadd.f32 %v738_v45, %v737_v51  ;;  %1286 = vmatmul.mubr.bf16.gmra.mrb[12].mxu1 %v5658_v2  ;;  %1399 = vmatmul.mubr.bf16.gmra.mrb[28].mxu0 %v5658_v2 }
 0x23c   :  { %1295 = vmatprep.mubr.bf16.mxu1 %v5256_v1  ;;  %1408 = vmatprep.mubr.bf16.mxu0 %v5256_v1 }
 0x23d   :  { %v759_v62 = vadd.f32 %v758_v61, %v739_v59  ;;  %v5693_v4 = vpop.f32.mrb[12].mxu0  ;;  %v716_v5 = vadd.f32 %v5676_v39, %v715_v60  ;;  %1462 = vmatpush1.bf16.msra.mxu1 %v4688_v52  ;;  %1575 = vmatpush1.bf16.msra.mxu0 %v4690_v53 }
 0x23e   :  { %v686_v14 = vpop.f32.mrb[13].mxu0  ;;  %1463 = vmatprep.subr.bf16.mxu1 %v4697_v54  ;;  %1576 = vmatprep.subr.bf16.mxu0 %v4699_v55  ;;  %v743_v12 = vmul.f32 %v5693_v4, %v5693_v4 }
 0x23f   :  { %v717_v40 = vadd.f32 %v716_v5, %v686_v14  ;;  %v741_v28 = vmul.f32 %v686_v14, %v686_v14  ;;  %v760_v7 = vadd.f32 %v759_v62, %v740_v3  ;;  %v4948_v19 = vpop.f32.mrb[14].mxu0 }
 0x240   :  { %v689_v8 = vpop.f32.mrb[15].mxu0  ;;  %v744_v16 = vmul.f32 %v4948_v19, %v4948_v19 }
 0x241   :  { %v761_v9 = vadd.f32 %v760_v7, %v741_v28  ;;  %v718_v10 = vadd.f32 %v717_v40, %v689_v8  ;;  %v742_v11 = vmul.f32 %v689_v8, %v689_v8  ;;  %1464 = vmatpush1.bf16.msra.mxu1 %v4696_v63  ;;  %1577 = vmatpush1.bf16.msra.mxu0 %v4698_v30 }
 0x243   :  { %v719_v13 = vadd.f32 %v5693_v4, %v718_v10  ;;  %v762_v37 = vadd.f32 %v761_v9, %v742_v11 }
 0x245   :  { %v720_v17 = vadd.f32 %v4948_v19, %v719_v13  ;;  %v763_v18 = vadd.f32 %v762_v37, %v743_v12 }
 0x247   :  { %v721_v38 = vrot.slane %v720_v17, 4  ;;  %v764_v20 = vadd.f32 %v763_v18, %v744_v16 }
 0x249   :  { %v722_v32 = vadd.f32 %v721_v38, %v720_v17  ;;  %v765_v22 = vrot.slane %v764_v20, 4 }
 0x24b   :  { %v723_v21 = vrot.slane %v722_v32, 2  ;;  %v766_v23 = vadd.f32 %v765_v22, %v764_v20 }
 0x24d   :  { %v724_v48 = vadd.f32 %v723_v21, %v722_v32  ;;  %v767_v24 = vrot.slane %v766_v23, 2 }
 0x24f   :  { %v725_v58 = vrot.slane %v724_v48, 1  ;;  %v768_v25 = vadd.f32 %v767_v24, %v766_v23 }
 0x251   :  { %v726_v34 = vadd.f32 %v725_v58, %v724_v48  ;;  %v769_v26 = vrot.slane %v768_v25, 1 }
 0x253   :  { %v728_v27 = vmul.f32 0.015625, %v726_v34  ;;  %v770_v6 = vadd.f32 %v769_v26, %v768_v25 }
 0x255   :  { %v772_v29 = vmul.f32 0.015625, %v770_v6  ;;  %v774_v31 = vmul.f32 %v728_v27, %v728_v27  ;;  %v792_v46 = vsub.f32 %v689_v8, %v728_v27  ;;  %v787_v42 = vsub.f32 %v5674_v36, %v728_v27 }
 0x256   :  { %v788_v43 = vsub.f32 %v5678_v50, %v728_v27  ;;  %v789_v41 = vsub.f32 %v5670_v33, %v728_v27  ;;  %v790_v47 = vsub.f32 %v5676_v39, %v728_v27  ;;  %v791_v15 = vsub.f32 %v686_v14, %v728_v27 }
 0x257   :  { %v776_v49 = vsub.f32 %v772_v29, %v774_v31  ;;  %v793_v35 = vsub.f32 %v5693_v4, %v728_v27  ;;  %v794_v51 = vsub.f32 %v4948_v19, %v728_v27 }
 0x259   :  { %v778_v44 = vmax.f32 %v776_v49, 0.0 }
 0x25b   :  { %v796_v45 = vadd.f32 1e-05, %v778_v44 }
 0x25d   :  { %5147 = vrsqrt.f32 %v796_v45 }
 0x267   :  { %v5148_v52 = vpop.eup %5147 }
 0x268   :  { %v812_v53 = vmul.f32 %v5148_v52, %v792_v46  ;;  %v807_v54 = vmul.f32 %v5148_v52, %v787_v42  ;;  %v808_v55 = vmul.f32 %v5148_v52, %v788_v43  ;;  %v809_v59 = vmul.f32 %v5148_v52, %v789_v41 }
 0x269   :  { %v810_v36 = vmul.f32 %v5148_v52, %v790_v47  ;;  %v811_v60 = vmul.f32 %v5148_v52, %v791_v15  ;;  %v813_v50 = vmul.f32 %v5148_v52, %v793_v35  ;;  %v814_v61 = vmul.f32 %v5148_v52, %v794_v51 }
 0x26a   :  { %v828_v33 = vmax.f32 %v812_v53, 0.0  ;;  %v823_v3 = vmax.f32 %v807_v54, 0.0  ;;  %v824_v39 = vmax.f32 %v808_v55, 0.0  ;;  %v825_v62 = vmax.f32 %v809_v59, 0.0 }
 0x26b   :  { %v826_v5 = vmax.f32 %v810_v36, 0.0  ;;  %v827_v14 = vmax.f32 %v811_v60, 0.0  ;;  %v829_v4 = vmax.f32 %v813_v50, 0.0  ;;  %v830_v63 = vmax.f32 %v814_v61, 0.0 }
 0x26c   :  { %v835_v30 = vpack.c.bf16 %v824_v39, %v823_v3 }
 0x26d   :  { %v836_v40 = vpack.c.bf16 %v826_v5, %v825_v62  ;;  %v837_v28 = vpack.c.bf16 %v828_v33, %v827_v14  ;;  %v838_v7 = vpack.c.bf16 %v830_v63, %v829_v4 }
 0x26e   :  { %1296 = vmatmul.mubr.bf16.gmra.mrb[16].mxu1 %v835_v30  ;;  %1409 = vmatmul.mubr.bf16.gmra.mrb[32].mxu0 %v835_v30 }
 0x26f   :  { %1305 = vmatprep.mubr.bf16.mxu1 %v5256_v1  ;;  %1418 = vmatprep.mubr.bf16.mxu0 %v5256_v1 }
 0x276   :  { %1306 = vmatmul.mubr.bf16.gmra.mrb[20].mxu1 %v836_v40  ;;  %1419 = vmatmul.mubr.bf16.gmra.mrb[36].mxu0 %v836_v40 }
 0x277   :  { %1315 = vmatprep.mubr.bf16.mxu1 %v5256_v1  ;;  %1428 = vmatprep.mubr.bf16.mxu0 %v5256_v1 }
 0x27e   :  { %1316 = vmatmul.mubr.bf16.gmra.mrb[24].mxu1 %v837_v28  ;;  %1429 = vmatmul.mubr.bf16.gmra.mrb[40].mxu0 %v837_v28 }
 0x27f   :  { %1325 = vmatprep.mubr.bf16.mxu1 %v5256_v1  ;;  %1438 = vmatprep.mubr.bf16.mxu0 %v5256_v1 }
 0x286   :  { %1326 = vmatmul.mubr.bf16.gmra.mrb[28].mxu1 %v838_v7  ;;  %1439 = vmatmul.mubr.bf16.gmra.mrb[44].mxu0 %v838_v7 }
 0x287   :  { %1481 = vmatprep.mubr.bf16.mxu1 %v5256_v1  ;;  %1594 = vmatprep.mubr.bf16.mxu0 %v5256_v1 }
 0x28e   :  { %1482 = vmatmul.mubr.bf16.vlgmr.msra.gmra.mrb[32].mxu1 %v5648_v56  ;;  %1595 = vmatmul.mubr.bf16.vlgmr.msra.gmra.mrb[48].mxu0 %v5648_v56 }
 0x28f   :  { %1491 = vmatprep.mubr.bf16.mxu1 %v5256_v1  ;;  %1604 = vmatprep.mubr.bf16.mxu0 %v5256_v1 }
 0x296   :  { %1492 = vmatmul.mubr.bf16.gmra.mrb[36].mxu1 %v5654_v57  ;;  %1605 = vmatmul.mubr.bf16.gmra.mrb[52].mxu0 %v5654_v57 }
 0x297   :  { %1501 = vmatprep.mubr.bf16.mxu1 %v5256_v1  ;;  %1614 = vmatprep.mubr.bf16.mxu0 %v5256_v1 }
 0x29e   :  { %1502 = vmatmul.mubr.bf16.gmra.mrb[40].mxu1 %v5656_v0  ;;  %1615 = vmatmul.mubr.bf16.gmra.mrb[56].mxu0 %v5656_v0 }
 0x29f   :  { %1511 = vmatprep.mubr.bf16.mxu1 %v5256_v1  ;;  %1624 = vmatprep.mubr.bf16.mxu0 %v5256_v1 }
 0x2a6   :  { %1512 = vmatmul.mubr.bf16.gmra.mrb[44].mxu1 %v5658_v2  ;;  %1625 = vmatmul.mubr.bf16.gmra.mrb[60].mxu0 %v5658_v2 }
 0x2a7   :  { %1521 = vmatprep.mubr.bf16.mxu1 %v5256_v1  ;;  %1634 = vmatprep.mubr.bf16.mxu0 %v5256_v1 }
 0x2ae   :  { %1522 = vmatmul.mubr.bf16.gmra.mrb[48].mxu1 %v835_v30  ;;  %1635 = vmatmul.mubr.bf16.gmra.mrb[64].mxu0 %v835_v30 }
 0x2af   :  { %1531 = vmatprep.mubr.bf16.mxu1 %v5256_v1  ;;  %1644 = vmatprep.mubr.bf16.mxu0 %v5256_v1 }
 0x2b6   :  { %1532 = vmatmul.mubr.bf16.gmra.mrb[52].mxu1 %v836_v40  ;;  %1645 = vmatmul.mubr.bf16.gmra.mrb[68].mxu0 %v836_v40 }
 0x2b7   :  { %1541 = vmatprep.mubr.bf16.mxu1 %v5256_v1  ;;  %1654 = vmatprep.mubr.bf16.mxu0 %v5256_v1 }
 0x2be   :  { %1542 = vmatmul.mubr.bf16.gmra.mrb[56].mxu1 %v837_v28  ;;  %1655 = vmatmul.mubr.bf16.gmra.mrb[72].mxu0 %v837_v28 }
 0x2bf   :  { %1551 = vmatprep.mubr.bf16.mxu1 %v5256_v1  ;;  %1664 = vmatprep.mubr.bf16.mxu0 %v5256_v1 }
 0x2c6   :  { %1552 = vmatmul.mubr.bf16.gmra.mrb[60].mxu1 %v838_v7  ;;  %1665 = vmatmul.mubr.bf16.gmra.mrb[76].mxu0 %v838_v7 }
 0x2f6   :  { %v5736_v56 = vpop.f32.mrb[0].mxu1  ;;  %v5738_v57 = vpop.f32.mrb[16].mxu0 }
 0x2f7   :  { %v5740_v0 = vpop.f32.mrb[1].mxu1  ;;  %v5742_v2 = vpop.f32.mrb[17].mxu0  ;;  %v1899_v19 = vmul.f32 %v5736_v56, %v5736_v56  ;;  %v1901_v8 = vmul.f32 %v5738_v57, %v5738_v57 }
 0x2f8   :  { %7422 = vst [vmem:[#allocation12_spill] sm:$0xff] %v5740_v0  ;;  %7423 = vst [vmem:[#allocation13_spill] sm:$0xff] %v5742_v2  ;;  %v1900_v9 = vmul.f32 %v5740_v0, %v5740_v0  ;;  %v1902_v1 = vmul.f32 %v5742_v2, %v5742_v2  ;;  %v5752_v10 = vpop.f32.mrb[2].mxu1  ;;  %v5754_v11 = vpop.f32.mrb[18].mxu0 }
 0x2f9   :  { %v1675_v12 = vadd.f32 %v5752_v10, %v5736_v56  ;;  %v1907_v13 = vmul.f32 %v5752_v10, %v5752_v10  ;;  %v1701_v37 = vadd.f32 %v5754_v11, %v5738_v57  ;;  %v1909_v16 = vmul.f32 %v5754_v11, %v5754_v11  ;;  %v5764_v17 = vpop.f32.mrb[3].mxu1  ;;  %v5766_v18 = vpop.f32.mrb[19].mxu0 }
 0x2fa   :  { %7424 = vst [vmem:[#allocation14_spill] sm:$0xff] %v5764_v17  ;;  %7425 = vst [vmem:[#allocation15_spill] sm:$0xff] %v5766_v18  ;;  %v1688_v38 = vadd.f32 %v5764_v17, %v5740_v0  ;;  %v1908_v20 = vmul.f32 %v5764_v17, %v5764_v17  ;;  %v1714_v32 = vadd.f32 %v5766_v18, %v5742_v2 }
 0x2fb   :  { %v1910_v22 = vmul.f32 %v5766_v18, %v5766_v18  ;;  %v2027_v21 = vadd.f32 %v1907_v13, %v1899_v19  ;;  %v2053_v23 = vadd.f32 %v1909_v16, %v1901_v8 }
 0x2fc   :  { %v2040_v48 = vadd.f32 %v1908_v20, %v1900_v9 }
 0x2fd   :  { %v2066_v24 = vadd.f32 %v1910_v22, %v1902_v1 }
 0x2fe   :  { %v5776_v58 = vpop.f32.mrb[4].mxu1  ;;  %v5778_v25 = vpop.f32.mrb[20].mxu0 }
 0x2ff   :  { %v1676_v34 = vadd.f32 %v1675_v12, %v5776_v58  ;;  %v1915_v26 = vmul.f32 %v5776_v58, %v5776_v58  ;;  %v1702_v27 = vadd.f32 %v1701_v37, %v5778_v25  ;;  %v1917_v6 = vmul.f32 %v5778_v25, %v5778_v25  ;;  %v5786_v29 = vpop.f32.mrb[5].mxu1  ;;  %v5788_v31 = vpop.f32.mrb[21].mxu0 }
 0x300   :  { %7426 = vst [vmem:[#allocation16_spill] sm:$0xff] %v5786_v29  ;;  %7427 = vst [vmem:[#allocation17_spill] sm:$0xff] %v5788_v31  ;;  %v1689_v46 = vadd.f32 %v1688_v38, %v5786_v29  ;;  %v1916_v42 = vmul.f32 %v5786_v29, %v5786_v29  ;;  %v1715_v43 = vadd.f32 %v1714_v32, %v5788_v31  ;;  %v5796_v47 = vpop.f32.mrb[6].mxu1  ;;  %v5798_v15 = vpop.f32.mrb[22].mxu0 }
 0x301   :  { %v1918_v41 = vmul.f32 %v5788_v31, %v5788_v31  ;;  %v2028_v49 = vadd.f32 %v2027_v21, %v1915_v26  ;;  %v2054_v35 = vadd.f32 %v2053_v23, %v1917_v6  ;;  %v1677_v51 = vadd.f32 %v1676_v34, %v5796_v47  ;;  %v5803_v45 = vpop.f32.mrb[7].mxu1  ;;  %v5805_v52 = vpop.f32.mrb[23].mxu0 }
 0x302   :  { %v1923_v44 = vmul.f32 %v5796_v47, %v5796_v47  ;;  %7428 = vst [vmem:[#allocation18_spill] sm:$0xff] %v5803_v45  ;;  %7429 = vst [vmem:[#allocation19_spill] sm:$0xff] %v5805_v52  ;;  %v2041_v53 = vadd.f32 %v2040_v48, %v1916_v42  ;;  %v1703_v55 = vadd.f32 %v1702_v27, %v5798_v15 }
 0x303   :  { %v2067_v54 = vadd.f32 %v2066_v24, %v1918_v41  ;;  %v1925_v59 = vmul.f32 %v5798_v15, %v5798_v15  ;;  %v1690_v60 = vadd.f32 %v1689_v46, %v5803_v45  ;;  %v1924_v50 = vmul.f32 %v5803_v45, %v5803_v45 }
 0x304   :  { %v2029_v36 = vadd.f32 %v2028_v49, %v1923_v44  ;;  %v1716_v61 = vadd.f32 %v1715_v43, %v5805_v52  ;;  %v1926_v3 = vmul.f32 %v5805_v52, %v5805_v52 }
 0x305   :  { %v2055_v33 = vadd.f32 %v2054_v35, %v1925_v59  ;;  %v2042_v39 = vadd.f32 %v2041_v53, %v1924_v50 }
 0x306   :  { %v2068_v62 = vadd.f32 %v2067_v54, %v1926_v3  ;;  %v5816_v5 = vpop.f32.mrb[8].mxu1  ;;  %v5818_v14 = vpop.f32.mrb[24].mxu0 }
 0x307   :  { %v1678_v4 = vadd.f32 %v1677_v51, %v5816_v5  ;;  %v1931_v63 = vmul.f32 %v5816_v5, %v5816_v5  ;;  %v1704_v30 = vadd.f32 %v1703_v55, %v5818_v14  ;;  %v1933_v40 = vmul.f32 %v5818_v14, %v5818_v14  ;;  %v5826_v28 = vpop.f32.mrb[9].mxu1  ;;  %v5828_v7 = vpop.f32.mrb[25].mxu0 }
 0x308   :  { %7430 = vst [vmem:[#allocation20_spill] sm:$0xff] %v5826_v28  ;;  %7431 = vst [vmem:[#allocation21_spill] sm:$0xff] %v5828_v7  ;;  %v1691_v19 = vadd.f32 %v1690_v60, %v5826_v28  ;;  %v1932_v8 = vmul.f32 %v5826_v28, %v5826_v28  ;;  %v1717_v9 = vadd.f32 %v1716_v61, %v5828_v7  ;;  %v5836_v12 = vpop.f32.mrb[10].mxu1  ;;  %v5838_v13 = vpop.f32.mrb[26].mxu0 }
 0x309   :  { %v1934_v1 = vmul.f32 %v5828_v7, %v5828_v7  ;;  %v2030_v37 = vadd.f32 %v2029_v36, %v1931_v63  ;;  %v2056_v16 = vadd.f32 %v2055_v33, %v1933_v40  ;;  %v1679_v38 = vadd.f32 %v1678_v4, %v5836_v12  ;;  %v5843_v32 = vpop.f32.mrb[11].mxu1  ;;  %v5845_v22 = vpop.f32.mrb[27].mxu0 }
 0x30a   :  { %v1939_v20 = vmul.f32 %v5836_v12, %v5836_v12  ;;  %7432 = vst [vmem:[#allocation22_spill] sm:$0xff] %v5843_v32  ;;  %7433 = vst [vmem:[#allocation23_spill] sm:$0xff] %v5845_v22  ;;  %v2043_v21 = vadd.f32 %v2042_v39, %v1932_v8  ;;  %v1705_v48 = vadd.f32 %v1704_v30, %v5838_v13 }
 0x30b   :  { %v2069_v23 = vadd.f32 %v2068_v62, %v1934_v1  ;;  %v1941_v24 = vmul.f32 %v5838_v13, %v5838_v13  ;;  %v1692_v26 = vadd.f32 %v1691_v19, %v5843_v32  ;;  %v1940_v27 = vmul.f32 %v5843_v32, %v5843_v32 }
 0x30c   :  { %v2031_v34 = vadd.f32 %v2030_v37, %v1939_v20  ;;  %v1718_v6 = vadd.f32 %v1717_v9, %v5845_v22  ;;  %v1942_v42 = vmul.f32 %v5845_v22, %v5845_v22 }
 0x30d   :  { %v2057_v46 = vadd.f32 %v2056_v16, %v1941_v24  ;;  %v2044_v43 = vadd.f32 %v2043_v21, %v1940_v27 }
 0x30e   :  { %v2070_v41 = vadd.f32 %v2069_v23, %v1942_v42  ;;  %v5856_v49 = vpop.f32.mrb[12].mxu1  ;;  %v5858_v35 = vpop.f32.mrb[28].mxu0 }
 0x30f   :  { %v1680_v51 = vadd.f32 %v1679_v38, %v5856_v49  ;;  %v1947_v44 = vmul.f32 %v5856_v49, %v5856_v49  ;;  %v1706_v53 = vadd.f32 %v1705_v48, %v5858_v35  ;;  %v1949_v54 = vmul.f32 %v5858_v35, %v5858_v35  ;;  %v5866_v55 = vpop.f32.mrb[13].mxu1  ;;  %v5868_v59 = vpop.f32.mrb[29].mxu0 }
 0x310   :  { %v1693_v36 = vadd.f32 %v1692_v26, %v5866_v55  ;;  %v1948_v60 = vmul.f32 %v5866_v55, %v5866_v55  ;;  %v1719_v50 = vadd.f32 %v1718_v6, %v5868_v59  ;;  %v1950_v61 = vmul.f32 %v5868_v59, %v5868_v59  ;;  %v5876_v33 = vpop.f32.mrb[14].mxu1  ;;  %v5878_v3 = vpop.f32.mrb[30].mxu0 }
 0x311   :  { %v2032_v39 = vadd.f32 %v2031_v34, %v1947_v44  ;;  %v2058_v62 = vadd.f32 %v2057_v46, %v1949_v54  ;;  %v1681_v4 = vadd.f32 %v1680_v51, %v5876_v33  ;;  %v1955_v63 = vmul.f32 %v5876_v33, %v5876_v33  ;;  %v5883_v30 = vpop.f32.mrb[15].mxu1  ;;  %v5885_v40 = vpop.f32.mrb[31].mxu0  ;;  %v5069_v51 = vld [vmem:[#allocation6 + $0x40] sm:$0xff]  }
 0x312   :  { %v2045_v19 = vadd.f32 %v2044_v43, %v1948_v60  ;;  %v2071_v8 = vadd.f32 %v2070_v41, %v1950_v61  ;;  %v1707_v9 = vadd.f32 %v1706_v53, %v5878_v3  ;;  %v1957_v1 = vmul.f32 %v5878_v3, %v5878_v3  ;;  %v5070_v44 = vld [vmem:[#allocation6 + $0xc0] sm:$0xff]   ;;  %4802 = vmatprep.subr.bf16.mxu1 %v5069_v51 }
 0x313   :  { %v1682_v37 = vrot.slane %v1681_v4, 4  ;;  %v2033_v16 = vadd.f32 %v2032_v39, %v1955_v63  ;;  %v1694_v38 = vadd.f32 %v1693_v36, %v5883_v30  ;;  %v1956_v20 = vmul.f32 %v5883_v30, %v5883_v30  ;;  %4824 = vmatprep.subr.bf16.mxu0 %v5070_v44  ;;  %v5072_v44 = vld [vmem:[#allocation6 + $0x80] sm:$0xff]  }
 0x314   :  { %v1708_v21 = vrot.slane %v1707_v9, 4  ;;  %v2059_v23 = vadd.f32 %v2058_v62, %v1957_v1  ;;  %v1720_v48 = vadd.f32 %v1719_v50, %v5885_v40  ;;  %v1958_v24 = vmul.f32 %v5885_v40, %v5885_v40  ;;  %4825 = vmatpush3.bf16.msra.mxu0 %v5072_v44 }
 0x315   :  { %v1683_v34 = vadd.f32 %v1682_v37, %v1681_v4  ;;  %v2034_v26 = vrot.slane %v2033_v16, 4  ;;  %v1695_v27 = vrot.slane %v1694_v38, 4  ;;  %v2046_v6 = vadd.f32 %v2045_v19, %v1956_v20 }
 0x316   :  { %v1709_v46 = vadd.f32 %v1708_v21, %v1707_v9  ;;  %v2060_v42 = vrot.slane %v2059_v23, 4  ;;  %v1721_v43 = vrot.slane %v1720_v48, 4  ;;  %v2072_v41 = vadd.f32 %v2071_v8, %v1958_v24 }
 0x317   :  { %v1684_v53 = vrot.slane %v1683_v34, 2  ;;  %v2035_v54 = vadd.f32 %v2034_v26, %v2033_v16  ;;  %v1696_v36 = vadd.f32 %v1695_v27, %v1694_v38  ;;  %v2047_v60 = vrot.slane %v2046_v6, 4 }
 0x318   :  { %v1710_v61 = vrot.slane %v1709_v46, 2  ;;  %v2061_v39 = vadd.f32 %v2060_v42, %v2059_v23  ;;  %v1722_v50 = vadd.f32 %v1721_v43, %v1720_v48  ;;  %v2073_v62 = vrot.slane %v2072_v41, 4 }
 0x319   :  { %v1685_v4 = vadd.f32 %v1684_v53, %v1683_v34  ;;  %v2036_v63 = vrot.slane %v2035_v54, 2  ;;  %v1697_v1 = vrot.slane %v1696_v36, 2  ;;  %v2048_v19 = vadd.f32 %v2047_v60, %v2046_v6  ;;  %v5071_v34 = vld [vmem:[#allocation6] sm:$0xff]  }
 0x31a   :  { %v1711_v9 = vadd.f32 %v1710_v61, %v1709_v46  ;;  %v2062_v37 = vrot.slane %v2061_v39, 2  ;;  %v1723_v20 = vrot.slane %v1722_v50, 2  ;;  %v2074_v8 = vadd.f32 %v2073_v62, %v2072_v41  ;;  %4803 = vmatpush3.bf16.msra.mxu1 %v5071_v34 }
 0x31b   :  { %v1686_v21 = vrot.slane %v1685_v4, 1  ;;  %v2037_v24 = vadd.f32 %v2036_v63, %v2035_v54  ;;  %v1698_v22 = vadd.f32 %v1697_v1, %v1696_v36  ;;  %v2049_v16 = vrot.slane %v2048_v19, 2  ;;  %v5073_v63 = vld [vmem:[#allocation6 + $0x48] sm:$0xff]  }
 0x31c   :  { %v1712_v38 = vrot.slane %v1711_v9, 1  ;;  %v2063_v26 = vadd.f32 %v2062_v37, %v2061_v39  ;;  %v1724_v27 = vadd.f32 %v1723_v20, %v1722_v50  ;;  %v2075_v23 = vrot.slane %v2074_v8, 2  ;;  %v5074_v1 = vld [vmem:[#allocation6 + $0xc8] sm:$0xff]   ;;  %4804 = vmatprep.subr.bf16.mxu1 %v5073_v63 }
 0x31d   :  { %v1687_v48 = vadd.f32 %v1686_v21, %v1685_v4  ;;  %v2038_v42 = vrot.slane %v2037_v24, 1  ;;  %v1699_v43 = vrot.slane %v1698_v22, 1  ;;  %v2050_v51 = vadd.f32 %v2049_v16, %v2048_v19  ;;  %v5075_v20 = vld [vmem:[#allocation6 + $0x8] sm:$0xff]   ;;  %4826 = vmatprep.subr.bf16.mxu0 %v5074_v1 }
 0x31e   :  { %v1713_v53 = vadd.f32 %v1712_v38, %v1711_v9  ;;  %v2064_v6 = vrot.slane %v2063_v26, 1  ;;  %v1725_v46 = vrot.slane %v1724_v27, 1  ;;  %v2076_v60 = vadd.f32 %v2075_v23, %v2074_v8  ;;  %v5076_v8 = vld [vmem:[#allocation6 + $0x88] sm:$0xff]   ;;  %4805 = vmatpush3.bf16.msra.mxu1 %v5075_v20 }
 0x31f   :  { %v5896_v61 = vmul.f32 0.015625, %v1687_v48  ;;  %v2039_v41 = vadd.f32 %v2038_v42, %v2037_v24  ;;  %v1700_v54 = vadd.f32 %v1699_v43, %v1698_v22  ;;  %v2051_v36 = vrot.slane %v2050_v51, 1  ;;  %4827 = vmatpush3.bf16.msra.mxu0 %v5076_v8 }
 0x320   :  { %v5898_v39 = vmul.f32 0.015625, %v1713_v53  ;;  %v2065_v50 = vadd.f32 %v2064_v6, %v2063_v26  ;;  %v1726_v62 = vadd.f32 %v1725_v46, %v1724_v27  ;;  %v2077_v4 = vrot.slane %v2076_v60, 1 }
 0x321   :  { %v2235_v19 = vmul.f32 0.015625, %v2039_v41  ;;  %v2251_v9 = vmul.f32 %v5896_v61, %v5896_v61  ;;  %v2299_v37 = vsub.f32 %v5736_v56, %v5896_v61  ;;  %v2307_v22 = vsub.f32 %v5752_v10, %v5896_v61 }
 0x322   :  { %v2315_v21 = vsub.f32 %v5776_v58, %v5896_v61  ;;  %v2323_v24 = vsub.f32 %v5796_v47, %v5896_v61  ;;  %v2331_v16 = vsub.f32 %v5816_v5, %v5896_v61  ;;  %v2339_v38 = vsub.f32 %v5836_v12, %v5896_v61  ;;  %v5085_v5 = vld [vmem:[#allocation6 + $0x60] sm:$0xff]  }
 0x323   :  { %v2267_v26 = vsub.f32 %v2235_v19, %v2251_v9  ;;  %v2347_v27 = vsub.f32 %v5856_v49, %v5896_v61  ;;  %v2355_v23 = vsub.f32 %v5876_v33, %v5896_v61  ;;  %v2237_v48 = vmul.f32 0.015625, %v2065_v50  ;;  %v5087_v61 = vld [vmem:[#allocation6 + $0x20] sm:$0xff]  }
 0x324   :  { %v2253_v42 = vmul.f32 %v5898_v39, %v5898_v39  ;;  %v2301_v43 = vsub.f32 %v5738_v57, %v5898_v39  ;;  %v2309_v34 = vsub.f32 %v5754_v11, %v5898_v39  ;;  %v2317_v44 = vsub.f32 %v5778_v25, %v5898_v39 }
 0x325   :  { %v2283_v53 = vmax.f32 %v2267_v26, 0.0  ;;  %v2341_v41 = vsub.f32 %v5838_v13, %v5898_v39  ;;  %v5936_v19 = vmul.f32 0.015625, %v1700_v54  ;;  %v2052_v20 = vadd.f32 %v2051_v36, %v2050_v51  ;;  %v5091_v13 = vld [vmem:[#allocation6 + $0x28] sm:$0xff]  }
 0x326   :  { %v2269_v50 = vsub.f32 %v2237_v48, %v2253_v42  ;;  %v5938_v8 = vmul.f32 0.015625, %v1726_v62  ;;  %v2078_v26 = vadd.f32 %v2077_v4, %v2076_v60  ;;  %v5077_v62 = vld [vmem:[#allocation6 + $0x50] sm:$0xff]   ;;  %v5084_v42 = vld [vmem:[#allocation6 + $0x98] sm:$0xff]   ;;  %v7437_v11 = vsub.f32 %v5818_v14, %v5898_v39 }
 0x327   :  { %7434 = vst [vmem:[#allocation24_spill] sm:$0xff] %v5936_v19  ;;  %v2427_v9 = vadd.f32 1e-05, %v2283_v53  ;;  %v2252_v46 = vmul.f32 %v5936_v19, %v5936_v19  ;;  %v2348_v48 = vsub.f32 %v5866_v55, %v5936_v19  ;;  %v2236_v63 = vmul.f32 0.015625, %v2052_v20  ;;  %4806 = vmatprep.subr.bf16.mxu1 %v5077_v62  ;;  %v5083_v20 = vld [vmem:[#allocation6 + $0x18] sm:$0xff]  }
 0x328   :  { %7435 = vst [vmem:[#allocation25_spill] sm:$0xff] %v5938_v8  ;;  %v2285_v6 = vmax.f32 %v2269_v50, 0.0  ;;  %v2238_v1 = vmul.f32 0.015625, %v2078_v26  ;;  %v2254_v54 = vmul.f32 %v5938_v8, %v5938_v8  ;;  %v5080_v50 = vld [vmem:[#allocation6 + $0x90] sm:$0xff]   ;;  %v7438_v25 = vsub.f32 %v5858_v35, %v5898_v39 }
 0x329   :  { %5149 = vrsqrt.f32 %v2427_v9  ;;  %v2268_v4 = vsub.f32 %v2236_v63, %v2252_v46  ;;  %v5078_v46 = vld [vmem:[#allocation6 + $0xd0] sm:$0xff]   ;;  %v5081_v9 = vld [vmem:[#allocation6 + $0x58] sm:$0xff]  }
 0x32a   :  { %v2429_v51 = vadd.f32 1e-05, %v2285_v6  ;;  %v2270_v53 = vsub.f32 %v2238_v1, %v2254_v54  ;;  %4828 = vmatprep.subr.bf16.mxu0 %v5078_v46  ;;  %v5079_v54 = vld [vmem:[#allocation6 + $0x10] sm:$0xff]   ;;  %v5082_v6 = vld [vmem:[#allocation6 + $0xd8] sm:$0xff]  }
 0x32b   :  { %v2284_v36 = vmax.f32 %v2268_v4, 0.0  ;;  %4807 = vmatpush3.bf16.msra.mxu1 %v5079_v54  ;;  %4829 = vmatpush3.bf16.msra.mxu0 %v5080_v50 }
 0x32c   :  { %5151 = vrsqrt.f32 %v2429_v51  ;;  %v2286_v63 = vmax.f32 %v2270_v53, 0.0  ;;  %4808 = vmatprep.subr.bf16.mxu1 %v5081_v9  ;;  %4830 = vmatprep.subr.bf16.mxu0 %v5082_v6 }
 0x32d   :  { %v2428_v1 = vadd.f32 1e-05, %v2284_v36 }
 0x32e   :  { %v2430_v51 = vadd.f32 1e-05, %v2286_v63  ;;  %v5089_v63 = vld [vmem:[#allocation6 + $0x68] sm:$0xff]  }
 0x32f   :  { %5153 = vrsqrt.f32 %v2428_v1  ;;  %4809 = vmatpush3.bf16.msra.mxu1 %v5083_v20  ;;  %4831 = vmatpush3.bf16.msra.mxu0 %v5084_v42  ;;  %v7436_v42 = vsub.f32 %v5798_v15, %v5898_v39  ;;  %v7439_v15 = vsub.f32 %v5878_v3, %v5898_v39  ;;  %v5090_v1 = vld [vmem:[#allocation6 + $0xe8] sm:$0xff]  }
 0x330   :  { %5155 = vrsqrt.f32 %v2430_v51  ;;  %4810 = vmatprep.subr.bf16.mxu1 %v5085_v5  ;;  %v5093_v5 = vld [vmem:[#allocation6 + $0x70] sm:$0xff]  }
 0x333   :  { %v5150_v60 = vpop.eup %5149  ;;  %4811 = vmatpush3.bf16.msra.mxu1 %v5087_v61 }
 0x334   :  { %v2459_v4 = vmul.f32 %v5150_v60, %v2299_v37  ;;  %v2467_v36 = vmul.f32 %v5150_v60, %v2307_v22  ;;  %v2475_v62 = vmul.f32 %v5150_v60, %v2315_v21  ;;  %v2483_v53 = vmul.f32 %v5150_v60, %v2323_v24  ;;  %v5086_v21 = vld [vmem:[#allocation6 + $0xe0] sm:$0xff]   ;;  %4812 = vmatprep.subr.bf16.mxu1 %v5089_v63 }
 0x335   :  { %v2491_v50 = vmul.f32 %v5150_v60, %v2331_v16  ;;  %v2499_v56 = vmul.f32 %v5150_v60, %v2339_v38  ;;  %v2507_v10 = vmul.f32 %v5150_v60, %v2347_v27  ;;  %v2515_v58 = vmul.f32 %v5150_v60, %v2355_v23  ;;  %v5088_v16 = vld [vmem:[#allocation6 + $0xa0] sm:$0xff]   ;;  %4832 = vmatprep.subr.bf16.mxu0 %v5086_v21  ;;  %v5094_v21 = vld [vmem:[#allocation6 + $0xf0] sm:$0xff]  }
 0x336   :  { %v5152_v47 = vpop.eup %5151  ;;  %v2587_v37 = vmax.f32 %v2459_v4, %v2467_v36  ;;  %v2643_v22 = vmax.f32 %v2475_v62, %v2483_v53  ;;  %4833 = vmatpush3.bf16.msra.mxu0 %v5088_v16 }
 0x337   :  { %v2699_v24 = vmax.f32 %v2491_v50, %v2499_v56  ;;  %v2755_v12 = vmax.f32 %v2507_v10, %v2515_v58  ;;  %v2461_v49 = vmul.f32 %v5152_v47, %v2301_v43  ;;  %v2469_v33 = vmul.f32 %v5152_v47, %v2309_v34  ;;  %4834 = vmatprep.subr.bf16.mxu0 %v5090_v1  ;;  %v5095_v1 = vld [vmem:[#allocation6 + $0x30] sm:$0xff]  }
 0x338   :  { %v2588_v38 = vrot.slane %v2587_v37, 4  ;;  %v2644_v27 = vrot.slane %v2643_v22, 4  ;;  %v2477_v23 = vmul.f32 %v5152_v47, %v2317_v44  ;;  %v2485_v60 = vmul.f32 %v5152_v47, %v7436_v42  ;;  %4813 = vmatpush3.bf16.msra.mxu1 %v5091_v13 }
 0x339   :  { %v2700_v57 = vrot.slane %v2699_v24, 4  ;;  %v2756_v43 = vrot.slane %v2755_v12, 4  ;;  %v2493_v34 = vmul.f32 %v5152_v47, %v7437_v11  ;;  %v2501_v9 = vmul.f32 %v5152_v47, %v2341_v41  ;;  %v5092_v41 = vld [vmem:[#allocation6 + $0xa8] sm:$0xff]   ;;  %v6012_v35 = vpop.eup %5153  ;;  %4814 = vmatprep.subr.bf16.mxu1 %v5093_v5 }
 0x33a   :  { %v2589_v6 = vmax.f32 %v2587_v37, %v2588_v38  ;;  %v2645_v20 = vmax.f32 %v2643_v22, %v2644_v27  ;;  %v2509_v44 = vmul.f32 %v5152_v47, %v7438_v25  ;;  %v2517_v46 = vmul.f32 %v5152_v47, %v7439_v15  ;;  %7440 = vst [vmem:[#allocation26_spill] sm:$0xff] %v6012_v35  ;;  %v6014_v61 = vpop.eup %5155 }
 0x33b   :  { %v2701_v54 = vmax.f32 %v2699_v24, %v2700_v57  ;;  %v2757_v14 = vmax.f32 %v2755_v12, %v2756_v43  ;;  %v2601_v51 = vmax.f32 %v2461_v49, %v2469_v33  ;;  %v2657_v4 = vmax.f32 %v2477_v23, %v2485_v60  ;;  %4835 = vmatpush3.bf16.msra.mxu0 %v5092_v41 }
 0x33c   :  { %v2590_v36 = vrot.slane %v2589_v6, 2  ;;  %v2646_v62 = vrot.slane %v2645_v20, 2  ;;  %v2713_v53 = vmax.f32 %v2493_v34, %v2501_v9  ;;  %v2769_v50 = vmax.f32 %v2509_v44, %v2517_v46  ;;  %7441 = vst [vmem:[#allocation27_spill] sm:$0xff] %v6014_v61  ;;  %4836 = vmatprep.subr.bf16.mxu0 %v5094_v21  ;;  %4815 = vmatpush3.bf16.msra.mxu1 %v5095_v1 }
 0x33d   :  { %v2702_v3 = vrot.slane %v2701_v54, 2  ;;  %v2758_v39 = vrot.slane %v2757_v14, 2  ;;  %v2602_v56 = vrot.slane %v2601_v51, 4  ;;  %v2658_v10 = vrot.slane %v2657_v4, 4 }
 0x33e   :  { %v2591_v58 = vmax.f32 %v2589_v6, %v2590_v36  ;;  %v2647_v47 = vmax.f32 %v2645_v20, %v2646_v62  ;;  %v2714_v37 = vrot.slane %v2713_v53, 4  ;;  %v2770_v22 = vrot.slane %v2769_v50, 4 }
 0x33f   :  { %v2703_v24 = vmax.f32 %v2701_v54, %v2702_v3  ;;  %v2759_v12 = vmax.f32 %v2757_v14, %v2758_v39  ;;  %v2603_v49 = vmax.f32 %v2601_v51, %v2602_v56  ;;  %v2659_v33 = vmax.f32 %v2657_v4, %v2658_v10  ;;  %v5096_v54 = vld [vmem:[#allocation6 + $0xb0] sm:$0xff]  }
 0x340   :  { %v2592_v16 = vrot.slane %v2591_v58, 1  ;;  %v2648_v38 = vrot.slane %v2647_v47, 1  ;;  %v2715_v27 = vmax.f32 %v2713_v53, %v2714_v37  ;;  %v2771_v23 = vmax.f32 %v2769_v50, %v2770_v22  ;;  %4837 = vmatpush3.bf16.msra.mxu0 %v5096_v54  ;;  %v5098_v37 = vld [vmem:[#allocation6 + $0xf8] sm:$0xff]  }
 0x341   :  { %v6016_v42 = vpop.f32.mrb[16].mxu1  ;;  %v6018_v60 = vpop.f32.mrb[32].mxu0  ;;  %v2704_v57 = vrot.slane %v2703_v24, 1  ;;  %v2760_v43 = vrot.slane %v2759_v12, 1  ;;  %v2604_v11 = vrot.slane %v2603_v49, 2  ;;  %v2660_v34 = vrot.slane %v2659_v33, 2  ;;  %4838 = vmatprep.subr.bf16.mxu0 %v5098_v37 }
 0x342   :  { %7442 = vst [vmem:[#allocation28_spill] sm:$0xff] %v6016_v42  ;;  %7443 = vst [vmem:[#allocation29_spill] sm:$0xff] %v6018_v60  ;;  %v6020_v9 = vpop.f32.mrb[17].mxu1  ;;  %v6022_v6 = vpop.f32.mrb[33].mxu0  ;;  %v2593_v20 = vmax.f32 %v2591_v58, %v2592_v16  ;;  %v2649_v25 = vmax.f32 %v2647_v47, %v2648_v38  ;;  %v2716_v44 = vrot.slane %v2715_v27, 2  ;;  %v2772_v15 = vrot.slane %v2771_v23, 2 }
 0x343   :  { %7444 = vst [vmem:[#allocation30_spill] sm:$0xff] %v6020_v9  ;;  %7445 = vst [vmem:[#allocation31_spill] sm:$0xff] %v6022_v6  ;;  %v6024_v46 = vpop.f32.mrb[18].mxu1  ;;  %v6026_v63 = vpop.f32.mrb[34].mxu0  ;;  %v2705_v14 = vmax.f32 %v2703_v24, %v2704_v57  ;;  %v2761_v51 = vmax.f32 %v2759_v12, %v2760_v43  ;;  %v2605_v4 = vmax.f32 %v2603_v49, %v2604_v11  ;;  %v5097_v47 = vld [vmem:[#allocation6 + $0x78] sm:$0xff]  }
 0x344   :  { %7446 = vst [vmem:[#allocation32_spill] sm:$0xff] %v6024_v46  ;;  %7447 = vst [vmem:[#allocation33_spill] sm:$0xff] %v6026_v63  ;;  %v2661_v13 = vmax.f32 %v2659_v33, %v2660_v34  ;;  %v6028_v41 = vpop.f32.mrb[19].mxu1  ;;  %v6030_v36 = vpop.f32.mrb[35].mxu0  ;;  %v3035_v62 = vpack.c.bf16 %v2593_v20, %v2593_v20  ;;  %v3043_v53 = vpack.c.bf16 %v2649_v25, %v2649_v25  ;;  %v5099_v12 = vld [vmem:[#allocation6 + $0x38] sm:$0xff]   ;;  %4816 = vmatprep.subr.bf16.mxu1 %v5097_v47 }
 0x345   :  { %7448 = vst [vmem:[#allocation34_spill] sm:$0xff] %v6028_v41  ;;  %7449 = vst [vmem:[#allocation35_spill] sm:$0xff] %v6030_v36  ;;  %v2717_v50 = vmax.f32 %v2715_v27, %v2716_v44  ;;  %v2773_v3 = vmax.f32 %v2771_v23, %v2772_v15  ;;  %v3051_v39 = vpack.c.bf16 %v2705_v14, %v2705_v14  ;;  %v2606_v10 = vrot.slane %v2605_v4, 1  ;;  %v5100_v49 = vld [vmem:[#allocation6 + $0xb8] sm:$0xff]  }
 0x346   :  { %v3059_v56 = vpack.c.bf16 %v2761_v51, %v2761_v51  ;;  %v2662_v58 = vrot.slane %v2661_v13, 1  ;;  %v3291_v22 = vunpack.c.l.b16 %v3035_v62  ;;  %v3299_v5 = vunpack.c.l.b16 %v3043_v53  ;;  %4817 = vmatpush3.bf16.msra.mxu1 %v5099_v12  ;;  %4839 = vmatpush3.bf16.msra.mxu0 %v5100_v49 }
 0x347   :  { %v2718_v21 = vrot.slane %v2717_v50, 1  ;;  %v2774_v24 = vrot.slane %v2773_v3, 1  ;;  %v3307_v33 = vunpack.c.l.b16 %v3051_v39  ;;  %v2607_v38 = vmax.f32 %v2605_v4, %v2606_v10 }
 0x348   :  { %v3315_v16 = vunpack.c.l.b16 %v3059_v56  ;;  %v2663_v57 = vmax.f32 %v2661_v13, %v2662_v58  ;;  %v3356_v27 = vsel %vm3355_vm1, %v3299_v5, %v3291_v22  ;;  %v2508_v11 = vmul.f32 %v6012_v35, %v2348_v48 }
 0x349   :  { %v2719_v23 = vmax.f32 %v2717_v50, %v2718_v21  ;;  %v2775_v43 = vmax.f32 %v2773_v3, %v2774_v24  ;;  %v6037_v34 = vpop.f32.mrb[20].mxu1  ;;  %v6039_v20 = vpop.f32.mrb[36].mxu0  ;;  %v3358_v25 = vsel %vm3357_vm2, %v3307_v33, %v3356_v27  ;;  %v3037_v44 = vpack.c.bf16 %v2607_v38, %v2607_v38 }
 0x34a   :  { %7450 = vst [vmem:[#allocation36_spill] sm:$0xff] %v6037_v34  ;;  %7451 = vst [vmem:[#allocation37_spill] sm:$0xff] %v6039_v20  ;;  %v3045_v15 = vpack.c.bf16 %v2663_v57, %v2663_v57  ;;  %v7452_v1 = vsub.f32 %v5883_v30, %v5936_v19  ;;  %v6046_v14 = vpop.f32.mrb[21].mxu1  ;;  %v6048_v51 = vpop.f32.mrb[37].mxu0  ;;  %v6051_v55 = vsel %vm3359_vm3, %v3315_v16, %v3358_v25 }
 0x34b   :  { %7453 = vst [vmem:[#allocation38_spill] sm:$0xff] %v6046_v14  ;;  %7454 = vst [vmem:[#allocation39_spill] sm:$0xff] %v6048_v51  ;;  %v3053_v48 = vpack.c.bf16 %v2719_v23, %v2719_v23  ;;  %v3061_v4 = vpack.c.bf16 %v2775_v43, %v2775_v43  ;;  %v7456_v13 = vsub.f32 %v5868_v59, %v5938_v8  ;;  %v6057_v53 = vpop.f32.mrb[22].mxu1  ;;  %v6059_v30 = vpop.f32.mrb[38].mxu0  ;;  %v3293_v50 = vunpack.c.l.b16 %v3037_v44 }
 0x34c   :  { %v2516_v54 = vmul.f32 %v6012_v35, %v7452_v1  ;;  %7455 = vst [vmem:[#allocation40_spill] sm:$0xff] %v6051_v55  ;;  %7457 = vst [vmem:[#allocation41_spill] sm:$0xff] %v6057_v53  ;;  %v3301_v3 = vunpack.c.l.b16 %v3045_v15  ;;  %v7459_v56 = vsub.f32 %v5885_v40, %v5938_v8  ;;  %v6065_v58 = vpop.f32.mrb[23].mxu1  ;;  %v6067_v47 = vpop.f32.mrb[39].mxu0  ;;  %v1963_v22 = vmul.f32 %v6016_v42, %v6016_v42 }
 0x34d   :  { %v2510_v62 = vmul.f32 %v6014_v61, %v7456_v13  ;;  %7458 = vst [vmem:[#allocation42_spill] sm:$0xff] %v6059_v30  ;;  %7460 = vst [vmem:[#allocation43_spill] sm:$0xff] %v6065_v58  ;;  %v3309_v37 = vunpack.c.l.b16 %v3053_v48  ;;  %v3317_v59 = vunpack.c.l.b16 %v3061_v4  ;;  %v1965_v5 = vmul.f32 %v6018_v60, %v6018_v60 }
 0x34e   :  { %v2762_v39 = vmax.f32 %v2508_v11, %v2516_v54  ;;  %v2518_v10 = vmul.f32 %v6014_v61, %v7459_v56  ;;  %7461 = vst [vmem:[#allocation44_spill] sm:$0xff] %v6067_v47  ;;  %v3376_v21 = vsel %vm3355_vm1, %v3301_v3, %v3293_v50  ;;  %v1964_v40 = vmul.f32 %v6020_v9, %v6020_v9 }
 0x34f   :  { %v3377_v49 = vsel %vm3357_vm2, %v3309_v37, %v3376_v21  ;;  %v1966_v33 = vmul.f32 %v6022_v6, %v6022_v6  ;;  %v1779_v16 = vadd.f32 %v6024_v46, %v6016_v42  ;;  %v1971_v38 = vmul.f32 %v6024_v46, %v6024_v46 }
 0x350   :  { %v2763_v24 = vrot.slane %v2762_v39, 4  ;;  %v2776_v12 = vmax.f32 %v2510_v62, %v2518_v10  ;;  %v6084_v57 = vsel %vm3359_vm3, %v3317_v59, %v3377_v49  ;;  %v1805_v43 = vadd.f32 %v6026_v63, %v6018_v60 }
 0x351   :  { %7462 = vst [vmem:[#allocation45_spill] sm:$0xff] %v6084_v57  ;;  %v2131_v11 = vadd.f32 %v1971_v38, %v1963_v22  ;;  %v1973_v25 = vmul.f32 %v6026_v63, %v6026_v63  ;;  %v1792_v44 = vadd.f32 %v6028_v41, %v6020_v9  ;;  %v1972_v15 = vmul.f32 %v6028_v41, %v6028_v41  ;;  %v6094_v1 = vpop.f32.mrb[24].mxu1  ;;  %v6096_v54 = vpop.f32.mrb[40].mxu0 }
 0x352   :  { %v2764_v27 = vmax.f32 %v2762_v39, %v2763_v24  ;;  %v2777_v23 = vrot.slane %v2776_v12, 4  ;;  %7463 = vst [vmem:[#allocation46_spill] sm:$0xff] %v6094_v1  ;;  %7464 = vst [vmem:[#allocation47_spill] sm:$0xff] %v6096_v54  ;;  %v1818_v13 = vadd.f32 %v6030_v36, %v6022_v6  ;;  %v1974_v62 = vmul.f32 %v6030_v36, %v6030_v36  ;;  %v6102_v50 = vpop.f32.mrb[25].mxu1  ;;  %v6104_v3 = vpop.f32.mrb[41].mxu0 }
 0x353   :  { %7465 = vst [vmem:[#allocation48_spill] sm:$0xff] %v6102_v50  ;;  %7466 = vst [vmem:[#allocation49_spill] sm:$0xff] %v6104_v3  ;;  %v2157_v39 = vadd.f32 %v1973_v25, %v1965_v5  ;;  %v2144_v56 = vadd.f32 %v1972_v15, %v1964_v40  ;;  %v1780_v10 = vadd.f32 %v1779_v16, %v6037_v34  ;;  %v6109_v59 = vpop.f32.mrb[26].mxu1  ;;  %v6111_v22 = vpop.f32.mrb[42].mxu0 }
 0x354   :  { %v2765_v48 = vrot.slane %v2764_v27, 2  ;;  %v2778_v4 = vmax.f32 %v2776_v12, %v2777_v23  ;;  %v1979_v37 = vmul.f32 %v6037_v34, %v6037_v34  ;;  %7467 = vst [vmem:[#allocation50_spill] sm:$0xff] %v6109_v59  ;;  %7468 = vst [vmem:[#allocation51_spill] sm:$0xff] %v6111_v22  ;;  %v2170_v24 = vadd.f32 %v1974_v62, %v1966_v33  ;;  %v6114_v49 = vpop.f32.mrb[27].mxu1  ;;  %v6116_v38 = vpop.f32.mrb[43].mxu0 }
 0x355   :  { %v1806_v12 = vadd.f32 %v1805_v43, %v6039_v20  ;;  %7469 = vst [vmem:[#allocation52_spill] sm:$0xff] %v6114_v49  ;;  %7470 = vst [vmem:[#allocation53_spill] sm:$0xff] %v6116_v38  ;;  %v1981_v5 = vmul.f32 %v6039_v20, %v6039_v20  ;;  %v1793_v40 = vadd.f32 %v1792_v44, %v6046_v14 }
 0x356   :  { %v2766_v21 = vmax.f32 %v2764_v27, %v2765_v48  ;;  %v2132_v23 = vadd.f32 %v2131_v11, %v1979_v37  ;;  %v1980_v16 = vmul.f32 %v6046_v14, %v6046_v14  ;;  %v2779_v25 = vrot.slane %v2778_v4, 2 }
 0x357   :  { %v1819_v15 = vadd.f32 %v1818_v13, %v6048_v51  ;;  %v1982_v33 = vmul.f32 %v6048_v51, %v6048_v51  ;;  %v2158_v27 = vadd.f32 %v2157_v39, %v1981_v5  ;;  %v1781_v48 = vadd.f32 %v1780_v10, %v6057_v53 }
 0x358   :  { %v2145_v43 = vadd.f32 %v2144_v56, %v1980_v16  ;;  %v1987_v11 = vmul.f32 %v6057_v53, %v6057_v53  ;;  %v2767_v62 = vrot.slane %v2766_v21, 1  ;;  %v1807_v44 = vadd.f32 %v1806_v12, %v6059_v30 }
 0x359   :  { %v2171_v37 = vadd.f32 %v2170_v24, %v1982_v33  ;;  %v1989_v57 = vmul.f32 %v6059_v30, %v6059_v30  ;;  %v1794_v13 = vadd.f32 %v1793_v40, %v6065_v58  ;;  %v1988_v55 = vmul.f32 %v6065_v58, %v6065_v58  ;;  %v6135_v39 = vpop.f32.mrb[28].mxu1  ;;  %v6137_v56 = vpop.f32.mrb[44].mxu0 }
 0x35a   :  { %v2133_v26 = vadd.f32 %v2132_v23, %v1987_v11  ;;  %v6139_v10 = vmax.f32 %v2778_v4, %v2779_v25  ;;  %v1820_v5 = vadd.f32 %v1819_v15, %v6067_v47  ;;  %v1990_v24 = vmul.f32 %v6067_v47, %v6067_v47  ;;  %v6144_v12 = vpop.f32.mrb[29].mxu1  ;;  %v6146_v23 = vpop.f32.mrb[45].mxu0 }
 0x35b   :  { %v2159_v16 = vadd.f32 %v2158_v27, %v1989_v57  ;;  %v2146_v40 = vadd.f32 %v2145_v43, %v1988_v55  ;;  %v1782_v33 = vadd.f32 %v1781_v48, %v6094_v1  ;;  %v1995_v11 = vmul.f32 %v6094_v1, %v6094_v1  ;;  %v6151_v30 = vpop.f32.mrb[30].mxu1  ;;  %v6153_v4 = vpop.f32.mrb[46].mxu0 }
 0x35c   :  { %v6155_v25 = vmax.f32 %v2766_v21, %v2767_v62  ;;  %v2172_v15 = vadd.f32 %v2171_v37, %v1990_v24  ;;  %v1808_v20 = vadd.f32 %v1807_v44, %v6096_v54  ;;  %v6158_v63 = vpop.f32.mrb[31].mxu1  ;;  %v6160_v60 = vpop.f32.mrb[47].mxu0  ;;  %v1997_v55 = vmul.f32 %v6096_v54, %v6096_v54 }
 0x35d   :  { %v2134_v57 = vadd.f32 %v2133_v26, %v1995_v11  ;;  %v1795_v27 = vadd.f32 %v1794_v13, %v6102_v50  ;;  %v1996_v43 = vmul.f32 %v6102_v50, %v6102_v50  ;;  %v1821_v21 = vadd.f32 %v1820_v5, %v6104_v3 }
 0x35e   :  { %v1998_v62 = vmul.f32 %v6104_v3, %v6104_v3  ;;  %v1783_v37 = vadd.f32 %v1782_v33, %v6109_v59  ;;  %v2160_v44 = vadd.f32 %v2159_v16, %v1997_v55  ;;  %v2003_v26 = vmul.f32 %v6109_v59, %v6109_v59 }
 0x35f   :  { %v2147_v24 = vadd.f32 %v2146_v40, %v1996_v43  ;;  %v1809_v11 = vadd.f32 %v1808_v20, %v6111_v22  ;;  %v2005_v54 = vmul.f32 %v6111_v22, %v6111_v22  ;;  %v1796_v48 = vadd.f32 %v1795_v27, %v6114_v49 }
 0x360   :  { %v2173_v13 = vadd.f32 %v2172_v15, %v1998_v62  ;;  %v2004_v5 = vmul.f32 %v6114_v49, %v6114_v49  ;;  %v2135_v1 = vadd.f32 %v2134_v57, %v2003_v26  ;;  %v1822_v53 = vadd.f32 %v1821_v21, %v6116_v38 }
 0x361   :  { %v2006_v16 = vmul.f32 %v6116_v38, %v6116_v38  ;;  %v1784_v40 = vadd.f32 %v1783_v37, %v6135_v39  ;;  %v6184_v33 = vpop.f32.mrb[32].mxu1  ;;  %v6186_v20 = vpop.f32.mrb[48].mxu0  ;;  %v2161_v15 = vadd.f32 %v2160_v44, %v2005_v54  ;;  %v2011_v27 = vmul.f32 %v6135_v39, %v6135_v39 }
 0x362   :  { %7471 = vst [vmem:[#allocation54_spill] sm:$0xff] %v6184_v33  ;;  %7472 = vst [vmem:[#allocation55_spill] sm:$0xff] %v6186_v20  ;;  %v2148_v55 = vadd.f32 %v2147_v24, %v2004_v5  ;;  %v1810_v43 = vadd.f32 %v1809_v11, %v6137_v56  ;;  %v6191_v62 = vpop.f32.mrb[33].mxu1  ;;  %v6193_v57 = vpop.f32.mrb[49].mxu0  ;;  %v2013_v26 = vmul.f32 %v6137_v56, %v6137_v56 }
 0x363   :  { %7473 = vst [vmem:[#allocation56_spill] sm:$0xff] %v6191_v62  ;;  %7474 = vst [vmem:[#allocation57_spill] sm:$0xff] %v6193_v57  ;;  %v2174_v21 = vadd.f32 %v2173_v13, %v2006_v16  ;;  %v1797_v37 = vadd.f32 %v1796_v48, %v6144_v12  ;;  %v2012_v22 = vmul.f32 %v6144_v12, %v6144_v12  ;;  %v6200_v54 = vpop.f32.mrb[34].mxu1  ;;  %v6202_v44 = vpop.f32.mrb[50].mxu0 }
 0x364   :  { %7475 = vst [vmem:[#allocation58_spill] sm:$0xff] %v6200_v54  ;;  %7476 = vst [vmem:[#allocation59_spill] sm:$0xff] %v6202_v44  ;;  %v2136_v24 = vadd.f32 %v2135_v1, %v2011_v27  ;;  %v1823_v11 = vadd.f32 %v1822_v53, %v6146_v23  ;;  %v2014_v5 = vmul.f32 %v6146_v23, %v6146_v23  ;;  %v6208_v16 = vpop.f32.mrb[35].mxu1  ;;  %v6210_v59 = vpop.f32.mrb[51].mxu0 }
 0x365   :  { %v1785_v13 = vadd.f32 %v1784_v40, %v6151_v30  ;;  %7477 = vst [vmem:[#allocation60_spill] sm:$0xff] %v6208_v16  ;;  %7478 = vst [vmem:[#allocation61_spill] sm:$0xff] %v6210_v59  ;;  %v2162_v48 = vadd.f32 %v2161_v15, %v2013_v26  ;;  %v2149_v34 = vadd.f32 %v2148_v55, %v2012_v22 }
 0x366   :  { %v2019_v46 = vmul.f32 %v6151_v30, %v6151_v30  ;;  %v1811_v42 = vadd.f32 %v1810_v43, %v6153_v4  ;;  %v2175_v61 = vadd.f32 %v2174_v21, %v2014_v5  ;;  %v2021_v53 = vmul.f32 %v6153_v4, %v6153_v4 }
 0x367   :  { %v1786_v1 = vrot.slane %v1785_v13, 4  ;;  %v1798_v27 = vadd.f32 %v1797_v37, %v6158_v63  ;;  %v2020_v3 = vmul.f32 %v6158_v63, %v6158_v63  ;;  %v1824_v15 = vadd.f32 %v1823_v11, %v6160_v60 }
 0x368   :  { %v2137_v38 = vadd.f32 %v2136_v24, %v2019_v46  ;;  %v1812_v40 = vrot.slane %v1811_v42, 4  ;;  %v2163_v55 = vadd.f32 %v2162_v48, %v2021_v53  ;;  %v2022_v43 = vmul.f32 %v6160_v60, %v6160_v60 }
 0x369   :  { %v1787_v22 = vadd.f32 %v1786_v1, %v1785_v13  ;;  %v1799_v26 = vrot.slane %v1798_v27, 4  ;;  %v2150_v47 = vadd.f32 %v2149_v34, %v2020_v3  ;;  %v1825_v51 = vrot.slane %v1824_v15, 4  ;;  %v6223_v36 = vpop.f32.mrb[36].mxu1  ;;  %v6225_v37 = vpop.f32.mrb[52].mxu0 }
 0x36a   :  { %v2138_v21 = vrot.slane %v2137_v38, 4  ;;  %v1813_v5 = vadd.f32 %v1812_v40, %v1811_v42  ;;  %7479 = vst [vmem:[#allocation62_spill] sm:$0xff] %v6223_v36  ;;  %7480 = vst [vmem:[#allocation63_spill] sm:$0xff] %v6225_v37  ;;  %v2164_v24 = vrot.slane %v2163_v55, 4  ;;  %v2176_v7 = vadd.f32 %v2175_v61, %v2022_v43  ;;  %v6227_v52 = vpop.f32.mrb[37].mxu1  ;;  %v6229_v11 = vpop.f32.mrb[53].mxu0 }
 0x36b   :  { %v1788_v46 = vrot.slane %v1787_v22, 2  ;;  %v1800_v6 = vadd.f32 %v1799_v26, %v1798_v27  ;;  %7481 = vst [vmem:[#allocation64_spill] sm:$0xff] %v6227_v52  ;;  %7482 = vst [vmem:[#allocation65_spill] sm:$0xff] %v6229_v11  ;;  %v2151_v1 = vrot.slane %v2150_v47, 4  ;;  %v1826_v53 = vadd.f32 %v1825_v51, %v1824_v15  ;;  %v6231_v31 = vpop.f32.mrb[38].mxu1  ;;  %v6233_v42 = vpop.f32.mrb[54].mxu0 }
 0x36c   :  { %v2139_v13 = vadd.f32 %v2138_v21, %v2137_v38  ;;  %v1814_v48 = vrot.slane %v1813_v5, 2  ;;  %7483 = vst [vmem:[#allocation66_spill] sm:$0xff] %v6231_v31  ;;  %7484 = vst [vmem:[#allocation67_spill] sm:$0xff] %v6233_v42  ;;  %v2165_v3 = vadd.f32 %v2164_v24, %v2163_v55  ;;  %v2177_v18 = vrot.slane %v2176_v7, 4  ;;  %v6235_v2 = vpop.f32.mrb[39].mxu1  ;;  %v6237_v27 = vpop.f32.mrb[55].mxu0 }
 0x36d   :  { %v1789_v34 = vadd.f32 %v1788_v46, %v1787_v22  ;;  %v1801_v40 = vrot.slane %v1800_v6, 2  ;;  %7485 = vst [vmem:[#allocation68_spill] sm:$0xff] %v6235_v2  ;;  %7486 = vst [vmem:[#allocation69_spill] sm:$0xff] %v6237_v27  ;;  %v2152_v43 = vadd.f32 %v2151_v1, %v2150_v47  ;;  %v1827_v8 = vrot.slane %v1826_v53, 2 }
 0x36e   :  { %v2140_v61 = vrot.slane %v2139_v13, 2  ;;  %v1815_v26 = vadd.f32 %v1814_v48, %v1813_v5  ;;  %v2166_v21 = vrot.slane %v2165_v3, 2  ;;  %v2178_v51 = vadd.f32 %v2177_v18, %v2176_v7 }
 0x36f   :  { %v1790_v38 = vrot.slane %v1789_v34, 1  ;;  %v1802_v32 = vadd.f32 %v1801_v40, %v1800_v6  ;;  %v2153_v45 = vrot.slane %v2152_v43, 2  ;;  %v1828_v29 = vadd.f32 %v1827_v8, %v1826_v53 }
 0x370   :  { %v2141_v15 = vadd.f32 %v2140_v61, %v2139_v13  ;;  %v1816_v28 = vrot.slane %v1815_v26, 1  ;;  %v2167_v55 = vadd.f32 %v2166_v21, %v2165_v3  ;;  %v2179_v24 = vrot.slane %v2178_v51, 2 }
 0x371   :  { %v1791_v22 = vadd.f32 %v1790_v38, %v1789_v34  ;;  %v1803_v46 = vrot.slane %v1802_v32, 1  ;;  %v2154_v19 = vadd.f32 %v2153_v45, %v2152_v43  ;;  %v1829_v0 = vrot.slane %v1828_v29, 1  ;;  %v6239_v49 = vpop.f32.mrb[40].mxu1  ;;  %v6241_v47 = vpop.f32.mrb[56].mxu0 }
 0x372   :  { %v2142_v17 = vrot.slane %v2141_v15, 1  ;;  %v1817_v35 = vadd.f32 %v1816_v28, %v1815_v26  ;;  %7487 = vst [vmem:[#allocation70_spill] sm:$0xff] %v6239_v49  ;;  %7488 = vst [vmem:[#allocation71_spill] sm:$0xff] %v6241_v47  ;;  %v2168_v6 = vrot.slane %v2167_v55, 1  ;;  %v2180_v7 = vadd.f32 %v2179_v24, %v2178_v51  ;;  %v6245_v13 = vpop.f32.mrb[41].mxu1  ;;  %v6247_v8 = vpop.f32.mrb[57].mxu0 }
 0x373   :  { %v6243_v5 = vmul.f32 0.015625, %v1791_v22  ;;  %v1804_v18 = vadd.f32 %v1803_v46, %v1802_v32  ;;  %7490 = vst [vmem:[#allocation73_spill] sm:$0xff] %v6245_v13  ;;  %7491 = vst [vmem:[#allocation74_spill] sm:$0xff] %v6247_v8  ;;  %v2155_v53 = vrot.slane %v2154_v19, 1  ;;  %v1830_v28 = vadd.f32 %v1829_v0, %v1828_v29  ;;  %v6251_v45 = vpop.f32.mrb[42].mxu1  ;;  %v6253_v34 = vpop.f32.mrb[58].mxu0 }
 0x374   :  { %v2143_v48 = vadd.f32 %v2142_v17, %v2141_v15  ;;  %v6249_v1 = vmul.f32 0.015625, %v1817_v35  ;;  %7493 = vst [vmem:[#allocation76_spill] sm:$0xff] %v6251_v45  ;;  %7494 = vst [vmem:[#allocation77_spill] sm:$0xff] %v6253_v34  ;;  %v2169_v61 = vadd.f32 %v2168_v6, %v2167_v55  ;;  %v6261_v26 = vpop.f32.mrb[43].mxu1  ;;  %v6263_v17 = vpop.f32.mrb[59].mxu0  ;;  %v2181_v55 = vrot.slane %v2180_v7, 1 }
 0x375   :  { %7489 = vst [vmem:[#allocation72_spill] sm:$0xff] %v6243_v5  ;;  %v2259_v3 = vmul.f32 %v6243_v5, %v6243_v5  ;;  %7495 = vst [vmem:[#allocation78_spill] sm:$0xff] %v6261_v26  ;;  %v6271_v21 = vmul.f32 0.015625, %v1804_v18  ;;  %v2156_v51 = vadd.f32 %v2155_v53, %v2154_v19  ;;  %v6273_v15 = vmul.f32 0.015625, %v1830_v28 }
 0x376   :  { %7492 = vst [vmem:[#allocation75_spill] sm:$0xff] %v6249_v1  ;;  %7496 = vst [vmem:[#allocation79_spill] sm:$0xff] %v6263_v17  ;;  %v2243_v35 = vmul.f32 0.015625, %v2143_v48  ;;  %v2261_v0 = vmul.f32 %v6249_v1, %v6249_v1  ;;  %v2245_v38 = vmul.f32 0.015625, %v2169_v61  ;;  %v1903_v46 = vmul.f32 %v6184_v33, %v6184_v33 }
 0x377   :  { %7497 = vst [vmem:[#allocation80_spill] sm:$0xff] %v6271_v21  ;;  %7498 = vst [vmem:[#allocation81_spill] sm:$0xff] %v6273_v15  ;;  %v1905_v24 = vmul.f32 %v6186_v20, %v6186_v20  ;;  %v2244_v48 = vmul.f32 0.015625, %v2156_v51  ;;  %v2260_v29 = vmul.f32 %v6271_v21, %v6271_v21  ;;  %v2182_v53 = vadd.f32 %v2181_v55, %v2180_v7 }
 0x378   :  { %v2275_v22 = vsub.f32 %v2243_v35, %v2259_v3  ;;  %v2277_v6 = vsub.f32 %v2245_v38, %v2261_v0  ;;  %v2262_v28 = vmul.f32 %v6273_v15, %v6273_v15  ;;  %v1904_v19 = vmul.f32 %v6191_v62, %v6191_v62 }
 0x379   :  { %v6287_v3 = vpop.f32.mrb[44].mxu1  ;;  %v6289_v35 = vpop.f32.mrb[60].mxu0  ;;  %v2276_v38 = vsub.f32 %v2244_v48, %v2260_v29  ;;  %v2246_v55 = vmul.f32 0.015625, %v2182_v53  ;;  %v1906_v40 = vmul.f32 %v6193_v57, %v6193_v57  ;;  %v1727_v18 = vadd.f32 %v6200_v54, %v6184_v33 }
 0x37a   :  { %v2291_v61 = vmax.f32 %v2275_v22, 0.0  ;;  %v2293_v0 = vmax.f32 %v2277_v6, 0.0  ;;  %v6295_v22 = vpop.f32.mrb[45].mxu1  ;;  %v6297_v43 = vpop.f32.mrb[61].mxu0  ;;  %v1911_v32 = vmul.f32 %v6200_v54, %v6200_v54  ;;  %v1753_v58 = vadd.f32 %v6202_v44, %v6186_v20 }
 0x37b   :  { %v6303_v6 = vpop.f32.mrb[46].mxu1  ;;  %v6305_v29 = vpop.f32.mrb[62].mxu0  ;;  %v2292_v51 = vmax.f32 %v2276_v38, 0.0  ;;  %v2278_v50 = vsub.f32 %v2246_v55, %v2262_v28  ;;  %v1913_v14 = vmul.f32 %v6202_v44, %v6202_v44  ;;  %v1740_v33 = vadd.f32 %v6208_v16, %v6191_v62 }
 0x37c   :  { %v2435_v7 = vadd.f32 1e-05, %v2291_v61  ;;  %v2437_v48 = vadd.f32 1e-05, %v2293_v0  ;;  %v6311_v61 = vpop.f32.mrb[47].mxu1  ;;  %v6313_v53 = vpop.f32.mrb[63].mxu0  ;;  %v2079_v38 = vadd.f32 %v1911_v32, %v1903_v46  ;;  %v1912_v9 = vmul.f32 %v6208_v16, %v6208_v16 }
 0x37d   :  { %v2436_v0 = vadd.f32 1e-05, %v2292_v51  ;;  %v2294_v41 = vmax.f32 %v2278_v50, 0.0  ;;  %v2105_v54 = vadd.f32 %v1913_v14, %v1905_v24  ;;  %v1766_v28 = vadd.f32 %v6210_v59, %v6193_v57 }
 0x37e   :  { %5157 = vrsqrt.f32 %v2435_v7  ;;  %v1914_v7 = vmul.f32 %v6210_v59, %v6210_v59  ;;  %v1728_v55 = vadd.f32 %v1727_v18, %v6223_v36  ;;  %v1919_v32 = vmul.f32 %v6223_v36, %v6223_v36 }
 0x37f   :  { %5159 = vrsqrt.f32 %v2437_v48  ;;  %v2438_v46 = vadd.f32 1e-05, %v2294_v41  ;;  %v2092_v51 = vadd.f32 %v1912_v9, %v1904_v19  ;;  %v1754_v50 = vadd.f32 %v1753_v58, %v6225_v37 }
 0x380   :  { %5161 = vrsqrt.f32 %v2436_v0  ;;  %v1921_v14 = vmul.f32 %v6225_v37, %v6225_v37  ;;  %v2118_v0 = vadd.f32 %v1914_v7, %v1906_v40  ;;  %v2080_v44 = vadd.f32 %v2079_v38, %v1919_v32 }
 0x381   :  { %v6333_v24 = vpop.f32.mrb[48].mxu1  ;;  %v6335_v48 = vpop.f32.mrb[64].mxu0  ;;  %v1741_v20 = vadd.f32 %v1740_v33, %v6227_v52  ;;  %v1920_v18 = vmul.f32 %v6227_v52, %v6227_v52  ;;  %5163 = vrsqrt.f32 %v2438_v46  ;;  %v1767_v58 = vadd.f32 %v1766_v28, %v6229_v11 }
 0x382   :  { %7499 = vst [vmem:[#allocation82_spill] sm:$0xff] %v6333_v24  ;;  %7500 = vst [vmem:[#allocation83_spill] sm:$0xff] %v6335_v48  ;;  %v6340_v59 = vpop.f32.mrb[49].mxu1  ;;  %v6342_v41 = vpop.f32.mrb[65].mxu0  ;;  %v2106_v9 = vadd.f32 %v2105_v54, %v1921_v14  ;;  %v1922_v19 = vmul.f32 %v6229_v11, %v6229_v11  ;;  %v1729_v33 = vadd.f32 %v1728_v55, %v6231_v31 }
 0x383   :  { %7501 = vst [vmem:[#allocation84_spill] sm:$0xff] %v6342_v41  ;;  %v6347_v37 = vpop.f32.mrb[50].mxu1  ;;  %v6349_v40 = vpop.f32.mrb[66].mxu0  ;;  %v2093_v38 = vadd.f32 %v2092_v51, %v1920_v18  ;;  %v1927_v7 = vmul.f32 %v6231_v31, %v6231_v31  ;;  %v1755_v32 = vadd.f32 %v1754_v50, %v6233_v42  ;;  %v1929_v46 = vmul.f32 %v6233_v42, %v6233_v42 }
 0x384   :  { %7502 = vst [vmem:[#allocation85_spill] sm:$0xff] %v6347_v37  ;;  %7503 = vst [vmem:[#allocation86_spill] sm:$0xff] %v6349_v40  ;;  %v6355_v36 = vpop.f32.mrb[51].mxu1  ;;  %v6357_v54 = vpop.f32.mrb[67].mxu0  ;;  %v2119_v28 = vadd.f32 %v2118_v0, %v1922_v19  ;;  %v1742_v14 = vadd.f32 %v1741_v20, %v6235_v2  ;;  %v1928_v51 = vmul.f32 %v6235_v2, %v6235_v2 }
 0x385   :  { %7504 = vst [vmem:[#allocation87_spill] sm:$0xff] %v6357_v54  ;;  %v2081_v18 = vadd.f32 %v2080_v44, %v1927_v7  ;;  %v1768_v55 = vadd.f32 %v1767_v58, %v6237_v27  ;;  %v1930_v31 = vmul.f32 %v6237_v27, %v6237_v27  ;;  %v1730_v50 = vadd.f32 %v1729_v33, %v6239_v49 }
 0x386   :  { %v2107_v57 = vadd.f32 %v2106_v9, %v1929_v46  ;;  %v2094_v0 = vadd.f32 %v2093_v38, %v1928_v51  ;;  %v1935_v19 = vmul.f32 %v6239_v49, %v6239_v49  ;;  %v1756_v20 = vadd.f32 %v1755_v32, %v6241_v47 }
 0x387   :  { %v7507_v44 = vsub.f32 %v6135_v39, %v6243_v5  ;;  %v7508_v7 = vsub.f32 %v6151_v30, %v6243_v5  ;;  %v2120_v27 = vadd.f32 %v2119_v28, %v1930_v31  ;;  %v1937_v9 = vmul.f32 %v6241_v47, %v6241_v47 }
 0x388   :  { %v6368_v11 = vpop.eup %5157  ;;  %v7509_v38 = vsub.f32 %v6137_v56, %v6249_v1  ;;  %v7510_v46 = vsub.f32 %v6153_v4, %v6249_v1  ;;  %v2082_v51 = vadd.f32 %v2081_v18, %v1935_v19  ;;  %v1936_v56 = vmul.f32 %v6245_v13, %v6245_v13 }
 0x389   :  { %7505 = vst [vmem:[#allocation88_spill] sm:$0xff] %v6368_v11  ;;  %v6373_v42 = vpop.eup %5159  ;;  %v2571_v58 = vmul.f32 %v6368_v11, %v7507_v44  ;;  %v2579_v33 = vmul.f32 %v6368_v11, %v7508_v7  ;;  %v1743_v44 = vadd.f32 %v1742_v14, %v6245_v13  ;;  %v6394_v30 = vpop.f32.mrb[52].mxu1  ;;  %v2108_v47 = vadd.f32 %v2107_v57, %v1937_v9 }
 0x38a   :  { %7506 = vst [vmem:[#allocation89_spill] sm:$0xff] %v6373_v42  ;;  %v2573_v32 = vmul.f32 %v6373_v42, %v7509_v38  ;;  %v2581_v39 = vmul.f32 %v6373_v42, %v7510_v46  ;;  %7511 = vst [vmem:[#allocation90_spill] sm:$0xff] %v6394_v30  ;;  %v6396_v7 = vpop.f32.mrb[68].mxu0  ;;  %v6398_v31 = vpop.eup %5161  ;;  %v1769_v38 = vadd.f32 %v1768_v55, %v6247_v8  ;;  %v7523_v42 = vrot.slane %v6139_v10, 1 }
 0x38b   :  { %7512 = vst [vmem:[#allocation91_spill] sm:$0xff] %v6396_v7  ;;  %7513 = vst [vmem:[#allocation92_spill] sm:$0xff] %v6398_v31  ;;  %v2979_v28 = vmax.f32 %v2571_v58, %v2579_v33  ;;  %v6403_v49 = vpop.f32.mrb[53].mxu1  ;;  %v6405_v4 = vpop.f32.mrb[69].mxu0  ;;  %v7515_v14 = vsub.f32 %v6144_v12, %v6271_v21  ;;  %v7516_v46 = vsub.f32 %v6158_v63, %v6271_v21 }
 0x38c   :  { %7514 = vst [vmem:[#allocation93_spill] sm:$0xff] %v6405_v4  ;;  %v2993_v18 = vmax.f32 %v2573_v32, %v2581_v39  ;;  %v1938_v58 = vmul.f32 %v6247_v8, %v6247_v8  ;;  %v6417_v33 = vpop.f32.mrb[54].mxu1  ;;  %v6419_v55 = vpop.f32.mrb[70].mxu0  ;;  %v2095_v13 = vadd.f32 %v2094_v0, %v1936_v56  ;;  %v1731_v32 = vadd.f32 %v1730_v50, %v6251_v45 }
 0x38d   :  { %v2572_v19 = vmul.f32 %v6398_v31, %v7515_v14  ;;  %v2580_v57 = vmul.f32 %v6398_v31, %v7516_v46  ;;  %7517 = vst [vmem:[#allocation94_spill] sm:$0xff] %v6417_v33  ;;  %7518 = vst [vmem:[#allocation95_spill] sm:$0xff] %v6419_v55  ;;  %v2980_v9 = vrot.slane %v2979_v28, 4  ;;  %v1943_v12 = vmul.f32 %v6251_v45, %v6251_v45  ;;  %v6424_v39 = vpop.f32.mrb[55].mxu1  ;;  %v6426_v14 = vpop.f32.mrb[71].mxu0 }
 0x38e   :  { %7519 = vst [vmem:[#allocation96_spill] sm:$0xff] %v6426_v14  ;;  %v6428_v63 = vpop.eup %5163  ;;  %v2994_v46 = vrot.slane %v2993_v18, 4  ;;  %v2121_v8 = vadd.f32 %v2120_v27, %v1938_v58  ;;  %v1757_v52 = vadd.f32 %v1756_v20, %v6253_v34  ;;  %v7521_v0 = vsub.f32 %v6146_v23, %v6273_v15 }
 0x38f   :  { %7520 = vst [vmem:[#allocation97_spill] sm:$0xff] %v6428_v63  ;;  %v2986_v2 = vmax.f32 %v2572_v19, %v2580_v57  ;;  %v2981_v16 = vmax.f32 %v2979_v28, %v2980_v9  ;;  %v7522_v56 = vsub.f32 %v6160_v60, %v6273_v15  ;;  %v2083_v62 = vadd.f32 %v2082_v51, %v1943_v12 }
 0x390   :  { %v2574_v50 = vmul.f32 %v6428_v63, %v7521_v0  ;;  %v2782_v1 = vmax.f32 %v6139_v10, %v7523_v42  ;;  %v1945_v27 = vmul.f32 %v6253_v34, %v6253_v34  ;;  %v1744_v20 = vadd.f32 %v1743_v44, %v6261_v26 }
 0x391   :  { %v2582_v45 = vmul.f32 %v6428_v63, %v7522_v56  ;;  %v2995_v28 = vmax.f32 %v2993_v18, %v2994_v46  ;;  %v1944_v23 = vmul.f32 %v6261_v26, %v6261_v26  ;;  %v1770_v57 = vadd.f32 %v1769_v38, %v6263_v17  ;;  %v6450_v9 = vpop.f32.mrb[56].mxu1  ;;  %v6452_v10 = vpop.f32.mrb[72].mxu0 }
 0x392   :  { %v2987_v60 = vrot.slane %v2986_v2, 4  ;;  %v2109_v58 = vadd.f32 %v2108_v47, %v1945_v27  ;;  %v1946_v51 = vmul.f32 %v6263_v17, %v6263_v17  ;;  %7524 = vst [vmem:[#allocation98_spill] sm:$0xff] %v6450_v9  ;;  %7525 = vst [vmem:[#allocation99_spill] sm:$0xff] %v6452_v10  ;;  %v3060_v42 = vpack.c.bf16 %v6155_v25, %v6155_v25  ;;  %v6457_v12 = vpop.f32.mrb[57].mxu1  ;;  %v6459_v46 = vpop.f32.mrb[73].mxu0 }
 0x393   :  { %v3000_v19 = vmax.f32 %v2574_v50, %v2582_v45  ;;  %v2982_v44 = vrot.slane %v2981_v16, 2  ;;  %v2096_v18 = vadd.f32 %v2095_v13, %v1944_v23  ;;  %v1732_v45 = vadd.f32 %v1731_v32, %v6287_v3  ;;  %7526 = vst [vmem:[#allocation100_spill] sm:$0xff] %v6459_v46  ;;  %v6463_v0 = vpop.f32.mrb[58].mxu1  ;;  %v6465_v50 = vpop.f32.mrb[74].mxu0 }
 0x394   :  { %v2122_v38 = vadd.f32 %v2121_v8, %v1946_v51  ;;  %v1951_v47 = vmul.f32 %v6287_v3, %v6287_v3  ;;  %7527 = vst [vmem:[#allocation101_spill] sm:$0xff] %v6463_v0  ;;  %7528 = vst [vmem:[#allocation102_spill] sm:$0xff] %v6465_v50  ;;  %v3062_v56 = vpack.c.bf16 %v2782_v1, %v2782_v1  ;;  %v2996_v27 = vrot.slane %v2995_v28, 2  ;;  %v6470_v32 = vpop.f32.mrb[59].mxu1  ;;  %v6472_v23 = vpop.f32.mrb[75].mxu0 }
 0x395   :  { %v1758_v25 = vadd.f32 %v1757_v52, %v6289_v35  ;;  %v1953_v13 = vmul.f32 %v6289_v35, %v6289_v35  ;;  %7529 = vst [vmem:[#allocation103_spill] sm:$0xff] %v6470_v32  ;;  %7530 = vst [vmem:[#allocation104_spill] sm:$0xff] %v6472_v23  ;;  %v6474_v34 = vmax.f32 %v2986_v2, %v2987_v60  ;;  %v6477_v17 = vunpack.c.l.b16 %v3060_v42 }
 0x396   :  { %v2084_v8 = vadd.f32 %v2083_v62, %v1951_v47  ;;  %v1745_v51 = vadd.f32 %v1744_v20, %v6295_v22  ;;  %v6479_v26 = vmax.f32 %v2981_v16, %v2982_v44  ;;  %v1952_v52 = vmul.f32 %v6295_v22, %v6295_v22 }
 0x397   :  { %7531 = vst [vmem:[#allocation105_spill] sm:$0xff] %v6474_v34  ;;  %7532 = vst [vmem:[#allocation106_spill] sm:$0xff] %v6477_v17  ;;  %v2110_v1 = vadd.f32 %v2109_v58, %v1953_v13  ;;  %v3001_v11 = vrot.slane %v3000_v19, 4  ;;  %v1771_v5 = vadd.f32 %v1770_v57, %v6297_v43  ;;  %v1954_v63 = vmul.f32 %v6297_v43, %v6297_v43 }
 0x398   :  { %7533 = vst [vmem:[#allocation107_spill] sm:$0xff] %v6479_v26  ;;  %v1733_v2 = vadd.f32 %v1732_v45, %v6303_v6  ;;  %v6487_v60 = vunpack.c.l.b16 %v3062_v56  ;;  %v6489_v62 = vmax.f32 %v2995_v28, %v2996_v27  ;;  %v2097_v20 = vadd.f32 %v2096_v18, %v1952_v52 }
 0x399   :  { %v1959_v16 = vmul.f32 %v6303_v6, %v6303_v6  ;;  %v2123_v42 = vadd.f32 %v2122_v38, %v1954_v63  ;;  %v1759_v47 = vadd.f32 %v1758_v25, %v6305_v29  ;;  %v6495_v57 = vpop.f32.mrb[60].mxu1  ;;  %v6497_v13 = vpop.f32.mrb[76].mxu0  ;;  %v1961_v28 = vmul.f32 %v6305_v29, %v6305_v29 }
 0x39a   :  { %7534 = vst [vmem:[#allocation108_spill] sm:$0xff] %v6487_v60  ;;  %v1734_v44 = vrot.slane %v1733_v2, 4  ;;  %7535 = vst [vmem:[#allocation109_spill] sm:$0xff] %v6495_v57  ;;  %v1746_v18 = vadd.f32 %v1745_v51, %v6311_v61  ;;  %v6503_v27 = vpop.f32.mrb[61].mxu1  ;;  %v6505_v52 = vpop.f32.mrb[77].mxu0  ;;  %v6507_v63 = vmax.f32 %v3000_v19, %v3001_v11  ;;  %v1960_v58 = vmul.f32 %v6311_v61, %v6311_v61 }
 0x39b   :  { %7536 = vst [vmem:[#allocation110_spill] sm:$0xff] %v6497_v13  ;;  %v2085_v56 = vadd.f32 %v2084_v8, %v1959_v16  ;;  %7537 = vst [vmem:[#allocation111_spill] sm:$0xff] %v6503_v27  ;;  %v1760_v25 = vrot.slane %v1759_v47, 4  ;;  %v6511_v60 = vpop.f32.mrb[62].mxu1  ;;  %v2111_v8 = vadd.f32 %v2110_v1, %v1961_v28  ;;  %v1772_v17 = vadd.f32 %v1771_v5, %v6313_v53 }
 0x39c   :  { %7538 = vst [vmem:[#allocation112_spill] sm:$0xff] %v6505_v52  ;;  %7539 = vst [vmem:[#allocation113_spill] sm:$0xff] %v6507_v63  ;;  %v1735_v38 = vadd.f32 %v1734_v44, %v1733_v2  ;;  %v1747_v16 = vrot.slane %v1746_v18, 4  ;;  %v2098_v31 = vadd.f32 %v2097_v20, %v1960_v58  ;;  %v1962_v21 = vmul.f32 %v6313_v53, %v6313_v53 }
 0x39d   :  { %7540 = vst [vmem:[#allocation114_spill] sm:$0xff] %v6511_v60  ;;  %v2086_v45 = vrot.slane %v2085_v56, 4  ;;  %v1761_v51 = vadd.f32 %v1760_v25, %v1759_v47  ;;  %v2112_v19 = vrot.slane %v2111_v8, 4  ;;  %v1773_v44 = vrot.slane %v1772_v17, 4 }
 0x39e   :  { %v1736_v15 = vrot.slane %v1735_v38, 2  ;;  %v1748_v2 = vadd.f32 %v1747_v16, %v1746_v18  ;;  %v2099_v27 = vrot.slane %v2098_v31, 4  ;;  %v2124_v13 = vadd.f32 %v2123_v42, %v1962_v21  ;;  %v6516_v42 = vpop.f32.mrb[78].mxu0 }
 0x39f   :  { %v2087_v11 = vadd.f32 %v2086_v45, %v2085_v56  ;;  %v1762_v52 = vrot.slane %v1761_v51, 2  ;;  %v2113_v63 = vadd.f32 %v2112_v19, %v2111_v8  ;;  %v1774_v28 = vadd.f32 %v1773_v44, %v1772_v17 }
 0x3a0   :  { %v1737_v34 = vadd.f32 %v1736_v15, %v1735_v38  ;;  %v1749_v1 = vrot.slane %v1748_v2, 2  ;;  %v2100_v26 = vadd.f32 %v2099_v27, %v2098_v31  ;;  %v2125_v47 = vrot.slane %v2124_v13, 4 }
 0x3a1   :  { %v2088_v60 = vrot.slane %v2087_v11, 2  ;;  %v1763_v5 = vadd.f32 %v1762_v52, %v1761_v51  ;;  %v2114_v58 = vrot.slane %v2113_v63, 2  ;;  %v1775_v23 = vrot.slane %v1774_v28, 2 }
 0x3a2   :  { %v1738_v57 = vrot.slane %v1737_v34, 1  ;;  %v1750_v25 = vadd.f32 %v1749_v1, %v1748_v2  ;;  %v2101_v18 = vrot.slane %v2100_v26, 2  ;;  %v2126_v16 = vadd.f32 %v2125_v47, %v2124_v13 }
 0x3a3   :  { %v2089_v20 = vadd.f32 %v2088_v60, %v2087_v11  ;;  %v1764_v56 = vrot.slane %v1763_v5, 1  ;;  %v2115_v38 = vadd.f32 %v2114_v58, %v2113_v63  ;;  %v1776_v21 = vadd.f32 %v1775_v23, %v1774_v28 }
 0x3a4   :  { %v1739_v45 = vadd.f32 %v1738_v57, %v1737_v34  ;;  %v1751_v32 = vrot.slane %v1750_v25, 1  ;;  %v2102_v52 = vadd.f32 %v2101_v18, %v2100_v26  ;;  %v2127_v31 = vrot.slane %v2126_v16, 2 }
 0x3a5   :  { %v2090_v15 = vrot.slane %v2089_v20, 1  ;;  %v1765_v17 = vadd.f32 %v1764_v56, %v1763_v5  ;;  %v2116_v60 = vrot.slane %v2115_v38, 1  ;;  %v1777_v11 = vrot.slane %v1776_v21, 1 }
 0x3a6   :  { %v6518_v8 = vmul.f32 0.015625, %v1739_v45  ;;  %v1752_v51 = vadd.f32 %v1751_v32, %v1750_v25  ;;  %v2103_v26 = vrot.slane %v2102_v52, 1  ;;  %v2128_v18 = vadd.f32 %v2127_v31, %v2126_v16 }
 0x3a7   :  { %v2091_v27 = vadd.f32 %v2090_v15, %v2089_v20  ;;  %v6526_v13 = vmul.f32 0.015625, %v1765_v17  ;;  %v2117_v19 = vadd.f32 %v2116_v60, %v2115_v38  ;;  %v1778_v28 = vadd.f32 %v1777_v11, %v1776_v21 }
 0x3a8   :  { %7541 = vst [vmem:[#allocation115_spill] sm:$0xff] %v6518_v8  ;;  %v2255_v34 = vmul.f32 %v6518_v8, %v6518_v8  ;;  %v2351_v57 = vsub.f32 %v6287_v3, %v6518_v8  ;;  %v2359_v23 = vsub.f32 %v6303_v6, %v6518_v8  ;;  %v6528_v2 = vmul.f32 0.015625, %v1752_v51 }
 0x3a9   :  { %7542 = vst [vmem:[#allocation116_spill] sm:$0xff] %v6526_v13  ;;  %v2239_v63 = vmul.f32 0.015625, %v2091_v27  ;;  %v2257_v32 = vmul.f32 %v6526_v13, %v6526_v13  ;;  %v2353_v44 = vsub.f32 %v6289_v35, %v6526_v13  ;;  %v2361_v1 = vsub.f32 %v6305_v29, %v6526_v13  ;;  %v6546_v27 = vpop.f32.mrb[63].mxu1 }
 0x3aa   :  { %v2241_v47 = vmul.f32 0.015625, %v2117_v19  ;;  %v2104_v20 = vadd.f32 %v2103_v26, %v2102_v52  ;;  %v2256_v58 = vmul.f32 %v6528_v2, %v6528_v2  ;;  %v2352_v25 = vsub.f32 %v6295_v22, %v6528_v2 }
 0x3ab   :  { %v2271_v5 = vsub.f32 %v2239_v63, %v2255_v34  ;;  %v6542_v56 = vmul.f32 0.015625, %v1778_v28  ;;  %v1967_v21 = vmul.f32 %v6333_v24, %v6333_v24  ;;  %v2129_v52 = vrot.slane %v2128_v18, 1 }
 0x3ac   :  { %v2273_v38 = vsub.f32 %v2241_v47, %v2257_v32  ;;  %v2240_v17 = vmul.f32 0.015625, %v2104_v20  ;;  %v1969_v63 = vmul.f32 %v6335_v48, %v6335_v48  ;;  %v1968_v26 = vmul.f32 %v6340_v59, %v6340_v59 }
 0x3ad   :  { %v2287_v15 = vmax.f32 %v2271_v5, 0.0  ;;  %v2258_v60 = vmul.f32 %v6542_v56, %v6542_v56  ;;  %v2130_v19 = vadd.f32 %v2129_v52, %v2128_v18  ;;  %v1970_v32 = vmul.f32 %v6342_v41, %v6342_v41 }
 0x3ae   :  { %v2289_v16 = vmax.f32 %v2273_v38, 0.0  ;;  %v2272_v31 = vsub.f32 %v2240_v17, %v2256_v58  ;;  %v1831_v28 = vadd.f32 %v6347_v37, %v6333_v24  ;;  %v1975_v20 = vmul.f32 %v6347_v37, %v6347_v37  ;;  %v7574_v24 = vld [vmem:[#allocation16_spill] sm:$0xff] }
 0x3af   :  { %v2431_v34 = vadd.f32 1e-05, %v2287_v15  ;;  %v2242_v58 = vmul.f32 0.015625, %v2130_v19  ;;  %v1857_v15 = vadd.f32 %v6349_v40, %v6335_v48  ;;  %v1977_v18 = vmul.f32 %v6349_v40, %v6349_v40 }
 0x3b0   :  { %v2433_v5 = vadd.f32 1e-05, %v2289_v16  ;;  %v2288_v47 = vmax.f32 %v2272_v31, 0.0  ;;  %v1844_v38 = vadd.f32 %v6355_v36, %v6340_v59  ;;  %v2183_v52 = vadd.f32 %v1975_v20, %v1967_v21 }
 0x3b1   :  { %5165 = vrsqrt.f32 %v2431_v34  ;;  %v1976_v34 = vmul.f32 %v6355_v36, %v6355_v36  ;;  %v2274_v16 = vsub.f32 %v2242_v58, %v2258_v60  ;;  %v2209_v31 = vadd.f32 %v1977_v18, %v1969_v63 }
 0x3b2   :  { %5167 = vrsqrt.f32 %v2433_v5  ;;  %v2432_v17 = vadd.f32 1e-05, %v2288_v47  ;;  %v1870_v19 = vadd.f32 %v6357_v54, %v6342_v41  ;;  %v1978_v11 = vmul.f32 %v6357_v54, %v6357_v54 }
 0x3b3   :  { %v2196_v51 = vadd.f32 %v1976_v34, %v1968_v26  ;;  %v1832_v45 = vadd.f32 %v1831_v28, %v6394_v30  ;;  %v1983_v5 = vmul.f32 %v6394_v30, %v6394_v30  ;;  %v2290_v47 = vmax.f32 %v2274_v16, 0.0 }
 0x3b4   :  { %5169 = vrsqrt.f32 %v2432_v17  ;;  %v2222_v21 = vadd.f32 %v1978_v11, %v1970_v32  ;;  %v1858_v20 = vadd.f32 %v1857_v15, %v6396_v7  ;;  %v1985_v60 = vmul.f32 %v6396_v7, %v6396_v7 }
 0x3b5   :  { %v2184_v63 = vadd.f32 %v2183_v52, %v1983_v5  ;;  %v1845_v58 = vadd.f32 %v1844_v38, %v6403_v49  ;;  %v1984_v18 = vmul.f32 %v6403_v49, %v6403_v49  ;;  %v1871_v26 = vadd.f32 %v1870_v19, %v6405_v4 }
 0x3b6   :  { %v2434_v17 = vadd.f32 1e-05, %v2290_v47  ;;  %v2210_v28 = vadd.f32 %v2209_v31, %v1985_v60  ;;  %v1986_v34 = vmul.f32 %v6405_v4, %v6405_v4  ;;  %v1833_v11 = vadd.f32 %v1832_v45, %v6417_v33 }
 0x3b7   :  { %v2197_v32 = vadd.f32 %v2196_v51, %v1984_v18  ;;  %v1991_v15 = vmul.f32 %v6417_v33, %v6417_v33  ;;  %v1859_v52 = vadd.f32 %v1858_v20, %v6419_v55  ;;  %v1993_v38 = vmul.f32 %v6419_v55, %v6419_v55  ;;  %v5102_v33 = vld [vmem:[#allocation6 + $0x1c0] sm:$0xff]  }
 0x3b8   :  { %5171 = vrsqrt.f32 %v2434_v17  ;;  %v2223_v16 = vadd.f32 %v2222_v21, %v1986_v34  ;;  %v1846_v19 = vadd.f32 %v1845_v58, %v6424_v39  ;;  %v1992_v31 = vmul.f32 %v6424_v39, %v6424_v39  ;;  %4868 = vmatprep.subr.bf16.mxu0 %v5102_v33 }
 0x3b9   :  { %v2185_v47 = vadd.f32 %v2184_v63, %v1991_v15  ;;  %v2211_v45 = vadd.f32 %v2210_v28, %v1993_v38  ;;  %v1872_v51 = vadd.f32 %v1871_v26, %v6426_v14  ;;  %v1994_v60 = vmul.f32 %v6426_v14, %v6426_v14 }
 0x3ba   :  { %v2198_v58 = vadd.f32 %v2197_v32, %v1992_v31  ;;  %v1834_v18 = vadd.f32 %v1833_v11, %v6450_v9  ;;  %v1999_v26 = vmul.f32 %v6450_v9, %v6450_v9  ;;  %v1860_v28 = vadd.f32 %v1859_v52, %v6452_v10 }
 0x3bb   :  { %v6597_v5 = vpop.eup %5165  ;;  %v2224_v17 = vadd.f32 %v2223_v16, %v1994_v60  ;;  %v2001_v3 = vmul.f32 %v6452_v10, %v6452_v10  ;;  %v1847_v34 = vadd.f32 %v1846_v19, %v6457_v12  ;;  %v2000_v52 = vmul.f32 %v6457_v12, %v6457_v12 }
 0x3bc   :  { %7543 = vst [vmem:[#allocation117_spill] sm:$0xff] %v6597_v5  ;;  %v2511_v20 = vmul.f32 %v6597_v5, %v2351_v57  ;;  %v2519_v21 = vmul.f32 %v6597_v5, %v2359_v23  ;;  %v6611_v63 = vpop.eup %5167  ;;  %v2186_v32 = vadd.f32 %v2185_v47, %v1999_v26  ;;  %v1873_v38 = vadd.f32 %v1872_v51, %v6459_v46 }
 0x3bd   :  { %7544 = vst [vmem:[#allocation118_spill] sm:$0xff] %v6611_v63  ;;  %v2513_v6 = vmul.f32 %v6611_v63, %v2353_v44  ;;  %v2521_v23 = vmul.f32 %v6611_v63, %v2361_v1  ;;  %v2212_v15 = vadd.f32 %v2211_v45, %v2001_v3  ;;  %v7545_v44 = vsub.f32 %v6311_v61, %v6528_v2 }
 0x3be   :  { %v2783_v57 = vmax.f32 %v2511_v20, %v2519_v21  ;;  %v6627_v11 = vpop.eup %5169  ;;  %v2199_v19 = vadd.f32 %v2198_v58, %v2000_v52  ;;  %v2002_v31 = vmul.f32 %v6459_v46, %v6459_v46  ;;  %v1835_v47 = vadd.f32 %v1834_v18, %v6463_v0  ;;  %v7546_v58 = vld [vmem:[#allocation103_spill] sm:$0xff] }
 0x3bf   :  { %v2797_v35 = vmax.f32 %v2513_v6, %v2521_v23  ;;  %v2512_v29 = vmul.f32 %v6627_v11, %v2352_v25  ;;  %v2520_v1 = vmul.f32 %v6627_v11, %v7545_v44  ;;  %v2007_v45 = vmul.f32 %v6463_v0, %v6463_v0  ;;  %v7551_v44 = vld [vmem:[#allocation107_spill] sm:$0xff] }
 0x3c0   :  { %v2784_v16 = vrot.slane %v2783_v57, 4  ;;  %v2998_v51 = vrot.slane %v6489_v62, 1  ;;  %v1861_v25 = vadd.f32 %v1860_v28, %v6465_v50  ;;  %v2225_v20 = vadd.f32 %v2224_v17, %v2002_v31 }
 0x3c1   :  { %v2790_v22 = vmax.f32 %v2512_v29, %v2520_v1  ;;  %v2187_v21 = vadd.f32 %v2186_v32, %v2007_v45  ;;  %v2009_v61 = vmul.f32 %v6465_v50, %v6465_v50  ;;  %v1848_v26 = vadd.f32 %v1847_v34, %v7546_v58  ;;  %v7550_v34 = vld [vmem:[#allocation104_spill] sm:$0xff] }
 0x3c2   :  { %v2785_v60 = vmax.f32 %v2783_v57, %v2784_v16  ;;  %v6650_v3 = vpop.eup %5171  ;;  %v2798_v18 = vrot.slane %v2797_v35, 4  ;;  %v2008_v52 = vmul.f32 %v7546_v58, %v7546_v58  ;;  %v7548_v57 = vsub.f32 %v6297_v43, %v6542_v56 }
 0x3c3   :  { %7547 = vst [vmem:[#allocation103_spill] sm:$0xff] %v6650_v3  ;;  %v2791_v23 = vrot.slane %v2790_v22, 4  ;;  %v7549_v17 = vsub.f32 %v6313_v53, %v6542_v56  ;;  %v2213_v16 = vadd.f32 %v2212_v15, %v2009_v61  ;;  %v1874_v29 = vadd.f32 %v1873_v38, %v7550_v34  ;;  %v6673_v15 = vpop.f32.mrb[79].mxu0  ;;  %v7554_v38 = vld [vmem:[#allocation113_spill] sm:$0xff] }
 0x3c4   :  { %v2786_v6 = vrot.slane %v2785_v60, 2  ;;  %v2514_v28 = vmul.f32 %v6650_v3, %v7548_v57  ;;  %v7552_v1 = vrot.slane %v7551_v44, 1  ;;  %v2200_v50 = vadd.f32 %v2199_v19, %v2008_v52  ;;  %v7553_v57 = vld [vmem:[#allocation109_spill] sm:$0xff] }
 0x3c5   :  { %v2522_v32 = vmul.f32 %v6650_v3, %v7549_v17  ;;  %v2792_v63 = vmax.f32 %v2790_v22, %v2791_v23  ;;  %v2010_v43 = vmul.f32 %v7550_v34, %v7550_v34  ;;  %v6669_v55 = vadd.f32 %v1835_v47, %v7553_v57 }
 0x3c6   :  { %v2985_v31 = vmax.f32 %v7551_v44, %v7552_v1  ;;  %v2787_v45 = vmax.f32 %v2785_v60, %v2786_v6  ;;  %v2015_v53 = vmul.f32 %v7553_v57, %v7553_v57  ;;  %v3003_v61 = vrot.slane %v7554_v38, 2  ;;  %v7555_v44 = vld [vmem:[#allocation110_spill] sm:$0xff] }
 0x3c7   :  { %v2804_v10 = vmax.f32 %v2514_v28, %v2522_v32  ;;  %v2799_v7 = vmax.f32 %v2797_v35, %v2798_v18  ;;  %v6677_v60 = vadd.f32 %v1861_v25, %v7555_v44  ;;  %v2226_v22 = vadd.f32 %v2225_v20, %v2010_v43  ;;  %v7556_v32 = vld [vmem:[#allocation111_spill] sm:$0xff]  ;;  %v7557_v25 = vld [vmem:[#allocation112_spill] sm:$0xff] }
 0x3c8   :  { %v2788_v17 = vrot.slane %v2787_v45, 1  ;;  %v6679_v6 = vadd.f32 %v2187_v21, %v2015_v53  ;;  %v2017_v47 = vmul.f32 %v7555_v44, %v7555_v44  ;;  %v3091_v23 = vpack.c.bf16 %v2985_v31, %v2985_v31  ;;  %v7558_v21 = vld [vmem:[#allocation105_spill] sm:$0xff]  ;;  %v7561_v53 = vld [vmem:[#allocation30_spill] sm:$0xff] }
 0x3c9   :  { %v2805_v19 = vrot.slane %v2804_v10, 4  ;;  %v2999_v52 = vmax.f32 %v6489_v62, %v2998_v51  ;;  %v2793_v28 = vrot.slane %v2792_v63, 2  ;;  %v6685_v1 = vadd.f32 %v1848_v26, %v7556_v32 }
 0x3ca   :  { %v6687_v48 = vadd.f32 %v2213_v16, %v2017_v47  ;;  %v2016_v35 = vmul.f32 %v7556_v32, %v7556_v32  ;;  %v6692_v20 = vadd.f32 %v1874_v29, %v7557_v25  ;;  %v7559_v18 = vrot.slane %v7558_v21, 2  ;;  %v7560_v16 = vld [vmem:[#allocation80_spill] sm:$0xff]  ;;  %v7562_v47 = vld [vmem:[#allocation34_spill] sm:$0xff] }
 0x3cb   :  { %v2806_v40 = vmax.f32 %v2804_v10, %v2805_v19  ;;  %v6697_v31 = vmax.f32 %v2787_v45, %v2788_v17  ;;  %v2800_v62 = vrot.slane %v2799_v7, 2  ;;  %v2018_v51 = vmul.f32 %v7557_v25, %v7557_v25 }
 0x3cc   :  { %v2990_v43 = vmax.f32 %v7558_v21, %v7559_v18  ;;  %v6701_v10 = vadd.f32 %v2200_v50, %v2016_v35  ;;  %v2364_v19 = vsub.f32 %v7561_v53, %v7560_v16  ;;  %v2372_v29 = vsub.f32 %v7562_v47, %v7560_v16  ;;  %v7563_v18 = vld [vmem:[#allocation38_spill] sm:$0xff]  ;;  %v7564_v50 = vld [vmem:[#allocation43_spill] sm:$0xff]  ;;  %v7565_v53 = vld [vmem:[#allocation48_spill] sm:$0xff] }
 0x3cd   :  { %v2807_v26 = vrot.slane %v2806_v40, 2  ;;  %v6707_v13 = vunpack.c.l.b16 %v3091_v23  ;;  %v3093_v5 = vpack.c.bf16 %v2999_v52, %v2999_v52  ;;  %v6710_v21 = vmax.f32 %v7554_v38, %v3003_v61  ;;  %v7567_v38 = vld [vmem:[#allocation52_spill] sm:$0xff] }
 0x3ce   :  { %v6712_v45 = vadd.f32 %v2226_v22, %v2018_v51  ;;  %v2794_v17 = vmax.f32 %v2792_v63, %v2793_v28  ;;  %v2380_v0 = vsub.f32 %v7563_v18, %v7560_v16  ;;  %v2388_v35 = vsub.f32 %v7564_v50, %v7560_v16  ;;  %v7568_v22 = vld [vmem:[#allocation12_spill] sm:$0xff]  ;;  %v7571_v28 = vld [vmem:[#allocation26_spill] sm:$0xff] }
 0x3cf   :  { %v2396_v9 = vsub.f32 %v7565_v53, %v7560_v16  ;;  %v3063_v23 = vpack.c.bf16 %v6697_v31, %v6697_v31  ;;  %v6722_v47 = vmax.f32 %v2799_v7, %v2800_v62  ;;  %v2404_v61 = vsub.f32 %v7567_v38, %v7560_v16  ;;  %v7569_v52 = vld [vmem:[#allocation24_spill] sm:$0xff]  ;;  %v7572_v50 = vld [vmem:[#allocation14_spill] sm:$0xff] }
 0x3d0   :  { %v7570_v63 = vsub.f32 %v7568_v22, %v7569_v52  ;;  %v5101_v18 = vld [vmem:[#allocation6 + $0x140] sm:$0xff]   ;;  %v2808_v30 = vmax.f32 %v2806_v40, %v2807_v26  ;;  %v7573_v37 = vsub.f32 %v7572_v50, %v7569_v52  ;;  %v7575_v7 = vsub.f32 %v7574_v24, %v7569_v52  ;;  %v7576_v62 = vld [vmem:[#allocation18_spill] sm:$0xff] }
 0x3d1   :  { %7566 = vst [vmem:[#allocation107_spill] sm:$0xff] %v6722_v47  ;;  %v7577_v16 = vsub.f32 %v7576_v62, %v7569_v52  ;;  %v6742_v22 = vunpack.c.l.b16 %v3093_v5  ;;  %v7580_v50 = vld [vmem:[#allocation22_spill] sm:$0xff]  ;;  %v7582_v24 = vld [vmem:[#allocation92_spill] sm:$0xff]  ;;  %4846 = vmatprep.subr.bf16.mxu1 %v5101_v18  ;;  %v2991_v46 = vrot.slane %v2990_v43, 1 }
 0x3d2   :  { %v2460_v51 = vmul.f32 %v7571_v28, %v7570_v63  ;;  %v2468_v53 = vmul.f32 %v7571_v28, %v7573_v37  ;;  %v2476_v31 = vmul.f32 %v7571_v28, %v7575_v7  ;;  %v7578_v63 = vld [vmem:[#allocation20_spill] sm:$0xff]  ;;  %v7581_v37 = vsub.f32 %v7580_v50, %v7569_v52 }
 0x3d3   :  { %v2484_v38 = vmul.f32 %v7571_v28, %v7577_v16  ;;  %v7579_v40 = vsub.f32 %v7578_v63, %v7569_v52  ;;  %v2524_v8 = vmul.f32 %v7582_v24, %v2364_v19  ;;  %v2795_v7 = vrot.slane %v2794_v17, 1 }
 0x3d4   :  { %v2500_v47 = vmul.f32 %v7571_v28, %v7581_v37  ;;  %v2532_v62 = vmul.f32 %v7582_v24, %v2372_v29  ;;  %v2540_v5 = vmul.f32 %v7582_v24, %v2380_v0  ;;  %v2548_v16 = vmul.f32 %v7582_v24, %v2388_v35 }
 0x3d5   :  { %v2492_v26 = vmul.f32 %v7571_v28, %v7579_v40  ;;  %v2556_v63 = vmul.f32 %v7582_v24, %v2396_v9  ;;  %v2564_v40 = vmul.f32 %v7582_v24, %v2404_v61  ;;  %v2594_v3 = vmax.f32 %v2460_v51, %v2468_v53 }
 0x3d6   :  { %v2650_v34 = vmax.f32 %v2476_v31, %v2484_v38  ;;  %v2809_v52 = vrot.slane %v2808_v30, 1  ;;  %v2818_v28 = vmax.f32 %v2524_v8, %v2532_v62  ;;  %v2874_v37 = vmax.f32 %v2540_v5, %v2548_v16 }
 0x3d7   :  { %v2706_v50 = vmax.f32 %v2492_v26, %v2500_v47  ;;  %v2595_v19 = vrot.slane %v2594_v3, 4  ;;  %v2930_v33 = vmax.f32 %v2556_v63, %v2564_v40  ;;  %v6758_v14 = vmax.f32 %v2794_v17, %v2795_v7 }
 0x3d8   :  { %v2651_v18 = vrot.slane %v2650_v34, 4  ;;  %v2819_v0 = vrot.slane %v2818_v28, 4  ;;  %v2875_v4 = vrot.slane %v2874_v37, 4  ;;  %v2992_v41 = vmax.f32 %v2990_v43, %v2991_v46 }
 0x3d9   :  { %v2707_v29 = vrot.slane %v2706_v50, 4  ;;  %v2596_v35 = vmax.f32 %v2594_v3, %v2595_v19  ;;  %v2931_v9 = vrot.slane %v2930_v33, 4  ;;  %v6760_v61 = vmax.f32 %v2808_v30, %v2809_v52  ;;  %v7584_v19 = vld [vmem:[#allocation13_spill] sm:$0xff] }
 0x3da   :  { %v2652_v54 = vmax.f32 %v2650_v34, %v2651_v18  ;;  %v2820_v53 = vmax.f32 %v2818_v28, %v2819_v0  ;;  %v2876_v47 = vmax.f32 %v2874_v37, %v2875_v4  ;;  %v3092_v26 = vpack.c.bf16 %v2992_v41, %v2992_v41  ;;  %v7583_v37 = vld [vmem:[#allocation25_spill] sm:$0xff]  ;;  %v7585_v0 = vld [vmem:[#allocation15_spill] sm:$0xff] }
 0x3db   :  { %v2708_v51 = vmax.f32 %v2706_v50, %v2707_v29  ;;  %v2597_v8 = vrot.slane %v2596_v35, 2  ;;  %v2932_v38 = vmax.f32 %v2930_v33, %v2931_v9  ;;  %v6762_v24 = vunpack.c.l.b16 %v3063_v23 }
 0x3dc   :  { %v2653_v31 = vrot.slane %v2652_v54, 2  ;;  %v2821_v7 = vrot.slane %v2820_v53, 2  ;;  %v2877_v62 = vrot.slane %v2876_v47, 2  ;;  %v3348_v23 = vunpack.c.l.b16 %v3092_v26 }
 0x3dd   :  { %v2709_v17 = vrot.slane %v2708_v51, 2  ;;  %v2598_v34 = vmax.f32 %v2596_v35, %v2597_v8  ;;  %v2933_v46 = vrot.slane %v2932_v38, 2  ;;  %v2302_v18 = vsub.f32 %v7584_v19, %v7583_v37  ;;  %v7590_v19 = vld [vmem:[#allocation81_spill] sm:$0xff] }
 0x3de   :  { %v2654_v5 = vmax.f32 %v2652_v54, %v2653_v31  ;;  %v2822_v4 = vmax.f32 %v2820_v53, %v2821_v7  ;;  %v2878_v16 = vmax.f32 %v2876_v47, %v2877_v62  ;;  %v2310_v35 = vsub.f32 %v7585_v0, %v7583_v37  ;;  %v7586_v47 = vld [vmem:[#allocation17_spill] sm:$0xff] }
 0x3df   :  { %v2710_v43 = vmax.f32 %v2708_v51, %v2709_v17  ;;  %v2599_v63 = vrot.slane %v2598_v34, 1  ;;  %v2934_v41 = vmax.f32 %v2932_v38, %v2933_v46  ;;  %v2318_v8 = vsub.f32 %v7586_v47, %v7583_v37  ;;  %v7587_v17 = vld [vmem:[#allocation19_spill] sm:$0xff]  ;;  %v7588_v46 = vld [vmem:[#allocation21_spill] sm:$0xff] }
 0x3e0   :  { %v2655_v40 = vrot.slane %v2654_v5, 1  ;;  %v2823_v50 = vrot.slane %v2822_v4, 1  ;;  %v2879_v28 = vrot.slane %v2878_v16, 1  ;;  %v2326_v7 = vsub.f32 %v7587_v17, %v7583_v37 }
 0x3e1   :  { %v2711_v52 = vrot.slane %v2710_v43, 1  ;;  %v2600_v54 = vmax.f32 %v2598_v34, %v2599_v63  ;;  %v2935_v29 = vrot.slane %v2934_v41, 1  ;;  %v2334_v63 = vsub.f32 %v7588_v46, %v7583_v37 }
 0x3e2   :  { %v2656_v33 = vmax.f32 %v2654_v5, %v2655_v40  ;;  %v2824_v51 = vmax.f32 %v2822_v4, %v2823_v50  ;;  %v2880_v53 = vmax.f32 %v2878_v16, %v2879_v28  ;;  %v7589_v16 = vld [vmem:[#allocation23_spill] sm:$0xff] }
 0x3e3   :  { %v2712_v9 = vmax.f32 %v2710_v43, %v2711_v52  ;;  %v2936_v31 = vmax.f32 %v2934_v41, %v2935_v29  ;;  %v3036_v38 = vpack.c.bf16 %v2600_v54, %v2600_v54  ;;  %v2342_v52 = vsub.f32 %v7589_v16, %v7583_v37  ;;  %v7591_v54 = vld [vmem:[#allocation31_spill] sm:$0xff] }
 0x3e4   :  { %v3044_v26 = vpack.c.bf16 %v2656_v33, %v2656_v33  ;;  %v3068_v34 = vpack.c.bf16 %v2824_v51, %v2824_v51  ;;  %v3076_v5 = vpack.c.bf16 %v2880_v53, %v2880_v53  ;;  %v2366_v33 = vsub.f32 %v7591_v54, %v7590_v19  ;;  %v7593_v53 = vld [vmem:[#allocation39_spill] sm:$0xff] }
 0x3e5   :  { %v3052_v62 = vpack.c.bf16 %v2712_v9, %v2712_v9  ;;  %v3084_v40 = vpack.c.bf16 %v2936_v31, %v2936_v31  ;;  %v3292_v43 = vunpack.c.l.b16 %v3036_v38  ;;  %v7592_v9 = vld [vmem:[#allocation35_spill] sm:$0xff]  ;;  %v2382_v47 = vsub.f32 %v7593_v53, %v7590_v19  ;;  %v7594_v38 = vld [vmem:[#allocation44_spill] sm:$0xff] }
 0x3e6   :  { %v3300_v4 = vunpack.c.l.b16 %v3044_v26  ;;  %v3324_v28 = vunpack.c.l.b16 %v3068_v34  ;;  %v3332_v41 = vunpack.c.l.b16 %v3076_v5  ;;  %v2374_v51 = vsub.f32 %v7592_v9, %v7590_v19  ;;  %v7595_v26 = vld [vmem:[#allocation49_spill] sm:$0xff]  ;;  %v7597_v5 = vld [vmem:[#allocation106_spill] sm:$0xff] }
 0x3e7   :  { %v3308_v50 = vunpack.c.l.b16 %v3052_v62  ;;  %v3340_v29 = vunpack.c.l.b16 %v3084_v40  ;;  %v2390_v37 = vsub.f32 %v7594_v38, %v7590_v19  ;;  %v2398_v17 = vsub.f32 %v7595_v26, %v7590_v19  ;;  %v7596_v62 = vld [vmem:[#allocation53_spill] sm:$0xff]  ;;  %v7598_v40 = vld [vmem:[#allocation27_spill] sm:$0xff] }
 0x3e8   :  { %v3369_v0 = vsel %vm3355_vm1, %v3300_v4, %v3292_v43  ;;  %v2406_v34 = vsub.f32 %v7596_v62, %v7590_v19  ;;  %v2462_v43 = vmul.f32 %v7598_v40, %v2302_v18  ;;  %v2470_v4 = vmul.f32 %v7598_v40, %v2310_v35  ;;  %v7599_v19 = vld [vmem:[#allocation97_spill] sm:$0xff] }
 0x3e9   :  { %v3370_v31 = vsel %vm3357_vm2, %v3308_v50, %v3369_v0  ;;  %v2478_v16 = vmul.f32 %v7598_v40, %v2318_v8  ;;  %v2486_v54 = vmul.f32 %v7598_v40, %v2326_v7  ;;  %v2494_v0 = vmul.f32 %v7598_v40, %v2334_v63 }
 0x3ea   :  { %v3371_v46 = vsel %vm3359_vm3, %v7597_v5, %v3370_v31  ;;  %v2502_v9 = vmul.f32 %v7598_v40, %v2342_v52  ;;  %v2526_v38 = vmul.f32 %v7599_v19, %v2366_v33  ;;  %v2534_v31 = vmul.f32 %v7599_v19, %v2374_v51 }
 0x3eb   :  { %v3372_v50 = vsel %vm3361_vm4, %v3324_v28, %v3371_v46  ;;  %v2542_v18 = vmul.f32 %v7599_v19, %v2382_v47  ;;  %v2550_v8 = vmul.f32 %v7599_v19, %v2390_v37  ;;  %v2558_v28 = vmul.f32 %v7599_v19, %v2398_v17 }
 0x3ec   :  { %v3373_v53 = vsel %vm3363_vm5, %v3332_v41, %v3372_v50  ;;  %v2566_v7 = vmul.f32 %v7599_v19, %v2406_v34  ;;  %v2608_v26 = vmax.f32 %v2462_v43, %v2470_v4  ;;  %v2664_v52 = vmax.f32 %v2478_v16, %v2486_v54 }
 0x3ed   :  { %v3374_v35 = vsel %vm3365_vm6, %v3340_v29, %v3373_v53  ;;  %v2720_v62 = vmax.f32 %v2494_v0, %v2502_v9  ;;  %v2832_v5 = vmax.f32 %v2526_v38, %v2534_v31  ;;  %v2888_v33 = vmax.f32 %v2542_v18, %v2550_v8  ;;  %v7600_v53 = vld [vmem:[#allocation114_spill] sm:$0xff] }
 0x3ee   :  { %v3375_v63 = vsel %vm3367_vm7, %v3348_v23, %v3374_v35  ;;  %v2944_v46 = vmax.f32 %v2558_v28, %v2566_v7  ;;  %v2609_v51 = vrot.slane %v2608_v26, 4  ;;  %v2665_v40 = vrot.slane %v2664_v52, 4 }
 0x3ef   :  { %v3419_v41 = vpack.c.b16 %v3375_v63, %v3375_v63  ;;  %v2721_v47 = vrot.slane %v2720_v62, 4  ;;  %v3005_v29 = vrot.slane %v6710_v21, 1  ;;  %v2833_v37 = vrot.slane %v2832_v5, 4 }
 0x3f0   :  { %v2889_v50 = vrot.slane %v2888_v33, 4  ;;  %v2945_v17 = vrot.slane %v2944_v46, 4  ;;  %v1837_v34 = vadd.f32 %v6669_v55, %v7600_v53  ;;  %v2610_v23 = vmax.f32 %v2608_v26, %v2609_v51 }
 0x3f1   :  { %3850 = vmatprep.mubr.bf16.mxu1 %v3419_v41  ;;  %v2666_v43 = vmax.f32 %v2664_v52, %v2665_v40  ;;  %v2722_v4 = vmax.f32 %v2720_v62, %v2721_v47  ;;  %v3006_v16 = vmax.f32 %v6710_v21, %v3005_v29  ;;  %v2834_v54 = vmax.f32 %v2832_v5, %v2833_v37 }
 0x3f2   :  { %v2890_v0 = vmax.f32 %v2888_v33, %v2889_v50  ;;  %v2946_v9 = vmax.f32 %v2944_v46, %v2945_v17  ;;  %v1838_v19 = vrot.slane %v1837_v34, 4  ;;  %v2611_v38 = vrot.slane %v2610_v23, 2 }
 0x3f3   :  { %v2667_v31 = vrot.slane %v2666_v43, 2  ;;  %v2723_v18 = vrot.slane %v2722_v4, 2  ;;  %v3094_v35 = vpack.c.bf16 %v3006_v16, %v3006_v16  ;;  %v2835_v8 = vrot.slane %v2834_v54, 2 }
 0x3f4   :  { %v2891_v28 = vrot.slane %v2890_v0, 2  ;;  %v2947_v7 = vrot.slane %v2946_v9, 2  ;;  %v1839_v63 = vadd.f32 %v1838_v19, %v1837_v34  ;;  %v2612_v41 = vmax.f32 %v2610_v23, %v2611_v38 }
 0x3f5   :  { %v2668_v30 = vmax.f32 %v2666_v43, %v2667_v31  ;;  %v2724_v55 = vmax.f32 %v2722_v4, %v2723_v18  ;;  %v3350_v26 = vunpack.c.l.b16 %v3094_v35  ;;  %v2836_v52 = vmax.f32 %v2834_v54, %v2835_v8 }
 0x3f6   :  { %v2892_v62 = vmax.f32 %v2890_v0, %v2891_v28  ;;  %v2948_v51 = vmax.f32 %v2946_v9, %v2947_v7  ;;  %v1840_v21 = vrot.slane %v1839_v63, 2  ;;  %v2613_v5 = vrot.slane %v2612_v41, 1 }
 0x3f7   :  { %v2669_v33 = vrot.slane %v2668_v30, 1  ;;  %v2725_v46 = vrot.slane %v2724_v55, 1  ;;  %v2023_v40 = vmul.f32 %v7600_v53, %v7600_v53  ;;  %v2837_v47 = vrot.slane %v2836_v52, 1 }
 0x3f8   :  { %v2893_v29 = vrot.slane %v2892_v62, 1  ;;  %v2949_v37 = vrot.slane %v2948_v51, 1  ;;  %v1841_v50 = vadd.f32 %v1840_v21, %v1839_v63  ;;  %v2614_v17 = vmax.f32 %v2612_v41, %v2613_v5 }
 0x3f9   :  { %v2670_v34 = vmax.f32 %v2668_v30, %v2669_v33  ;;  %v2726_v23 = vmax.f32 %v2724_v55, %v2725_v46  ;;  %v2189_v43 = vadd.f32 %v6679_v6, %v2023_v40  ;;  %v2838_v4 = vmax.f32 %v2836_v52, %v2837_v47 }
 0x3fa   :  { %v2894_v16 = vmax.f32 %v2892_v62, %v2893_v29  ;;  %v2950_v54 = vmax.f32 %v2948_v51, %v2949_v37  ;;  %v1842_v0 = vrot.slane %v1841_v50, 1  ;;  %v3038_v9 = vpack.c.bf16 %v2614_v17, %v2614_v17  ;;  %v7601_v29 = vld [vmem:[#allocation108_spill] sm:$0xff] }
 0x3fb   :  { %v3046_v19 = vpack.c.bf16 %v2670_v34, %v2670_v34  ;;  %v3054_v38 = vpack.c.bf16 %v2726_v23, %v2726_v23  ;;  %v2190_v31 = vrot.slane %v2189_v43, 4  ;;  %v3070_v18 = vpack.c.bf16 %v2838_v4, %v2838_v4  ;;  %v7602_v34 = vld [vmem:[#allocation72_spill] sm:$0xff] }
 0x3fc   :  { %v3078_v35 = vpack.c.bf16 %v2894_v16, %v2894_v16  ;;  %v3086_v8 = vpack.c.bf16 %v2950_v54, %v2950_v54  ;;  %v1843_v28 = vadd.f32 %v1842_v0, %v1841_v50  ;;  %v3294_v7 = vunpack.c.l.b16 %v3038_v9  ;;  %v7603_v23 = vld [vmem:[#allocation28_spill] sm:$0xff] }
 0x3fd   :  { %v3302_v3 = vunpack.c.l.b16 %v3046_v19  ;;  %v3310_v63 = vunpack.c.l.b16 %v3054_v38  ;;  %v2191_v41 = vadd.f32 %v2190_v31, %v2189_v43  ;;  %v3326_v30 = vunpack.c.l.b16 %v3070_v18  ;;  %v7604_v4 = vld [vmem:[#allocation32_spill] sm:$0xff] }
 0x3fe   :  { %v3334_v55 = vunpack.c.l.b16 %v3078_v35  ;;  %v3342_v21 = vunpack.c.l.b16 %v3086_v8  ;;  %v6819_v6 = vmul.f32 0.015625, %v1843_v28  ;;  %v1863_v51 = vadd.f32 %v6677_v60, %v6516_v42  ;;  %v7605_v54 = vld [vmem:[#allocation36_spill] sm:$0xff]  ;;  %v7607_v8 = vld [vmem:[#allocation46_spill] sm:$0xff] }
 0x3ff   :  { %v3383_v52 = vsel %vm3355_vm1, %v3302_v3, %v3294_v7  ;;  %v2192_v62 = vrot.slane %v2191_v41, 2  ;;  %v2025_v5 = vmul.f32 %v6516_v42, %v6516_v42  ;;  %v2363_v43 = vsub.f32 %v7603_v23, %v7602_v34  ;;  %v7608_v7 = vld [vmem:[#allocation50_spill] sm:$0xff]  ;;  %v7610_v23 = vld [vmem:[#allocation75_spill] sm:$0xff] }
 0x400   :  { %v3384_v33 = vsel %vm3357_vm2, %v3310_v63, %v3383_v52  ;;  %v2263_v46 = vmul.f32 %v6819_v6, %v6819_v6  ;;  %v2415_v40 = vsub.f32 %v7553_v57, %v6819_v6  ;;  %v2423_v47 = vsub.f32 %v7600_v53, %v6819_v6 }
 0x401   :  { %v3385_v3 = vsel %vm3359_vm3, %v7601_v29, %v3384_v33  ;;  %v2193_v37 = vadd.f32 %v2192_v62, %v2191_v41  ;;  %v1864_v50 = vrot.slane %v1863_v51, 4  ;;  %v2215_v60 = vadd.f32 %v6687_v48, %v2025_v5  ;;  %v7606_v48 = vld [vmem:[#allocation41_spill] sm:$0xff]  ;;  %v7609_v5 = vld [vmem:[#allocation88_spill] sm:$0xff] }
 0x402   :  { %v3386_v17 = vsel %vm3361_vm4, %v3326_v30, %v3385_v3  ;;  %v2371_v16 = vsub.f32 %v7604_v4, %v7602_v34  ;;  %v2379_v0 = vsub.f32 %v7605_v54, %v7602_v34  ;;  %v2387_v35 = vsub.f32 %v7606_v48, %v7602_v34 }
 0x403   :  { %v3387_v9 = vsel %vm3363_vm5, %v3334_v55, %v3386_v17  ;;  %v2194_v19 = vrot.slane %v2193_v37, 1  ;;  %v1865_v38 = vadd.f32 %v1864_v50, %v1863_v51  ;;  %v2216_v31 = vrot.slane %v2215_v60, 4 }
 0x404   :  { %v3388_v18 = vsel %vm3365_vm6, %v3342_v21, %v3387_v9  ;;  %v2395_v28 = vsub.f32 %v7607_v8, %v7602_v34  ;;  %v2403_v63 = vsub.f32 %v7608_v7, %v7602_v34  ;;  %v2523_v51 = vmul.f32 %v7609_v5, %v2363_v43 }
 0x405   :  { %v3389_v41 = vsel %vm3367_vm7, %v3350_v26, %v3388_v18  ;;  %v2195_v30 = vadd.f32 %v2194_v19, %v2193_v37  ;;  %v1866_v52 = vrot.slane %v1865_v38, 2  ;;  %v2217_v62 = vadd.f32 %v2216_v31, %v2215_v60  ;;  %v7611_v60 = vld [vmem:[#allocation29_spill] sm:$0xff] }
 0x406   :  { %v3421_v55 = vpack.c.b16 %v3389_v41, %v3389_v41  ;;  %v2531_v33 = vmul.f32 %v7609_v5, %v2371_v16  ;;  %v2539_v21 = vmul.f32 %v7609_v5, %v2379_v0  ;;  %v2547_v17 = vmul.f32 %v7609_v5, %v2387_v35  ;;  %v7613_v18 = vld [vmem:[#allocation37_spill] sm:$0xff] }
 0x407   :  { %v2247_v29 = vmul.f32 0.015625, %v2195_v30  ;;  %v1867_v3 = vadd.f32 %v1866_v52, %v1865_v38  ;;  %v2218_v50 = vrot.slane %v2217_v62, 2  ;;  %v2555_v34 = vmul.f32 %v7609_v5, %v2395_v28  ;;  %v7612_v38 = vld [vmem:[#allocation33_spill] sm:$0xff]  ;;  %v7614_v30 = vld [vmem:[#allocation42_spill] sm:$0xff]  ;;  %v7615_v52 = vld [vmem:[#allocation47_spill] sm:$0xff] }
 0x408   :  { %3890 = vmatprep.mubr.bf16.mxu0 %v3421_v55  ;;  %v2563_v26 = vmul.f32 %v7609_v5, %v2403_v63  ;;  %v2811_v37 = vmax.f32 %v2523_v51, %v2531_v33  ;;  %v2365_v4 = vsub.f32 %v7611_v60, %v7610_v23  ;;  %v2867_v16 = vmax.f32 %v2539_v21, %v2547_v17  ;;  %v7617_v17 = vld [vmem:[#allocation89_spill] sm:$0xff] }
 0x409   :  { %v2279_v54 = vsub.f32 %v2247_v29, %v2263_v46  ;;  %v1868_v43 = vrot.slane %v1867_v3, 1  ;;  %v2219_v9 = vadd.f32 %v2218_v50, %v2217_v62  ;;  %v2373_v31 = vsub.f32 %v7612_v38, %v7610_v23  ;;  %v7616_v50 = vld [vmem:[#allocation51_spill] sm:$0xff] }
 0x40a   :  { %v2812_v19 = vrot.slane %v2811_v37, 4  ;;  %v2923_v0 = vmax.f32 %v2555_v34, %v2563_v26  ;;  %v2381_v48 = vsub.f32 %v7613_v18, %v7610_v23  ;;  %v2868_v7 = vrot.slane %v2867_v16, 4 }
 0x40b   :  { %v2295_v35 = vmax.f32 %v2279_v54, 0.0  ;;  %v1869_v8 = vadd.f32 %v1868_v43, %v1867_v3  ;;  %v2220_v28 = vrot.slane %v2219_v9, 1  ;;  %v2389_v46 = vsub.f32 %v7614_v30, %v7610_v23 }
 0x40c   :  { %v2813_v63 = vmax.f32 %v2811_v37, %v2812_v19  ;;  %v2924_v41 = vrot.slane %v2923_v0, 4  ;;  %v2397_v62 = vsub.f32 %v7615_v52, %v7610_v23  ;;  %v2869_v33 = vmax.f32 %v2867_v16, %v2868_v7 }
 0x40d   :  { %v2439_v55 = vadd.f32 1e-05, %v2295_v35  ;;  %v6868_v5 = vmul.f32 0.015625, %v1869_v8  ;;  %v2221_v51 = vadd.f32 %v2220_v28, %v2219_v9  ;;  %v2405_v3 = vsub.f32 %v7616_v50, %v7610_v23 }
 0x40e   :  { %v2814_v21 = vrot.slane %v2813_v63, 2  ;;  %v2925_v29 = vmax.f32 %v2923_v0, %v2924_v41  ;;  %v2525_v34 = vmul.f32 %v7617_v17, %v2365_v4  ;;  %v2870_v9 = vrot.slane %v2869_v33, 2 }
 0x40f   :  { %5173 = vrsqrt.f32 %v2439_v55  ;;  %v2249_v26 = vmul.f32 0.015625, %v2221_v51  ;;  %v2265_v37 = vmul.f32 %v6868_v5, %v6868_v5  ;;  %v2417_v60 = vsub.f32 %v7555_v44, %v6868_v5 }
 0x410   :  { %v2425_v54 = vsub.f32 %v6516_v42, %v6868_v5  ;;  %v2815_v43 = vmax.f32 %v2813_v63, %v2814_v21  ;;  %v2926_v16 = vrot.slane %v2925_v29, 2  ;;  %v2533_v0 = vmul.f32 %v7617_v17, %v2373_v31 }
 0x411   :  { %v2281_v19 = vsub.f32 %v2249_v26, %v2265_v37  ;;  %v2541_v23 = vmul.f32 %v7617_v17, %v2381_v48  ;;  %v2549_v4 = vmul.f32 %v7617_v17, %v2389_v46  ;;  %v2871_v18 = vmax.f32 %v2869_v33, %v2870_v9 }
 0x412   :  { %v2816_v38 = vrot.slane %v2815_v43, 1  ;;  %v2927_v35 = vmax.f32 %v2925_v29, %v2926_v16  ;;  %v2557_v8 = vmul.f32 %v7617_v17, %v2397_v62  ;;  %v2565_v7 = vmul.f32 %v7617_v17, %v2405_v3 }
 0x413   :  { %v2297_v28 = vmax.f32 %v2281_v19, 0.0  ;;  %v2825_v41 = vmax.f32 %v2525_v34, %v2533_v0  ;;  %v2881_v30 = vmax.f32 %v2541_v23, %v2549_v4  ;;  %v2872_v52 = vrot.slane %v2871_v18, 1 }
 0x414   :  { %v2817_v63 = vmax.f32 %v2815_v43, %v2816_v38  ;;  %v2928_v55 = vrot.slane %v2927_v35, 1  ;;  %v1850_v31 = vadd.f32 %v6685_v1, %v6546_v27  ;;  %v2937_v46 = vmax.f32 %v2557_v8, %v2565_v7  ;;  %v7618_v8 = vld [vmem:[#allocation40_spill] sm:$0xff] }
 0x415   :  { %v2441_v51 = vadd.f32 1e-05, %v2297_v28  ;;  %v2826_v48 = vrot.slane %v2825_v41, 4  ;;  %v2882_v21 = vrot.slane %v2881_v30, 4  ;;  %v2873_v50 = vmax.f32 %v2871_v18, %v2872_v52 }
 0x416   :  { %v2929_v33 = vmax.f32 %v2927_v35, %v2928_v55  ;;  %v3067_v29 = vpack.c.bf16 %v2817_v63, %v2817_v63  ;;  %v1851_v26 = vrot.slane %v1850_v31, 4  ;;  %v2938_v3 = vrot.slane %v2937_v46, 4 }
 0x417   :  { %5175 = vrsqrt.f32 %v2441_v51  ;;  %v2827_v62 = vmax.f32 %v2825_v41, %v2826_v48  ;;  %v2883_v37 = vmax.f32 %v2881_v30, %v2882_v21  ;;  %v3075_v17 = vpack.c.bf16 %v2873_v50, %v2873_v50  ;;  %v5103_v50 = vld [vmem:[#allocation6 + $0x100] sm:$0xff]  }
 0x418   :  { %v3083_v34 = vpack.c.bf16 %v2929_v33, %v2929_v33  ;;  %v3323_v43 = vunpack.c.l.b16 %v3067_v29  ;;  %v1852_v9 = vadd.f32 %v1851_v26, %v1850_v31  ;;  %v2939_v0 = vmax.f32 %v2937_v46, %v2938_v3 }
 0x419   :  { %v6886_v16 = vpop.eup %5173  ;;  %v2828_v19 = vrot.slane %v2827_v62, 2  ;;  %v2884_v1 = vrot.slane %v2883_v37, 2  ;;  %v2024_v23 = vmul.f32 %v6546_v27, %v6546_v27  ;;  %v3331_v18 = vunpack.c.l.b16 %v3075_v17 }
 0x41a   :  { %v2575_v4 = vmul.f32 %v6886_v16, %v2415_v40  ;;  %v2583_v38 = vmul.f32 %v6886_v16, %v2423_v47  ;;  %v3339_v35 = vunpack.c.l.b16 %v3083_v34  ;;  %v3362_v28 = vsel %vm3361_vm4, %v3323_v43, %v7618_v8 }
 0x41b   :  { %v2829_v7 = vmax.f32 %v2827_v62, %v2828_v19  ;;  %v2885_v41 = vmax.f32 %v2883_v37, %v2884_v1  ;;  %v2940_v30 = vrot.slane %v2939_v0, 2  ;;  %v3364_v52 = vsel %vm3363_vm5, %v3331_v18, %v3362_v28  ;;  %v5105_v37 = vld [vmem:[#allocation6 + $0x148] sm:$0xff]  }
 0x41c   :  { %v3007_v63 = vmax.f32 %v2575_v4, %v2583_v38  ;;  %v1853_v55 = vrot.slane %v1852_v9, 2  ;;  %v2202_v57 = vadd.f32 %v6701_v10, %v2024_v23  ;;  %v3366_v40 = vsel %vm3365_vm6, %v3339_v35, %v3364_v52  ;;  %v5107_v38 = vld [vmem:[#allocation6 + $0x108] sm:$0xff]  }
 0x41d   :  { %v2830_v31 = vrot.slane %v2829_v7, 1  ;;  %v2886_v53 = vrot.slane %v2885_v41, 1  ;;  %v2941_v51 = vmax.f32 %v2939_v0, %v2940_v30  ;;  %v3368_v48 = vsel %vm3367_vm7, %v6707_v13, %v3366_v40 }
 0x41e   :  { %v3008_v47 = vrot.slane %v3007_v63, 4  ;;  %v1854_v21 = vadd.f32 %v1853_v55, %v1852_v9  ;;  %v2203_v46 = vrot.slane %v2202_v57, 4  ;;  %v3418_v33 = vpack.c.b16 %v3368_v48, %v3368_v48 }
 0x41f   :  { %v2831_v29 = vmax.f32 %v2829_v7, %v2830_v31  ;;  %v2887_v26 = vmax.f32 %v2885_v41, %v2886_v53  ;;  %v2942_v62 = vrot.slane %v2941_v51, 1  ;;  %v1876_v34 = vadd.f32 %v6692_v20, %v6673_v15  ;;  %v5109_v7 = vld [vmem:[#allocation6 + $0x150] sm:$0xff]  }
 0x420   :  { %v3009_v3 = vmax.f32 %v3007_v63, %v3008_v47  ;;  %v1855_v17 = vrot.slane %v1854_v21, 1  ;;  %v2204_v10 = vadd.f32 %v2203_v46, %v2202_v57  ;;  %3851 = vmatmul.mubr.bf16.vlgmr.msra.gmra.mrb[64].mxu1 %v3418_v33  ;;  %v2026_v9 = vmul.f32 %v6673_v15, %v6673_v15  ;;  %v5111_v47 = vld [vmem:[#allocation6 + $0x110] sm:$0xff]  }
 0x421   :  { %v6907_v43 = vpop.eup %5175  ;;  %v2943_v19 = vmax.f32 %v2941_v51, %v2942_v62  ;;  %v3069_v1 = vpack.c.bf16 %v2831_v29, %v2831_v29  ;;  %v3077_v13 = vpack.c.bf16 %v2887_v26, %v2887_v26  ;;  %4847 = vmatpush3.bf16.msra.mxu1 %v5103_v50  ;;  %v7619_v41 = vpack.c.bf16 %v6758_v14, %v6758_v14  ;;  %v5104_v62 = vld [vmem:[#allocation6 + $0x180] sm:$0xff]  }
 0x422   :  { %v3010_v0 = vrot.slane %v3009_v3, 2  ;;  %v2577_v23 = vmul.f32 %v6907_v43, %v2417_v60  ;;  %v2585_v20 = vmul.f32 %v6907_v43, %v2425_v54  ;;  %v1856_v4 = vadd.f32 %v1855_v17, %v1854_v21  ;;  %4848 = vmatprep.subr.bf16.mxu1 %v5105_v37  ;;  %v7620_v54 = vld [vmem:[#allocation45_spill] sm:$0xff] }
 0x423   :  { %v3085_v18 = vpack.c.bf16 %v2943_v19, %v2943_v19  ;;  %v3325_v35 = vunpack.c.l.b16 %v3069_v1  ;;  %v3333_v8 = vunpack.c.l.b16 %v3077_v13  ;;  %v2205_v28 = vrot.slane %v2204_v10, 2  ;;  %v5106_v17 = vld [vmem:[#allocation6 + $0x1c8] sm:$0xff]   ;;  %v7623_v1 = vld [vmem:[#allocation60_spill] sm:$0xff] }
 0x424   :  { %v6922_v44 = vunpack.c.l.b16 %v7619_v41  ;;  %v3021_v60 = vmax.f32 %v2577_v23, %v2585_v20  ;;  %v6924_v30 = vmul.f32 0.015625, %v1856_v4  ;;  %v1877_v42 = vrot.slane %v1876_v34, 4  ;;  %v7624_v20 = vld [vmem:[#allocation64_spill] sm:$0xff] }
 0x425   :  { %v3341_v63 = vunpack.c.l.b16 %v3085_v18  ;;  %v3379_v52 = vsel %vm3361_vm4, %v3325_v35, %v7620_v54  ;;  %v2206_v55 = vadd.f32 %v2205_v28, %v2204_v10  ;;  %v2228_v57 = vadd.f32 %v6712_v45, %v2026_v9  ;;  %4849 = vmatpush3.bf16.msra.mxu1 %v5107_v38  ;;  %v7622_v10 = vld [vmem:[#allocation56_spill] sm:$0xff]  ;;  %v5108_v54 = vld [vmem:[#allocation6 + $0x188] sm:$0xff]  }
 0x426   :  { %v7621_v40 = vpack.c.bf16 %v6760_v61, %v6760_v61  ;;  %v6934_v53 = vmax.f32 %v3009_v3, %v3010_v0  ;;  %v3022_v14 = vrot.slane %v3021_v60, 4  ;;  %v3380_v51 = vsel %vm3363_vm5, %v3333_v8, %v3379_v52  ;;  %4850 = vmatprep.subr.bf16.mxu1 %v5109_v7  ;;  %v5113_v61 = vld [vmem:[#allocation6 + $0x158] sm:$0xff]   ;;  %v5117_v38 = vld [vmem:[#allocation6 + $0x160] sm:$0xff]   ;;  %v7626_v8 = vld [vmem:[#allocation73_spill] sm:$0xff] }
 0x427   :  { %v3381_v48 = vsel %vm3365_vm6, %v3341_v63, %v3380_v51  ;;  %v2207_v21 = vrot.slane %v2206_v55, 1  ;;  %v2416_v46 = vsub.f32 %v7556_v32, %v6924_v30  ;;  %v2424_v45 = vsub.f32 %v6546_v27, %v6924_v30  ;;  %v7625_v18 = vld [vmem:[#allocation68_spill] sm:$0xff]  ;;  %v7627_v7 = vld [vmem:[#allocation78_spill] sm:$0xff] }
 0x428   :  { %v6932_v31 = vunpack.c.l.b16 %v7621_v40  ;;  %v3382_v50 = vsel %vm3367_vm7, %v6742_v22, %v3381_v48  ;;  %v2264_v33 = vmul.f32 %v6924_v30, %v6924_v30  ;;  %v1878_v29 = vadd.f32 %v1877_v42, %v1876_v34  ;;  %v5115_v22 = vld [vmem:[#allocation6 + $0x118] sm:$0xff]   ;;  %v7639_v51 = vld [vmem:[#allocation104_spill] sm:$0xff] }
 0x429   :  { %v2229_v26 = vrot.slane %v2228_v57, 4  ;;  %v3420_v37 = vpack.c.b16 %v3382_v50, %v3382_v50  ;;  %v2208_v3 = vadd.f32 %v2207_v21, %v2206_v55  ;;  %v2304_v19 = vsub.f32 %v7622_v10, %v6528_v2  ;;  %4851 = vmatpush3.bf16.msra.mxu1 %v5111_v47  ;;  %v5119_v21 = vld [vmem:[#allocation6 + $0x120] sm:$0xff]  }
 0x42a   :  { %v2312_v13 = vsub.f32 %v7623_v1, %v6528_v2  ;;  %v6950_v9 = vmax.f32 %v3021_v60, %v3022_v14  ;;  %v1879_v0 = vrot.slane %v1878_v29, 2  ;;  %v2320_v34 = vsub.f32 %v7624_v20, %v6528_v2  ;;  %4852 = vmatprep.subr.bf16.mxu1 %v5113_v61 }
 0x42b   :  { %v2230_v23 = vadd.f32 %v2229_v26, %v2228_v57  ;;  %3891 = vmatmul.mubr.bf16.vlgmr.msra.gmra.mrb[80].mxu0 %v3420_v37  ;;  %v2248_v4 = vmul.f32 0.015625, %v2208_v3  ;;  %v2328_v35 = vsub.f32 %v7625_v18, %v6528_v2  ;;  %v2336_v28 = vsub.f32 %v7626_v8, %v6528_v2  ;;  %v5110_v57 = vld [vmem:[#allocation6 + $0x1d0] sm:$0xff]   ;;  %v7628_v8 = vld [vmem:[#allocation57_spill] sm:$0xff] }
 0x42c   :  { %v2344_v41 = vsub.f32 %v7627_v7, %v6528_v2  ;;  %v1880_v42 = vadd.f32 %v1879_v0, %v1878_v29  ;;  %4869 = vmatpush3.bf16.msra.mxu0 %v5104_v62  ;;  %v2368_v52 = vsub.f32 %v6340_v59, %v6924_v30  ;;  %v2376_v40 = vsub.f32 %v6355_v36, %v6924_v30  ;;  %v5128_v36 = vld [vmem:[#allocation6 + $0x1b0] sm:$0xff]  }
 0x42d   :  { %v2231_v63 = vrot.slane %v2230_v23, 2  ;;  %v2280_v55 = vsub.f32 %v2248_v4, %v2264_v33  ;;  %4870 = vmatprep.subr.bf16.mxu0 %v5106_v17  ;;  %v2384_v14 = vsub.f32 %v6403_v49, %v6924_v30  ;;  %v2392_v2 = vsub.f32 %v6424_v39, %v6924_v30  ;;  %4853 = vmatpush3.bf16.msra.mxu1 %v5115_v22  ;;  %v5121_v33 = vld [vmem:[#allocation6 + $0x168] sm:$0xff]   ;;  %v5112_v17 = vld [vmem:[#allocation6 + $0x190] sm:$0xff]   ;;  %v5130_v49 = vld [vmem:[#allocation6 + $0x1f8] sm:$0xff]  }
 0x42e   :  { %v1881_v47 = vrot.slane %v1880_v42, 1  ;;  %v2400_v61 = vsub.f32 %v6457_v12, %v6924_v30  ;;  %4854 = vmatprep.subr.bf16.mxu1 %v5117_v38  ;;  %v2464_v26 = vmul.f32 %v6627_v11, %v2304_v19  ;;  %v2472_v62 = vmul.f32 %v6627_v11, %v2312_v13  ;;  %v5123_v13 = vld [vmem:[#allocation6 + $0x128] sm:$0xff]  }
 0x42f   :  { %v2232_v48 = vadd.f32 %v2231_v63, %v2230_v23  ;;  %v2296_v50 = vmax.f32 %v2280_v55, 0.0  ;;  %v2480_v10 = vmul.f32 %v6627_v11, %v2320_v34  ;;  %v2488_v1 = vmul.f32 %v6627_v11, %v2328_v35  ;;  %v5114_v23 = vld [vmem:[#allocation6 + $0x1d8] sm:$0xff]   ;;  %v5125_v34 = vld [vmem:[#allocation6 + $0x170] sm:$0xff]   ;;  %v7629_v63 = vld [vmem:[#allocation61_spill] sm:$0xff] }
 0x430   :  { %v1882_v37 = vadd.f32 %v1881_v47, %v1880_v42  ;;  %4871 = vmatpush3.bf16.msra.mxu0 %v5108_v54  ;;  %v2496_v22 = vmul.f32 %v6627_v11, %v2336_v28  ;;  %v2504_v20 = vmul.f32 %v6627_v11, %v2344_v41  ;;  %v2622_v4 = vmax.f32 %v2464_v26, %v2472_v62  ;;  %v5118_v47 = vld [vmem:[#allocation6 + $0x1e0] sm:$0xff]  }
 0x431   :  { %v2233_v3 = vrot.slane %v2232_v48, 1  ;;  %v2440_v0 = vadd.f32 1e-05, %v2296_v50  ;;  %4872 = vmatprep.subr.bf16.mxu0 %v5110_v57  ;;  %4855 = vmatpush3.bf16.msra.mxu1 %v5119_v21  ;;  %v2678_v18 = vmax.f32 %v2480_v10, %v2488_v1  ;;  %v2306_v7 = vsub.f32 %v7628_v8, %v6542_v56  ;;  %v5116_v57 = vld [vmem:[#allocation6 + $0x198] sm:$0xff]   ;;  %v7632_v1 = vld [vmem:[#allocation74_spill] sm:$0xff]  ;;  %v7634_v8 = vld [vmem:[#allocation84_spill] sm:$0xff] }
 0x432   :  { %v6980_v38 = vmul.f32 0.015625, %v1882_v37  ;;  %4856 = vmatprep.subr.bf16.mxu1 %v5121_v33  ;;  %v2623_v35 = vrot.slane %v2622_v4, 4  ;;  %v2734_v42 = vmax.f32 %v2496_v22, %v2504_v20  ;;  %v2314_v28 = vsub.f32 %v7629_v63, %v6542_v56  ;;  %v7630_v33 = vld [vmem:[#allocation65_spill] sm:$0xff]  ;;  %v5127_v37 = vld [vmem:[#allocation6 + $0x130] sm:$0xff]  }
 0x433   :  { %v2234_v19 = vadd.f32 %v2233_v3, %v2232_v48  ;;  %5177 = vrsqrt.f32 %v2440_v0  ;;  %v2679_v21 = vrot.slane %v2678_v18, 4  ;;  %v2322_v26 = vsub.f32 %v7630_v33, %v6542_v56  ;;  %v7631_v3 = vld [vmem:[#allocation69_spill] sm:$0xff] }
 0x434   :  { %v2266_v11 = vmul.f32 %v6980_v38, %v6980_v38  ;;  %4873 = vmatpush3.bf16.msra.mxu0 %v5112_v17  ;;  %v2624_v48 = vmax.f32 %v2622_v4, %v2623_v35  ;;  %v2735_v50 = vrot.slane %v2734_v42, 4  ;;  %v2330_v10 = vsub.f32 %v7631_v3, %v6542_v56  ;;  %v7633_v17 = vld [vmem:[#allocation79_spill] sm:$0xff]  ;;  %v7636_v33 = vld [vmem:[#allocation93_spill] sm:$0xff] }
 0x435   :  { %v2250_v54 = vmul.f32 0.015625, %v2234_v19  ;;  %4874 = vmatprep.subr.bf16.mxu0 %v5114_v23  ;;  %4857 = vmatpush3.bf16.msra.mxu1 %v5123_v13  ;;  %v2338_v0 = vsub.f32 %v7632_v1, %v6542_v56  ;;  %v2346_v22 = vsub.f32 %v7633_v17, %v6542_v56  ;;  %v5129_v23 = vld [vmem:[#allocation6 + $0x178] sm:$0xff]   ;;  %v2680_v4 = vmax.f32 %v2678_v18, %v2679_v21  ;;  %v5120_v13 = vld [vmem:[#allocation6 + $0x1a0] sm:$0xff]  }
 0x436   :  { %4858 = vmatprep.subr.bf16.mxu1 %v5125_v34  ;;  %v2625_v20 = vrot.slane %v2624_v48, 2  ;;  %v2736_v19 = vmax.f32 %v2734_v42, %v2735_v50  ;;  %v7637_v1 = vld [vmem:[#allocation96_spill] sm:$0xff]  ;;  %v5122_v34 = vld [vmem:[#allocation6 + $0x1e8] sm:$0xff]   ;;  %v7641_v59 = vsub.f32 %v7546_v58, %v6924_v30 }
 0x437   :  { %v2282_v62 = vsub.f32 %v2250_v54, %v2266_v11  ;;  %v7635_v54 = vld [vmem:[#allocation87_spill] sm:$0xff]  ;;  %v2681_v18 = vrot.slane %v2680_v4, 2  ;;  %v7638_v21 = vld [vmem:[#allocation100_spill] sm:$0xff] }
 0x438   :  { %4875 = vmatpush3.bf16.msra.mxu0 %v5116_v57  ;;  %v2626_v17 = vmax.f32 %v2624_v48, %v2625_v20  ;;  %v2737_v42 = vrot.slane %v2736_v19, 2  ;;  %v5131_v57 = vld [vmem:[#allocation6 + $0x138] sm:$0xff]   ;;  %v5124_v20 = vld [vmem:[#allocation6 + $0x1a8] sm:$0xff]  }
 0x439   :  { %v2298_v63 = vmax.f32 %v2282_v62, 0.0  ;;  %4876 = vmatprep.subr.bf16.mxu0 %v5118_v47  ;;  %4859 = vmatpush3.bf16.msra.mxu1 %v5127_v37  ;;  %v7640_v11 = vld [vmem:[#allocation103_spill] sm:$0xff]  ;;  %v2682_v47 = vmax.f32 %v2680_v4, %v2681_v18 }
 0x43a   :  { %v2466_v35 = vmul.f32 %v7640_v11, %v2306_v7  ;;  %v2474_v3 = vmul.f32 %v7640_v11, %v2314_v28  ;;  %4860 = vmatprep.subr.bf16.mxu1 %v5129_v23  ;;  %v2627_v56 = vrot.slane %v2626_v17, 1  ;;  %v2738_v55 = vmax.f32 %v2736_v19, %v2737_v42  ;;  %v5126_v7 = vld [vmem:[#allocation6 + $0x1f0] sm:$0xff]  }
 0x43b   :  { %v2442_v62 = vadd.f32 1e-05, %v2298_v63  ;;  %v2482_v48 = vmul.f32 %v7640_v11, %v2322_v26  ;;  %v2490_v63 = vmul.f32 %v7640_v11, %v2330_v10  ;;  %v2498_v37 = vmul.f32 %v7640_v11, %v2338_v0 }
 0x43c   :  { %4877 = vmatpush3.bf16.msra.mxu0 %v5120_v13  ;;  %v2506_v50 = vmul.f32 %v7640_v11, %v2346_v22  ;;  %v2628_v41 = vmax.f32 %v2626_v17, %v2627_v56  ;;  %v2683_v28 = vrot.slane %v2682_v47, 1  ;;  %v2739_v23 = vrot.slane %v2738_v55, 1 }
 0x43d   :  { %5179 = vrsqrt.f32 %v2442_v62  ;;  %v5178_v60 = vpop.eup %5177  ;;  %4878 = vmatprep.subr.bf16.mxu0 %v5122_v34  ;;  %v2636_v29 = vmax.f32 %v2466_v35, %v2474_v3  ;;  %4861 = vmatpush3.bf16.msra.mxu1 %v5131_v57  ;;  %v5132_v34 = vld [vmem:[#allocation6 + $0x1b8] sm:$0xff]  }
 0x43e   :  { %v2576_v26 = vmul.f32 %v5178_v60, %v2416_v46  ;;  %v2584_v4 = vmul.f32 %v5178_v60, %v2424_v45  ;;  %v2528_v10 = vmul.f32 %v5178_v60, %v2368_v52  ;;  %v2536_v0 = vmul.f32 %v5178_v60, %v2376_v40 }
 0x43f   :  { %v2544_v22 = vmul.f32 %v5178_v60, %v2384_v14  ;;  %v2552_v32 = vmul.f32 %v5178_v60, %v2392_v2  ;;  %v2560_v27 = vmul.f32 %v5178_v60, %v2400_v61  ;;  %v2568_v46 = vmul.f32 %v5178_v60, %v7641_v59 }
 0x440   :  { %v3014_v45 = vmax.f32 %v2576_v26, %v2584_v4  ;;  %4879 = vmatpush3.bf16.msra.mxu0 %v5124_v20  ;;  %v2684_v52 = vmax.f32 %v2682_v47, %v2683_v28  ;;  %v2740_v40 = vmax.f32 %v2738_v55, %v2739_v23  ;;  %v2846_v19 = vmax.f32 %v2528_v10, %v2536_v0 }
 0x441   :  { %4880 = vmatprep.subr.bf16.mxu0 %v5126_v7  ;;  %v2902_v14 = vmax.f32 %v2544_v22, %v2552_v32  ;;  %v2958_v35 = vmax.f32 %v2560_v27, %v2568_v46  ;;  %v3040_v39 = vpack.c.bf16 %v2628_v41, %v2628_v41  ;;  %v2637_v2 = vrot.slane %v2636_v29, 4 }
 0x442   :  { %v3015_v13 = vrot.slane %v3014_v45, 4  ;;  %v2847_v11 = vrot.slane %v2846_v19, 4  ;;  %v3048_v12 = vpack.c.bf16 %v2684_v52, %v2684_v52  ;;  %v3056_v61 = vpack.c.bf16 %v2740_v40, %v2740_v40 }
 0x443   :  { %v2903_v3 = vrot.slane %v2902_v14, 4  ;;  %v2959_v56 = vrot.slane %v2958_v35, 4  ;;  %v3296_v58 = vunpack.c.l.b16 %v3040_v39  ;;  %v2638_v30 = vmax.f32 %v2636_v29, %v2637_v2 }
 0x444   :  { %v3016_v60 = vmax.f32 %v3014_v45, %v3015_v13  ;;  %4881 = vmatpush3.bf16.msra.mxu0 %v5128_v36  ;;  %v2848_v17 = vmax.f32 %v2846_v19, %v2847_v11  ;;  %v3304_v55 = vunpack.c.l.b16 %v3048_v12  ;;  %v3312_v18 = vunpack.c.l.b16 %v3056_v61 }
 0x445   :  { %4882 = vmatprep.subr.bf16.mxu0 %v5130_v49  ;;  %v2904_v42 = vmax.f32 %v2902_v14, %v2903_v3  ;;  %v2960_v62 = vmax.f32 %v2958_v35, %v2959_v56  ;;  %v2639_v57 = vrot.slane %v2638_v30, 2  ;;  %v2692_v41 = vmax.f32 %v2482_v48, %v2490_v63 }
 0x446   :  { %v3017_v20 = vrot.slane %v3016_v60, 2  ;;  %v2849_v7 = vrot.slane %v2848_v17, 2  ;;  %v3397_v28 = vsel %vm3355_vm1, %v3304_v55, %v3296_v58  ;;  %v2748_v23 = vmax.f32 %v2498_v37, %v2506_v50 }
 0x447   :  { %v5180_v47 = vpop.eup %5179  ;;  %v7642_v29 = vsub.f32 %v7557_v25, %v6980_v38  ;;  %v7643_v4 = vsub.f32 %v6673_v15, %v6980_v38  ;;  %v2905_v0 = vrot.slane %v2904_v42, 2  ;;  %v2961_v22 = vrot.slane %v2960_v62, 2 }
 0x448   :  { %v3018_v32 = vmax.f32 %v3016_v60, %v3017_v20  ;;  %4883 = vmatpush3.bf16.msra.mxu0 %v5132_v34  ;;  %v2850_v27 = vmax.f32 %v2848_v17, %v2849_v7  ;;  %v3398_v48 = vsel %vm3357_vm2, %v3312_v18, %v3397_v28  ;;  %v7644_v63 = vsub.f32 %v7634_v8, %v6980_v38 }
 0x449   :  { %v2578_v26 = vmul.f32 %v5180_v47, %v7642_v29  ;;  %v2586_v10 = vmul.f32 %v5180_v47, %v7643_v4  ;;  %v2906_v37 = vmax.f32 %v2904_v42, %v2905_v0  ;;  %v2962_v46 = vmax.f32 %v2960_v62, %v2961_v22 }
 0x44a   :  { %v2530_v59 = vmul.f32 %v5180_v47, %v7644_v63  ;;  %v3399_v25 = vsel %vm3359_vm3, %v6922_v44, %v3398_v48  ;;  %v2851_v45 = vrot.slane %v2850_v27, 1  ;;  %v3019_v15 = vrot.slane %v3018_v32, 1 }
 0x44b   :  { %v3028_v50 = vmax.f32 %v2578_v26, %v2586_v10  ;;  %v7645_v36 = vsub.f32 %v7635_v54, %v6980_v38  ;;  %v7646_v40 = vsub.f32 %v7636_v33, %v6980_v38  ;;  %v2907_v14 = vrot.slane %v2906_v37, 1 }
 0x44c   :  { %v2963_v8 = vrot.slane %v2962_v46, 1  ;;  %v7647_v35 = vsub.f32 %v7637_v1, %v6980_v38  ;;  %v2852_v2 = vmax.f32 %v2850_v27, %v2851_v45  ;;  %v3020_v13 = vmax.f32 %v3018_v32, %v3019_v15 }
 0x44d   :  { %v2538_v52 = vmul.f32 %v5180_v47, %v7645_v36  ;;  %v2546_v19 = vmul.f32 %v5180_v47, %v7646_v40  ;;  %v3029_v49 = vrot.slane %v3028_v50, 4  ;;  %v7648_v44 = vsub.f32 %v7638_v21, %v6980_v38 }
 0x44e   :  { %v2554_v39 = vmul.f32 %v5180_v47, %v7647_v35  ;;  %v7649_v54 = vsub.f32 %v7639_v51, %v6980_v38  ;;  %v2908_v33 = vmax.f32 %v2906_v37, %v2907_v14  ;;  %v2964_v3 = vmax.f32 %v2962_v46, %v2963_v8  ;;  %v7650_v8 = vld [vmem:[#allocation115_spill] sm:$0xff]  ;;  %v7651_v35 = vld [vmem:[#allocation54_spill] sm:$0xff] }
 0x44f   :  { %v2562_v11 = vmul.f32 %v5180_v47, %v7648_v44  ;;  %v3030_v61 = vmax.f32 %v3028_v50, %v3029_v49  ;;  %v2640_v56 = vmax.f32 %v2638_v30, %v2639_v57  ;;  %v3072_v58 = vpack.c.bf16 %v2852_v2, %v2852_v2 }
 0x450   :  { %v2570_v12 = vmul.f32 %v5180_v47, %v7649_v54  ;;  %v3096_v60 = vpack.c.bf16 %v3020_v13, %v3020_v13  ;;  %v2693_v34 = vrot.slane %v2692_v41, 4  ;;  %v2749_v17 = vrot.slane %v2748_v23, 4 }
 0x451   :  { %v3031_v1 = vrot.slane %v3030_v61, 2  ;;  %v3080_v55 = vpack.c.bf16 %v2908_v33, %v2908_v33  ;;  %v3088_v18 = vpack.c.bf16 %v2964_v3, %v2964_v3  ;;  %v2641_v42 = vrot.slane %v2640_v56, 1  ;;  %v7652_v33 = vld [vmem:[#allocation58_spill] sm:$0xff] }
 0x452   :  { %v3328_v62 = vunpack.c.l.b16 %v3072_v58  ;;  %v3352_v20 = vunpack.c.l.b16 %v3096_v60  ;;  %v2694_v21 = vmax.f32 %v2692_v41, %v2693_v34  ;;  %v2750_v7 = vmax.f32 %v2748_v23, %v2749_v17  ;;  %v7653_v60 = vld [vmem:[#allocation62_spill] sm:$0xff] }
 0x453   :  { %v3032_v28 = vmax.f32 %v3030_v61, %v3031_v1  ;;  %v3336_v29 = vunpack.c.l.b16 %v3080_v55  ;;  %v3344_v51 = vunpack.c.l.b16 %v3088_v18  ;;  %v2642_v38 = vmax.f32 %v2640_v56, %v2641_v42  ;;  %v7654_v17 = vld [vmem:[#allocation66_spill] sm:$0xff] }
 0x454   :  { %v3400_v47 = vsel %vm3361_vm4, %v3328_v62, %v3399_v25  ;;  %v2695_v26 = vrot.slane %v2694_v21, 2  ;;  %v2751_v30 = vrot.slane %v2750_v7, 2  ;;  %v2860_v57 = vmax.f32 %v2530_v59, %v2538_v52  ;;  %v7655_v62 = vld [vmem:[#allocation70_spill] sm:$0xff] }
 0x455   :  { %v3401_v4 = vsel %vm3363_vm5, %v3336_v29, %v3400_v47  ;;  %v2916_v10 = vmax.f32 %v2546_v19, %v2554_v39  ;;  %v2972_v0 = vmax.f32 %v2562_v11, %v2570_v12  ;;  %v3033_v22 = vrot.slane %v3032_v28, 1 }
 0x456   :  { %v3402_v32 = vsel %vm3365_vm6, %v3344_v51, %v3401_v4  ;;  %v2696_v27 = vmax.f32 %v2694_v21, %v2695_v26  ;;  %v2752_v48 = vmax.f32 %v2750_v7, %v2751_v30  ;;  %v2861_v41 = vrot.slane %v2860_v57, 4  ;;  %v7657_v51 = vld [vmem:[#allocation82_spill] sm:$0xff]  ;;  %v7658_v30 = vld [vmem:[#allocation85_spill] sm:$0xff] }
 0x457   :  { %v3403_v23 = vsel %vm3367_vm7, %v3352_v20, %v3402_v32  ;;  %v2917_v63 = vrot.slane %v2916_v10, 4  ;;  %v2973_v50 = vrot.slane %v2972_v0, 4  ;;  %v3034_v37 = vmax.f32 %v3032_v28, %v3033_v22  ;;  %v7656_v28 = vld [vmem:[#allocation76_spill] sm:$0xff]  ;;  %v7659_v4 = vld [vmem:[#allocation90_spill] sm:$0xff] }
 0x458   :  { %v3423_v46 = vpack.c.b16 %v3403_v23, %v3403_v23  ;;  %v2697_v25 = vrot.slane %v2696_v27, 1  ;;  %v2753_v45 = vrot.slane %v2752_v48, 1  ;;  %v2862_v15 = vmax.f32 %v2860_v57, %v2861_v41 }
 0x459   :  { %v2918_v59 = vmax.f32 %v2916_v10, %v2917_v63  ;;  %v2974_v36 = vmax.f32 %v2972_v0, %v2973_v50  ;;  %v3042_v52 = vpack.c.bf16 %v2642_v38, %v2642_v38  ;;  %v3098_v40 = vpack.c.bf16 %v3034_v37, %v3034_v37  ;;  %v7661_v63 = vld [vmem:[#allocation98_spill] sm:$0xff]  ;;  %v7662_v37 = vld [vmem:[#allocation101_spill] sm:$0xff] }
 0x45a   :  { %3930 = vmatprep.mubr.bf16.mxu1 %v3423_v46  ;;  %v2698_v19 = vmax.f32 %v2696_v27, %v2697_v25  ;;  %v2754_v49 = vmax.f32 %v2752_v48, %v2753_v45  ;;  %v2863_v14 = vrot.slane %v2862_v15, 2  ;;  %v2303_v39 = vsub.f32 %v7651_v35, %v7650_v8  ;;  %v7660_v27 = vld [vmem:[#allocation94_spill] sm:$0xff] }
 0x45b   :  { %v2919_v2 = vrot.slane %v2918_v59, 2  ;;  %v2975_v13 = vrot.slane %v2974_v36, 2  ;;  %v3298_v44 = vunpack.c.l.b16 %v3042_v52  ;;  %v3354_v11 = vunpack.c.l.b16 %v3098_v40 }
 0x45c   :  { %v2864_v54 = vmax.f32 %v2862_v15, %v2863_v14  ;;  %v3050_v12 = vpack.c.bf16 %v2698_v19, %v2698_v19  ;;  %v3058_v61 = vpack.c.bf16 %v2754_v49, %v2754_v49  ;;  %v2311_v3 = vsub.f32 %v7652_v33, %v7650_v8  ;;  %v7663_v15 = vld [vmem:[#allocation117_spill] sm:$0xff] }
 0x45d   :  { %v2920_v56 = vmax.f32 %v2918_v59, %v2919_v2  ;;  %v2976_v58 = vmax.f32 %v2974_v36, %v2975_v13  ;;  %v2319_v34 = vsub.f32 %v7653_v60, %v7650_v8  ;;  %v2327_v1 = vsub.f32 %v7654_v17, %v7650_v8 }
 0x45e   :  { %v2865_v55 = vrot.slane %v2864_v54, 1  ;;  %v3306_v18 = vunpack.c.l.b16 %v3050_v12  ;;  %v3314_v42 = vunpack.c.l.b16 %v3058_v61  ;;  %v2335_v20 = vsub.f32 %v7655_v62, %v7650_v8 }
 0x45f   :  { %v2921_v21 = vrot.slane %v2920_v56, 1  ;;  %v2977_v7 = vrot.slane %v2976_v58, 1  ;;  %v2343_v29 = vsub.f32 %v7656_v28, %v7650_v8  ;;  %v2367_v38 = vsub.f32 %v7657_v51, %v6819_v6 }
 0x460   :  { %v2866_v47 = vmax.f32 %v2864_v54, %v2865_v55  ;;  %v3411_v26 = vsel %vm3355_vm1, %v3306_v18, %v3298_v44  ;;  %v2375_v57 = vsub.f32 %v7658_v30, %v6819_v6  ;;  %v2383_v10 = vsub.f32 %v7659_v4, %v6819_v6 }
 0x461   :  { %v2922_v0 = vmax.f32 %v2920_v56, %v2921_v21  ;;  %v2978_v22 = vmax.f32 %v2976_v58, %v2977_v7  ;;  %v3412_v32 = vsel %vm3357_vm2, %v3314_v42, %v3411_v26  ;;  %v2391_v48 = vsub.f32 %v7660_v27, %v6819_v6  ;;  %v7667_v27 = vld [vmem:[#allocation59_spill] sm:$0xff] }
 0x462   :  { %v3074_v41 = vpack.c.bf16 %v2866_v47, %v2866_v47  ;;  %v3413_v23 = vsel %vm3359_vm3, %v6932_v31, %v3412_v32  ;;  %v2399_v50 = vsub.f32 %v7661_v63, %v6819_v6  ;;  %v2407_v46 = vsub.f32 %v7662_v37, %v6819_v6  ;;  %v7665_v47 = vld [vmem:[#allocation116_spill] sm:$0xff] }
 0x463   :  { %v3082_v25 = vpack.c.bf16 %v2922_v0, %v2922_v0  ;;  %v3090_v45 = vpack.c.bf16 %v2978_v22, %v2978_v22  ;;  %v2463_v59 = vmul.f32 %v7663_v15, %v2303_v39  ;;  %v2471_v36 = vmul.f32 %v7663_v15, %v2311_v3 }
 0x464   :  { %v3330_v52 = vunpack.c.l.b16 %v3074_v41  ;;  %v2479_v40 = vmul.f32 %v7663_v15, %v2319_v34  ;;  %v2487_v19 = vmul.f32 %v7663_v15, %v2327_v1  ;;  %v2495_v49 = vmul.f32 %v7663_v15, %v2335_v20 }
 0x465   :  { %v3338_v31 = vunpack.c.l.b16 %v3082_v25  ;;  %v3346_v14 = vunpack.c.l.b16 %v3090_v45  ;;  %v2503_v8 = vmul.f32 %v7663_v15, %v2343_v29  ;;  %v2527_v35 = vmul.f32 %v6886_v16, %v2367_v38  ;;  %v7668_v25 = vld [vmem:[#allocation63_spill] sm:$0xff] }
 0x466   :  { %v3414_v6 = vsel %vm3361_vm4, %v3330_v52, %v3413_v23  ;;  %v2535_v2 = vmul.f32 %v6886_v16, %v2375_v57  ;;  %v2543_v39 = vmul.f32 %v6886_v16, %v2383_v10  ;;  %v2551_v13 = vmul.f32 %v6886_v16, %v2391_v48  ;;  %v7669_v52 = vld [vmem:[#allocation67_spill] sm:$0xff] }
 0x467   :  { %v3415_v44 = vsel %vm3363_vm5, %v3338_v31, %v3414_v6  ;;  %v2559_v54 = vmul.f32 %v6886_v16, %v2399_v50  ;;  %v2567_v12 = vmul.f32 %v6886_v16, %v2407_v46  ;;  %v2615_v61 = vmax.f32 %v2463_v59, %v2471_v36 }
 0x468   :  { %v3416_v33 = vsel %vm3365_vm6, %v3346_v14, %v3415_v44  ;;  %v2671_v3 = vmax.f32 %v2479_v40, %v2487_v19  ;;  %v2727_v56 = vmax.f32 %v2495_v49, %v2503_v8  ;;  %v2839_v58 = vmax.f32 %v2527_v35, %v2535_v2  ;;  %v7670_v14 = vld [vmem:[#allocation71_spill] sm:$0xff] }
 0x469   :  { %v3417_v60 = vsel %vm3367_vm7, %v3354_v11, %v3416_v33  ;;  %v2616_v34 = vrot.slane %v2615_v61, 4  ;;  %v2895_v17 = vmax.f32 %v2543_v39, %v2551_v13  ;;  %v2951_v1 = vmax.f32 %v2559_v54, %v2567_v12  ;;  %v7666_v11 = vld [vmem:[#allocation55_spill] sm:$0xff]  ;;  %v7671_v39 = vld [vmem:[#allocation77_spill] sm:$0xff] }
 0x46a   :  { %v3425_v55 = vpack.c.b16 %v3417_v60, %v3417_v60  ;;  %v2672_v18 = vrot.slane %v2671_v3, 4  ;;  %v2728_v42 = vrot.slane %v2727_v56, 4  ;;  %v2840_v62 = vrot.slane %v2839_v58, 4  ;;  %v7673_v60 = vld [vmem:[#allocation86_spill] sm:$0xff] }
 0x46b   :  { %v2617_v20 = vmax.f32 %v2615_v61, %v2616_v34  ;;  %v2896_v21 = vrot.slane %v2895_v17, 4  ;;  %v2952_v7 = vrot.slane %v2951_v1, 4  ;;  %v7664_v16 = vrot.slane %v6934_v53, 1  ;;  %v7672_v61 = vld [vmem:[#allocation83_spill] sm:$0xff] }
 0x46c   :  { %3970 = vmatprep.mubr.bf16.mxu0 %v3425_v55  ;;  %v2673_v29 = vmax.f32 %v2671_v3, %v2672_v18  ;;  %v2729_v51 = vmax.f32 %v2727_v56, %v2728_v42  ;;  %v2841_v38 = vmax.f32 %v2839_v58, %v2840_v62  ;;  %v2305_v26 = vsub.f32 %v7666_v11, %v7665_v47  ;;  %v7674_v18 = vld [vmem:[#allocation91_spill] sm:$0xff] }
 0x46d   :  { %v3013_v28 = vmax.f32 %v6934_v53, %v7664_v16  ;;  %v2618_v30 = vrot.slane %v2617_v20, 2  ;;  %v2897_v57 = vmax.f32 %v2895_v17, %v2896_v21  ;;  %v2953_v4 = vmax.f32 %v2951_v1, %v2952_v7  ;;  %v7675_v7 = vld [vmem:[#allocation95_spill] sm:$0xff] }
 0x46e   :  { %v2674_v0 = vrot.slane %v2673_v29, 2  ;;  %v2730_v22 = vrot.slane %v2729_v51, 2  ;;  %v2842_v32 = vrot.slane %v2841_v38, 2  ;;  %v2313_v48 = vsub.f32 %v7667_v27, %v7665_v47 }
 0x46f   :  { %v3095_v10 = vpack.c.bf16 %v3013_v28, %v3013_v28  ;;  %v2619_v41 = vmax.f32 %v2617_v20, %v2618_v30  ;;  %v2898_v23 = vrot.slane %v2897_v57, 2  ;;  %v2954_v53 = vrot.slane %v2953_v4, 2 }
 0x470   :  { %v2675_v50 = vmax.f32 %v2673_v29, %v2674_v0  ;;  %v2731_v37 = vmax.f32 %v2729_v51, %v2730_v22  ;;  %v2843_v46 = vmax.f32 %v2841_v38, %v2842_v32  ;;  %v2321_v45 = vsub.f32 %v7668_v25, %v7665_v47  ;;  %v7676_v38 = vld [vmem:[#allocation99_spill] sm:$0xff] }
 0x471   :  { %v7125_v63 = vunpack.c.l.b16 %v3095_v10  ;;  %v2620_v15 = vrot.slane %v2619_v41, 1  ;;  %v2899_v59 = vmax.f32 %v2897_v57, %v2898_v23  ;;  %v2955_v36 = vmax.f32 %v2953_v4, %v2954_v53  ;;  %v7677_v57 = vld [vmem:[#allocation102_spill] sm:$0xff] }
 0x472   :  { %v2329_v40 = vsub.f32 %v7669_v52, %v7665_v47  ;;  %v2676_v19 = vrot.slane %v2675_v50, 1  ;;  %v2732_v49 = vrot.slane %v2731_v37, 1  ;;  %v2844_v31 = vrot.slane %v2843_v46, 1  ;;  %v7678_v10 = vld [vmem:[#allocation118_spill] sm:$0xff] }
 0x473   :  { %v2337_v8 = vsub.f32 %v7670_v14, %v7665_v47  ;;  %v2621_v35 = vmax.f32 %v2619_v41, %v2620_v15  ;;  %v2900_v6 = vrot.slane %v2899_v59, 1  ;;  %v2956_v2 = vrot.slane %v2955_v36, 1 }
 0x474   :  { %v2345_v13 = vsub.f32 %v7671_v39, %v7665_v47  ;;  %v2677_v44 = vmax.f32 %v2675_v50, %v2676_v19  ;;  %v2733_v54 = vmax.f32 %v2731_v37, %v2732_v49  ;;  %v2845_v12 = vmax.f32 %v2843_v46, %v2844_v31 }
 0x475   :  { %v2369_v33 = vsub.f32 %v7672_v61, %v6868_v5  ;;  %v2901_v3 = vmax.f32 %v2899_v59, %v2900_v6  ;;  %v2957_v56 = vmax.f32 %v2955_v36, %v2956_v2  ;;  %v3039_v58 = vpack.c.bf16 %v2621_v35, %v2621_v35 }
 0x476   :  { %v2377_v34 = vsub.f32 %v7673_v60, %v6868_v5  ;;  %v3047_v17 = vpack.c.bf16 %v2677_v44, %v2677_v44  ;;  %v3055_v1 = vpack.c.bf16 %v2733_v54, %v2733_v54  ;;  %v3071_v55 = vpack.c.bf16 %v2845_v12, %v2845_v12 }
 0x477   :  { %v2385_v42 = vsub.f32 %v7674_v18, %v6868_v5  ;;  %v3079_v62 = vpack.c.bf16 %v2901_v3, %v2901_v3  ;;  %v3087_v20 = vpack.c.bf16 %v2957_v56, %v2957_v56  ;;  %v3295_v21 = vunpack.c.l.b16 %v3039_v58 }
 0x478   :  { %v2393_v16 = vsub.f32 %v7675_v7, %v6868_v5  ;;  %v3303_v28 = vunpack.c.l.b16 %v3047_v17  ;;  %v3311_v29 = vunpack.c.l.b16 %v3055_v1  ;;  %v3327_v51 = vunpack.c.l.b16 %v3071_v55 }
 0x479   :  { %v2401_v47 = vsub.f32 %v7676_v38, %v6868_v5  ;;  %v3335_v11 = vunpack.c.l.b16 %v3079_v62  ;;  %v3343_v30 = vunpack.c.l.b16 %v3087_v20  ;;  %v2409_v4 = vsub.f32 %v7677_v57, %v6868_v5 }
 0x47a   :  { %v2465_v0 = vmul.f32 %v7678_v10, %v2305_v26  ;;  %v3390_v22 = vsel %vm3355_vm1, %v3303_v28, %v3295_v21  ;;  %v2473_v32 = vmul.f32 %v7678_v10, %v2313_v48  ;;  %v2481_v27 = vmul.f32 %v7678_v10, %v2321_v45 }
 0x47b   :  { %v2489_v41 = vmul.f32 %v7678_v10, %v2329_v40  ;;  %v3391_v23 = vsel %vm3357_vm2, %v3311_v29, %v3390_v22  ;;  %v2497_v53 = vmul.f32 %v7678_v10, %v2337_v8  ;;  %v2505_v50 = vmul.f32 %v7678_v10, %v2345_v13 }
 0x47c   :  { %v2529_v37 = vmul.f32 %v6907_v43, %v2369_v33  ;;  %v3392_v5 = vsel %vm3359_vm3, %v6762_v24, %v3391_v23  ;;  %v2537_v26 = vmul.f32 %v6907_v43, %v2377_v34  ;;  %v2545_v46 = vmul.f32 %v6907_v43, %v2385_v42  ;;  %v7679_v33 = vld [vmem:[#allocation107_spill] sm:$0xff] }
 0x47d   :  { %v2553_v48 = vmul.f32 %v6907_v43, %v2393_v16  ;;  %v3393_v25 = vsel %vm3361_vm4, %v3327_v51, %v3392_v5  ;;  %v2561_v45 = vmul.f32 %v6907_v43, %v2401_v47  ;;  %v2569_v15 = vmul.f32 %v6907_v43, %v2409_v4 }
 0x47e   :  { %v2629_v59 = vmax.f32 %v2465_v0, %v2473_v32  ;;  %v3394_v36 = vsel %vm3363_vm5, %v3335_v11, %v3393_v25  ;;  %v2685_v52 = vmax.f32 %v2481_v27, %v2489_v41  ;;  %v2741_v40 = vmax.f32 %v2497_v53, %v2505_v50 }
 0x47f   :  { %v2853_v19 = vmax.f32 %v2529_v37, %v2537_v26  ;;  %v3395_v24 = vsel %vm3365_vm6, %v3343_v30, %v3394_v36  ;;  %v2909_v31 = vmax.f32 %v2545_v46, %v2553_v48  ;;  %v2965_v14 = vmax.f32 %v2561_v45, %v2569_v15 }
 0x480   :  { %v2630_v49 = vrot.slane %v2629_v59, 4  ;;  %v3396_v8 = vsel %vm3367_vm7, %v7125_v63, %v3395_v24  ;;  %v2686_v35 = vrot.slane %v2685_v52, 4  ;;  %v2742_v6 = vrot.slane %v2741_v40, 4 }
 0x481   :  { %v2854_v2 = vrot.slane %v2853_v19, 4  ;;  %v3422_v39 = vpack.c.b16 %v3396_v8, %v3396_v8  ;;  %v2910_v43 = vrot.slane %v2909_v31, 4  ;;  %v2966_v44 = vrot.slane %v2965_v14, 4 }
 0x482   :  { %v2631_v13 = vmax.f32 %v2629_v59, %v2630_v49  ;;  %v2687_v54 = vmax.f32 %v2685_v52, %v2686_v35  ;;  %v2743_v12 = vmax.f32 %v2741_v40, %v2742_v6  ;;  %v2802_v3 = vrot.slane %v7679_v33, 1 }
 0x483   :  { %v2855_v61 = vmax.f32 %v2853_v19, %v2854_v2  ;;  %3931 = vmatmul.mubr.bf16.vlgmr.msra.gmra.mrb[68].mxu1 %v3422_v39  ;;  %v2911_v58 = vmax.f32 %v2909_v31, %v2910_v43  ;;  %v2967_v60 = vmax.f32 %v2965_v14, %v2966_v44  ;;  %v7680_v34 = vrot.slane %v6950_v9, 2 }
 0x484   :  { %v2632_v56 = vrot.slane %v2631_v13, 2  ;;  %v2688_v17 = vrot.slane %v2687_v54, 2  ;;  %v2744_v1 = vrot.slane %v2743_v12, 2  ;;  %v2803_v16 = vmax.f32 %v7679_v33, %v2802_v3  ;;  %v5134_v33 = vld [vmem:[%s7290_s6 + $0x8] sm:$0xff]  }
 0x485   :  { %v3025_v63 = vmax.f32 %v6950_v9, %v7680_v34  ;;  %v2856_v55 = vrot.slane %v2855_v61, 2  ;;  %v2912_v42 = vrot.slane %v2911_v58, 2  ;;  %v2968_v62 = vrot.slane %v2967_v60, 2 }
 0x486   :  { %v2633_v18 = vmax.f32 %v2631_v13, %v2632_v56  ;;  %v2689_v20 = vmax.f32 %v2687_v54, %v2688_v17  ;;  %v2745_v21 = vmax.f32 %v2743_v12, %v2744_v1  ;;  %v3065_v32 = vpack.c.bf16 %v2803_v16, %v2803_v16  ;;  %v5133_v12 = vld [vmem:[%s7290_s6] sm:$0xff]   ;;  %v5136_v1 = vld [vmem:[%s7290_s6 + $0x18] sm:$0xff]  }
 0x487   :  { %v2857_v7 = vmax.f32 %v2855_v61, %v2856_v55  ;;  %v2913_v29 = vmax.f32 %v2911_v58, %v2912_v42  ;;  %v2969_v51 = vmax.f32 %v2967_v60, %v2968_v62  ;;  %v3026_v38 = vrot.slane %v3025_v63, 1  ;;  %v5135_v58 = vld [vmem:[%s7290_s6 + $0x10] sm:$0xff]   ;;  %v5137_v55 = vld [vmem:[%s7290_s6 + $0x20] sm:$0xff]   ;;  %v5140_v62 = vld [vmem:[%s7290_s6 + $0x38] sm:$0xff]  }
 0x488   :  { %v2634_v28 = vrot.slane %v2633_v18, 1  ;;  %v2690_v47 = vrot.slane %v2689_v20, 1  ;;  %v2746_v11 = vrot.slane %v2745_v21, 1  ;;  %v3321_v59 = vunpack.c.l.b16 %v3065_v32  ;;  %v5139_v42 = vld [vmem:[%s7290_s6 + $0x30] sm:$0xff]  }
 0x489   :  { %v2858_v30 = vrot.slane %v2857_v7, 1  ;;  %v2914_v9 = vrot.slane %v2913_v29, 1  ;;  %v2970_v4 = vrot.slane %v2969_v51, 1  ;;  %v3027_v53 = vmax.f32 %v3025_v63, %v3026_v38 }
 0x48a   :  { %v2635_v57 = vmax.f32 %v2633_v18, %v2634_v28  ;;  %v2691_v10 = vmax.f32 %v2689_v20, %v2690_v47  ;;  %v2747_v0 = vmax.f32 %v2745_v21, %v2746_v11  ;;  %v5258_v61 = vmov 0.0   ;;  %v5138_v18 = vld [vmem:[%s7290_s6 + $0x28] sm:$0xff]  }
 0x48b   :  { %v2859_v22 = vmax.f32 %v2857_v7, %v2858_v30  ;;  %v2915_v27 = vmax.f32 %v2913_v29, %v2914_v9  ;;  %v2971_v41 = vmax.f32 %v2969_v51, %v2970_v4  ;;  %v3097_v36 = vpack.c.bf16 %v3027_v53, %v3027_v53  ;;  %4949 = vmatprep.subr.bf16.mxu1 %v5258_v61 }
 0x48c   :  { %v3041_v23 = vpack.c.bf16 %v2635_v57, %v2635_v57  ;;  %v3049_v50 = vpack.c.bf16 %v2691_v10, %v2691_v10  ;;  %v3057_v37 = vpack.c.bf16 %v2747_v0, %v2747_v0  ;;  %4969 = vmatprep.subr.bf16.mxu0 %v5258_v61  ;;  %4950 = vmatpush3.bf16.msra.mxu1 %v5133_v12 }
 0x48d   :  { %v3073_v5 = vpack.c.bf16 %v2859_v22, %v2859_v22  ;;  %v3081_v26 = vpack.c.bf16 %v2915_v27, %v2915_v27  ;;  %v3089_v45 = vpack.c.bf16 %v2971_v41, %v2971_v41  ;;  %v3353_v14 = vunpack.c.l.b16 %v3097_v36  ;;  %4951 = vmatprep.subr.bf16.mxu1 %v5258_v61  ;;  %4965 = vmatprep.mubr.msk.bf16.mxu1 %vm5259_vm8, %v5258_v61 }
 0x48e   :  { %v3297_v46 = vunpack.c.l.b16 %v3041_v23  ;;  %v3305_v48 = vunpack.c.l.b16 %v3049_v50  ;;  %v3313_v25 = vunpack.c.l.b16 %v3057_v37 }
 0x48f   :  { %v3329_v15 = vunpack.c.l.b16 %v3073_v5  ;;  %v3337_v52 = vunpack.c.l.b16 %v3081_v26  ;;  %v3345_v49 = vunpack.c.l.b16 %v3089_v45 }
 0x490   :  { %v3404_v40 = vsel %vm3355_vm1, %v3305_v48, %v3297_v46  ;;  %4952 = vmatpush3.bf16.msra.mxu1 %v5134_v33 }
 0x491   :  { %v3405_v19 = vsel %vm3357_vm2, %v3313_v25, %v3404_v40  ;;  %4953 = vmatprep.subr.bf16.mxu1 %v5258_v61 }
 0x492   :  { %v3406_v24 = vsel %vm3359_vm3, %v3321_v59, %v3405_v19 }
 0x493   :  { %v3407_v31 = vsel %vm3361_vm4, %v3329_v15, %v3406_v24 }
 0x494   :  { %v3408_v8 = vsel %vm3363_vm5, %v3337_v52, %v3407_v31  ;;  %4954 = vmatpush3.bf16.msra.mxu1 %v5135_v58 }
 0x495   :  { %v3409_v35 = vsel %vm3365_vm6, %v3345_v49, %v3408_v8  ;;  %4955 = vmatprep.subr.bf16.mxu1 %v5258_v61 }
 0x496   :  { %v3410_v6 = vsel %vm3367_vm7, %v3353_v14, %v3409_v35 }
 0x497   :  { %v3424_v2 = vpack.c.b16 %v3410_v6, %v3410_v6 }
 0x498   :  { %4956 = vmatpush3.bf16.msra.mxu1 %v5136_v1 }
 0x499   :  { %3971 = vmatmul.mubr.bf16.vlgmr.msra.gmra.mrb[84].mxu0 %v3424_v2  ;;  %4957 = vmatprep.subr.bf16.mxu1 %v5258_v61 }
 0x49a   :  { %4970 = vmatpush3.bf16.msra.mxu0 %v5133_v12  ;;  %4985 = vmatprep.mubr.msk.bf16.mxu0 %vm5259_vm8, %v5258_v61 }
 0x49b   :  { %4971 = vmatprep.subr.bf16.mxu0 %v5258_v61 }
 0x49c   :  { %4958 = vmatpush3.bf16.msra.mxu1 %v5137_v55 }
 0x49d   :  { %4959 = vmatprep.subr.bf16.mxu1 %v5258_v61 }
 0x49e   :  { %4972 = vmatpush3.bf16.msra.mxu0 %v5134_v33 }
 0x49f   :  { %4973 = vmatprep.subr.bf16.mxu0 %v5258_v61 }
 0x4a0   :  { %4960 = vmatpush3.bf16.msra.mxu1 %v5138_v18 }
 0x4a1   :  { %4961 = vmatprep.subr.bf16.mxu1 %v5258_v61 }
 0x4a2   :  { %4974 = vmatpush3.bf16.msra.mxu0 %v5135_v58 }
 0x4a3   :  { %4975 = vmatprep.subr.bf16.mxu0 %v5258_v61 }
 0x4a4   :  { %4962 = vmatpush3.bf16.msra.mxu1 %v5139_v42 }
 0x4a5   :  { %4963 = vmatprep.subr.bf16.mxu1 %v5258_v61 }
 0x4a6   :  { %4976 = vmatpush3.bf16.msra.mxu0 %v5136_v1 }
 0x4a7   :  { %4977 = vmatprep.subr.bf16.mxu0 %v5258_v61 }
 0x4a8   :  { %4964 = vmatpush3.bf16.msra.mxu1 %v5140_v62 }
 0x4aa   :  { %4978 = vmatpush3.bf16.msra.mxu0 %v5137_v55 }
 0x4ab   :  { %4979 = vmatprep.subr.bf16.mxu0 %v5258_v61 }
 0x4ae   :  { %4980 = vmatpush3.bf16.msra.mxu0 %v5138_v18 }
 0x4af   :  { %4981 = vmatprep.subr.bf16.mxu0 %v5258_v61 }
 0x4b2   :  { %4982 = vmatpush3.bf16.msra.mxu0 %v5139_v42 }
 0x4b3   :  { %4983 = vmatprep.subr.bf16.mxu0 %v5258_v61 }
 0x4b6   :  { %4984 = vmatpush3.bf16.msra.mxu0 %v5140_v62 }
 0x4f3   :  { %v4818_v39 = vpop.f32.mrb[64].mxu1 }
 0x4f4   :  { %v4819_v13 = vpop.f32.mrb[65].mxu1 }
 0x4f5   :  { %v4820_v43 = vadd.f32 %v4819_v13, %v4818_v39  ;;  %v4821_v44 = vpop.f32.mrb[66].mxu1 }
 0x4f6   :  { %v4822_v54 = vpop.f32.mrb[67].mxu1 }
 0x4fe   :  { %v4840_v3 = vpop.f32.mrb[80].mxu0 }
 0x4ff   :  { %v4841_v56 = vpop.f32.mrb[81].mxu0 }
 0x500   :  { %v4842_v60 = vadd.f32 %v4841_v56, %v4840_v3  ;;  %v4843_v34 = vpop.f32.mrb[82].mxu0 }
 0x501   :  { %v4844_v63 = vpop.f32.mrb[83].mxu0 }
 0x502   :  { %v3893_v17 = vadd.f32 %v4842_v60, %v4820_v43 }
 0x556   :  { %v4862_v20 = vpop.f32.mrb[68].mxu1 }
 0x557   :  { %v4863_v21 = vpop.f32.mrb[69].mxu1 }
 0x558   :  { %v4864_v7 = vadd.f32 %v4863_v21, %v4862_v20  ;;  %v4865_v16 = vpop.f32.mrb[70].mxu1 }
 0x559   :  { %v4866_v28 = vpop.f32.mrb[71].mxu1 }
 0x55a   :  { %v3933_v29 = vadd.f32 %v4864_v7, %v3893_v17 }
 0x56c   :  { %v4884_v51 = vpop.f32.mrb[84].mxu0 }
 0x56d   :  { %v4885_v38 = vpop.f32.mrb[85].mxu0 }
 0x56e   :  { %v4886_v47 = vadd.f32 %v4885_v38, %v4884_v51  ;;  %v4887_v11 = vpop.f32.mrb[86].mxu0 }
 0x56f   :  { %v4888_v30 = vpop.f32.mrb[87].mxu0 }
 0x570   :  { %v3973_v57 = vadd.f32 %v4886_v47, %v3933_v29 }
 0x572   :  { %v3979_v9 = vsel %vm3978_vm9, %v3973_v57, 0.0  ;;  %v3988_v4 = vmul.f32 %v3973_v57, %v3973_v57  ;;  %v4006_v10 = vrot.slane %v3973_v57, 4 }
 0x573   :  { %v3980_v0 = vrot.slane %v3979_v9, 4 }
 0x574   :  { %v3989_v22 = vsel %vm3978_vm9, %v3988_v4, 0.0  ;;  %v4008_v32 = vsel %vm3978_vm9, %v4006_v10, 0.0  ;;  %v4017_v27 = vrot.slane %v3988_v4, 4 }
 0x575   :  { %v3981_v41 = vadd.f32 %v3980_v0, %v3979_v9  ;;  %v3990_v23 = vrot.slane %v3989_v22, 4  ;;  %v4009_v53 = vrot.slane %v4008_v32, 4 }
 0x576   :  { %v4019_v50 = vsel %vm3978_vm9, %v4017_v27, 0.0 }
 0x577   :  { %v3991_v37 = vadd.f32 %v3990_v23, %v3989_v22  ;;  %v4020_v5 = vrot.slane %v4019_v50, 4  ;;  %v3982_v26 = vrot.slane %v3981_v41, 2  ;;  %v4010_v46 = vadd.f32 %v4009_v53, %v4008_v32 }
 0x579   :  { %v3992_v48 = vrot.slane %v3991_v37, 2  ;;  %v4021_v25 = vadd.f32 %v4020_v5, %v4019_v50  ;;  %v3983_v45 = vadd.f32 %v3982_v26, %v3981_v41  ;;  %v4011_v15 = vrot.slane %v4010_v46, 2 }
 0x57b   :  { %v3993_v59 = vadd.f32 %v3992_v48, %v3991_v37  ;;  %v4022_v36 = vrot.slane %v4021_v25, 2  ;;  %v3984_v52 = vrot.slane %v3983_v45, 1  ;;  %v4012_v40 = vadd.f32 %v4011_v15, %v4010_v46 }
 0x57d   :  { %v3985_v19 = vadd.f32 %v3984_v52, %v3983_v45  ;;  %v3994_v24 = vrot.slane %v3993_v59, 1  ;;  %v4013_v49 = vrot.slane %v4012_v40, 1  ;;  %v4023_v31 = vadd.f32 %v4022_v36, %v4021_v25 }
 0x57f   :  { %v3987_v14 = vmul.f32 0.25, %v3985_v19  ;;  %v3995_v8 = vadd.f32 %v3994_v24, %v3993_v59  ;;  %v4014_v35 = vadd.f32 %v4013_v49, %v4012_v40  ;;  %v4024_v6 = vrot.slane %v4023_v31, 1 }
 0x581   :  { %v3996_v2 = vmul.f32 0.25, %v3995_v8  ;;  %v3997_v39 = vmul.f32 %v3987_v14, %v3987_v14  ;;  %v4015_v13 = vmul.f32 0.25, %v4014_v35  ;;  %v4025_v43 = vadd.f32 %v4024_v6, %v4023_v31 }
 0x582   :  { %v4000_v60 = vsub.f32 %v3973_v57, %v3987_v14 }
 0x583   :  { %v3998_v44 = vsub.f32 %v3996_v2, %v3997_v39  ;;  %v4027_v54 = vmul.f32 %v4015_v13, %v4015_v13  ;;  %v4026_v12 = vmul.f32 0.25, %v4025_v43  ;;  %v4030_v17 = vsub.f32 %v3973_v57, %v4015_v13 }
 0x585   :  { %v3999_v61 = vmax.f32 %v3998_v44, 0.0  ;;  %v4028_v33 = vsub.f32 %v4026_v12, %v4027_v54 }
 0x587   :  { %v4001_v3 = vadd.f32 1e-05, %v3999_v61  ;;  %v4029_v56 = vmax.f32 %v4028_v33, 0.0 }
 0x589   :  { %5181 = vrsqrt.f32 %v4001_v3  ;;  %v4031_v58 = vadd.f32 1e-05, %v4029_v56  ;;  %v4235_v3 = vstv %s4234_s14 }
 0x58a   :  { %vm4236_vm10 = vcmp.eq.s32.totalorder %v4235_v3, 1 }
 0x58b   :  { %5183 = vrsqrt.f32 %v4031_v58 }
 0x593   :  { %v5182_v34 = vpop.eup %5181 }
 0x594   :  { %v4003_v63 = vmul.f32 %v5182_v34, %v4000_v60 }
 0x595   :  { %v5184_v1 = vpop.eup %5183 }
 0x596   :  { %v4004_v55 = vmax.f32 %v4003_v63, 0.0  ;;  %v4033_v18 = vmul.f32 %v5184_v1, %v4030_v17 }
 0x598   :  { %v4035_v42 = vpack.c.bf16 %v4004_v55, %v4004_v55  ;;  %v4034_v62 = vmax.f32 %v4033_v18, 0.0 }
 0x59a   :  { %4966 = vmatmul.mubr.bf16.vlgmr.msra.gmra.mrb[72].mxu1 %v4035_v42  ;;  %v4164_v20 = vpack.c.bf16 %v4034_v62, %v4034_v62 }
 0x59c   :  { %v4166_v21 = vrot.slane %v4164_v20, 2 }
 0x59e   :  { %4986 = vmatmul.mubr.bf16.vlgmr.msra.gmra.mrb[88].mxu0 %v4166_v21 }
 0x66d   :  { %v4134_v7 = vpop.f32.mrb[72].mxu1 }
 0x66e   :  { %v4140_v16 = vsel %vm3978_vm9, %v4134_v7, 0.0  ;;  %v4148_v28 = vmul.f32 %v4134_v7, %v4134_v7  ;;  %v4967_v29 = vpop.f32.mrb[73].mxu1 }
 0x66f   :  { %v4141_v51 = vrot.slane %v4140_v16, 4  ;;  %v4137_v38 = vpop.f32.mrb[74].mxu1 }
 0x670   :  { %v4149_v47 = vsel %vm3978_vm9, %v4148_v28, 0.0  ;;  %v4968_v11 = vpop.f32.mrb[75].mxu1 }
 0x671   :  { %v4142_v30 = vadd.f32 %v4141_v51, %v4140_v16  ;;  %v4150_v57 = vrot.slane %v4149_v47, 4  ;;  %v4202_v9 = vpop.f32.mrb[88].mxu0 }
 0x672   :  { %v4208_v0 = vsel %vm3978_vm9, %v4202_v9, 0.0  ;;  %v4216_v22 = vmul.f32 %v4202_v9, %v4202_v9  ;;  %v4987_v32 = vpop.f32.mrb[89].mxu0 }
 0x673   :  { %v4143_v4 = vrot.slane %v4142_v30, 2  ;;  %v4151_v10 = vadd.f32 %v4150_v57, %v4149_v47  ;;  %v4209_v27 = vrot.slane %v4208_v0, 4  ;;  %v4205_v41 = vpop.f32.mrb[90].mxu0 }
 0x674   :  { %v4217_v50 = vsel %vm3978_vm9, %v4216_v22, 0.0  ;;  %v4988_v37 = vpop.f32.mrb[91].mxu0 }
 0x675   :  { %v4144_v23 = vadd.f32 %v4143_v4, %v4142_v30  ;;  %v4152_v53 = vrot.slane %v4151_v10, 2  ;;  %v4210_v5 = vadd.f32 %v4209_v27, %v4208_v0  ;;  %v4218_v26 = vrot.slane %v4217_v50, 4 }
 0x677   :  { %v4145_v46 = vrot.slane %v4144_v23, 1  ;;  %v4153_v48 = vadd.f32 %v4152_v53, %v4151_v10  ;;  %v4211_v25 = vrot.slane %v4210_v5, 2  ;;  %v4219_v45 = vadd.f32 %v4218_v26, %v4217_v50 }
 0x679   :  { %v4146_v15 = vadd.f32 %v4145_v46, %v4144_v23  ;;  %v4154_v59 = vrot.slane %v4153_v48, 1  ;;  %v4212_v36 = vadd.f32 %v4211_v25, %v4210_v5  ;;  %v4220_v52 = vrot.slane %v4219_v45, 2 }
 0x67b   :  { %v4147_v40 = vmul.f32 0.25, %v4146_v15  ;;  %v4155_v19 = vadd.f32 %v4154_v59, %v4153_v48  ;;  %v4213_v24 = vrot.slane %v4212_v36, 1  ;;  %v4221_v49 = vadd.f32 %v4220_v52, %v4219_v45 }
 0x67c   :  { %v4508_v59 = vlaneseq }
 0x67d   :  { %v4156_v31 = vmul.f32 0.25, %v4155_v19  ;;  %v4157_v14 = vmul.f32 %v4147_v40, %v4147_v40  ;;  %v4214_v8 = vadd.f32 %v4213_v24, %v4212_v36  ;;  %v4222_v35 = vrot.slane %v4221_v49, 1 }
 0x67e   :  { %v4160_v58 = vsub.f32 %v4134_v7, %v4147_v40  ;;  %v7236_v36 = vshrl.u32 %v4508_v59, 7  ;;  %v7239_v40 = vand.u32 127, %v4508_v59 }
 0x67f   :  { %v4158_v6 = vsub.f32 %v4156_v31, %v4157_v14  ;;  %v4215_v2 = vmul.f32 0.25, %v4214_v8  ;;  %v4223_v39 = vadd.f32 %v4222_v35, %v4221_v49 }
 0x680   :  { %v4510_v52 = vadd.s32 8, %v7236_v36  ;;  %vm4527_vm14 = vcmp.eq.s32.totalorder %v7236_v36, %v7239_v40 }
 0x681   :  { %v4159_v13 = vmax.f32 %v4158_v6, 0.0  ;;  %v4224_v43 = vmul.f32 0.25, %v4223_v39  ;;  %v4225_v44 = vmul.f32 %v4215_v2, %v4215_v2  ;;  %v4228_v60 = vsub.f32 %v4202_v9, %v4215_v2 }
 0x682   :  { %vm4528_vm13 = vcmp.eq.s32.totalorder %v4510_v52, %v7239_v40  ;;  %v4511_v39 = vadd.s32 16, %v7236_v36 }
 0x683   :  { %v4161_v54 = vadd.f32 1e-05, %v4159_v13  ;;  %v4226_v12 = vsub.f32 %v4224_v43, %v4225_v44  ;;  %v4512_v44 = vadd.s32 24, %v7236_v36 }
 0x684   :  { %vm4529_vm15 = vcmp.eq.s32.totalorder %v4511_v39, %v7239_v40  ;;  %v4522_v39 = vadd.s32 104, %v7236_v36 }
 0x685   :  { %v4227_v61 = vmax.f32 %v4226_v12, 0.0  ;;  %5185 = vrsqrt.f32 %v4161_v54  ;;  %vm4530_vm0 = vcmp.eq.s32.totalorder %v4512_v44, %v7239_v40 }
 0x687   :  { %v4229_v33 = vadd.f32 1e-05, %v4227_v61 }
 0x689   :  { %5187 = vrsqrt.f32 %v4229_v33 }
 0x68f   :  { %v5186_v56 = vpop.eup %5185 }
 0x690   :  { %v4163_v63 = vmul.f32 %v5186_v56, %v4160_v58  ;;  %v4513_v58 = vadd.s32 32, %v7236_v36 }
 0x692   :  { %vm4531_vm1 = vcmp.eq.s32.totalorder %v4513_v58, %v7239_v40 }
 0x693   :  { %v5188_v34 = vpop.eup %5187 }
 0x694   :  { %v4231_v17 = vmul.f32 %v5188_v34, %v4228_v60 }
 0x696   :  { %v4238_v1 = vmul.f32 %v4231_v17, %v4163_v63  ;;  %v4237_v55 = vsel %vm4236_vm10, %v4163_v63, %v4231_v17  ;;  %vm4540_vm10 = vcmp.eq.s32.totalorder %v4522_v39, %v7239_v40 }
 0x697   :  { %4263 = vxpose.xlu0.b32.start.end [1/1] (short) %v4237_v55, 128  ;;  %4989 = vmatprep.subr.msk.mxu0 %vm3978_vm9, %v4237_v55 }
 0x698   :  { %5015 = vmatprep.subr.msk.mxu1 %vm3978_vm9, %v4237_v55  ;;  %4990 = vmatpush3.msk.msra.mxu0 %vm3978_vm9, %v4237_v55  ;;  %v4239_v18 = vsel %vm3978_vm9, %v4238_v1, 0.0  ;;  %v4514_v1 = vadd.s32 40, %v7236_v36 }
 0x699   :  { %5016 = vmatpush3.msk.msra.mxu1 %vm3978_vm9, %v4237_v55  ;;  %v4240_v42 = vrot.slane %v4239_v18, 4 }
 0x69a   :  { %vm4532_vm2 = vcmp.eq.s32.totalorder %v4514_v1, %v7239_v40 }
 0x69b   :  { %v4241_v62 = vadd.f32 %v4240_v42, %v4239_v18 }
 0x69d   :  { %v4242_v20 = vrot.slane %v4241_v62, 2 }
 0x69f   :  { %v4243_v21 = vadd.f32 %v4242_v20, %v4241_v62 }
 0x6a1   :  { %v4244_v7 = vrot.slane %v4243_v21, 1 }
 0x6a3   :  { %v4245_v16 = vadd.f32 %v4244_v7, %v4243_v21  ;;  %v4515_v7 = vadd.s32 48, %v7236_v36 }
 0x6a5   :  { %v4246_v28 = vmul.f32 0.25, %v4245_v16  ;;  %vm4533_vm3 = vcmp.eq.s32.totalorder %v4515_v7, %v7239_v40 }
 0x6a7   :  { %v4772_v29 = vadd.f32 -1.0, %v4246_v28 }
 0x6a9   :  { %v4248_v51 = vmul.f32 %v4772_v29, %v4772_v29 }
 0x6ab   :  { %v4250_v38 = vsel %vm4249_vm11, %v4248_v51, 0.0  ;;  %v4516_v51 = vadd.s32 56, %v7236_v36 }
 0x6ac   :  { %4251 = vadd.xlane.f32.xlu1 %v4250_v38 }
 0x6ad   :  { %vm4534_vm4 = vcmp.eq.s32.totalorder %v4516_v51, %v7239_v40 }
 0x717   :  { %v4279_v47 = vpop.trf.xlu0 }
 0x718   :  { %4991 = vmatprep.mubr.msk.f32.mxu0 %vm4295_vm12, %v4279_v47 }
 0x71b   :  { %v4280_v11 = vpop.trf.xlu0 }
 0x71c   :  { %4992 = vmatmul.mubr.msk.f32.vlgmr.msra.gmra.mrb[92].mxu0 %vm4295_vm12, %v4280_v11 }
 0x71f   :  { %v4281_v30 = vpop.trf.xlu0 }
 0x720   :  { %4994 = vmatprep.mubr.msk.f32.mxu0 %vm4295_vm12, %v4281_v30 }
 0x723   :  { %v4282_v57 = vpop.trf.xlu0 }
 0x724   :  { %4995 = vmatmul.mubr.msk.f32.gmra.mrb[94].mxu0 %vm4295_vm12, %v4282_v57 }
 0x727   :  { %v4283_v9 = vpop.trf.xlu0 }
 0x728   :  { %4997 = vmatprep.mubr.msk.f32.mxu1 %vm4295_vm12, %v4283_v9 }
 0x72b   :  { %v4284_v4 = vpop.trf.xlu0 }
 0x72c   :  { %4998 = vmatmul.mubr.msk.f32.vlgmr.msra.gmra.mrb[76].mxu1 %vm4295_vm12, %v4284_v4 }
 0x72f   :  { %v4285_v10 = vpop.trf.xlu0 }
 0x730   :  { %5000 = vmatprep.mubr.msk.f32.mxu1 %vm4295_vm12, %v4285_v10  ;;  %v4517_v10 = vadd.s32 64, %v7236_v36 }
 0x732   :  { %vm4535_vm5 = vcmp.eq.s32.totalorder %v4517_v10, %v7239_v40 }
 0x733   :  { %v4286_v0 = vpop.trf.xlu0 }
 0x734   :  { %5001 = vmatmul.mubr.msk.f32.gmra.mrb[78].mxu1 %vm4295_vm12, %v4286_v0 }
 0x737   :  { %v4287_v22 = vpop.trf.xlu0 }
 0x738   :  { %5003 = vmatprep.mubr.msk.f32.mxu1 %vm4295_vm12, %v4287_v22 }
 0x739   :  { %v4252_v32 = vpop.xlane.xlu1 %4251 }
 0x73a   :  { %v4253_v27 = vrot.slane %v4252_v32, 4 }
 0x73b   :  { %v4288_v41 = vpop.trf.xlu0 }
 0x73c   :  { %v4254_v23 = vadd.f32 %v4253_v27, %v4252_v32  ;;  %5004 = vmatmul.mubr.msk.f32.gmra.mrb[80].mxu1 %vm4295_vm12, %v4288_v41  ;;  %v4518_v27 = vadd.s32 72, %v7236_v36 }
 0x73e   :  { %v4255_v53 = vrot.slane %v4254_v23, 2  ;;  %vm4536_vm6 = vcmp.eq.s32.totalorder %v4518_v27, %v7239_v40 }
 0x73f   :  { %v4289_v50 = vpop.trf.xlu0 }
 0x740   :  { %5006 = vmatprep.mubr.msk.f32.mxu1 %vm4295_vm12, %v4289_v50  ;;  %v4256_v37 = vadd.f32 %v4255_v53, %v4254_v23 }
 0x742   :  { %v4257_v5 = vrot.slane %v4256_v37, 1 }
 0x743   :  { %v4290_v26 = vpop.trf.xlu0 }
 0x744   :  { %5007 = vmatmul.mubr.msk.f32.gmra.mrb[82].mxu1 %vm4295_vm12, %v4290_v26  ;;  %v4258_v46 = vadd.f32 %v4257_v5, %v4256_v37 }
 0x746   :  { %5017 = vpush %v4258_v46  ;;  %v4519_v46 = vadd.s32 80, %v7236_v36 }
 0x747   :  { %v4291_v48 = vpop.trf.xlu0 }
 0x748   :  { %5009 = vmatprep.mubr.msk.f32.mxu1 %vm4295_vm12, %v4291_v48  ;;  %vm4537_vm7 = vcmp.eq.s32.totalorder %v4519_v46, %v7239_v40 }
 0x74b   :  { %v4292_v25 = vpop.trf.xlu0 }
 0x74c   :  { %5010 = vmatmul.mubr.msk.f32.gmra.mrb[84].mxu1 %vm4295_vm12, %v4292_v25 }
 0x74f   :  { %v4293_v45 = vpop.trf.xlu0 }
 0x750   :  { %5012 = vmatprep.mubr.msk.f32.mxu1 %vm4295_vm12, %v4293_v45 }
 0x753   :  { %v4294_v15 = vpop.trf.xlu0 }
 0x754   :  { %5013 = vmatmul.mubr.msk.f32.gmra.mrb[86].mxu1 %vm4295_vm12, %v4294_v15  ;;  %v4520_v15 = vadd.s32 88, %v7236_v36 }
 0x756   :  { %vm4538_vm8 = vcmp.eq.s32.totalorder %v4520_v15, %v7239_v40 }
 0x777   :  { %s5018_s0 = spop %5017 }
 0x778   :  { %s4262_s17 = smul.f32 0.0078125, %s5018_s0 }
 0x7ef   :  { %v4993_v19 = vpop.f32.mrb[92].mxu0 }
 0x7f0   :  { %v4493_v24 = vmul.f32 0.25, %v4993_v19  ;;  %v4413_v49 = vpop.f32.mrb[93].mxu0 }
 0x7f1   :  { %v4492_v31 = vmul.f32 0.25, %v4413_v49 }
 0x7f2   :  { %v4544_v14 = vmul.f32 %v4493_v24, %v4493_v24 }
 0x7f3   :  { %v4543_v8 = vmul.f32 %v4492_v31, %v4492_v31 }
 0x7f4   :  { %v4560_v35 = vsel %vm4528_vm13, 0.0, %v4544_v14 }
 0x7f5   :  { %v4559_v6 = vsel %vm4527_vm14, 0.0, %v4543_v8  ;;  %v4521_v8 = vadd.s32 96, %v7236_v36 }
 0x7f6   :  { %v4575_v2 = vadd.f32 %v4560_v35, %v4559_v6 }
 0x7f7   :  { %v4996_v13 = vpop.f32.mrb[94].mxu0  ;;  %vm4539_vm9 = vcmp.eq.s32.totalorder %v4521_v8, %v7239_v40 }
 0x7f8   :  { %v4495_v43 = vmul.f32 0.25, %v4996_v13  ;;  %v4423_v54 = vpop.f32.mrb[95].mxu0 }
 0x7f9   :  { %v4494_v12 = vmul.f32 0.25, %v4423_v54 }
 0x7fa   :  { %v4546_v61 = vmul.f32 %v4495_v43, %v4495_v43 }
 0x7fb   :  { %v4545_v33 = vmul.f32 %v4494_v12, %v4494_v12 }
 0x7fc   :  { %v4562_v60 = vsel %vm4530_vm0, 0.0, %v4546_v61 }
 0x7fd   :  { %v4561_v3 = vsel %vm4529_vm15, 0.0, %v4545_v33 }
 0x7fe   :  { %v4576_v56 = vadd.f32 %v4575_v2, %v4561_v3  ;;  %v4523_v3 = vadd.s32 112, %v7236_v36 }
 0x7ff   :  { %v4999_v34 = vpop.f32.mrb[76].mxu1 }
 0x800   :  { %v4577_v63 = vadd.f32 %v4576_v56, %v4562_v60  ;;  %v4497_v17 = vmul.f32 0.25, %v4999_v34  ;;  %v4433_v55 = vpop.f32.mrb[77].mxu1  ;;  %vm4541_vm11 = vcmp.eq.s32.totalorder %v4523_v3, %v7239_v40 }
 0x801   :  { %v4496_v18 = vmul.f32 0.25, %v4433_v55 }
 0x802   :  { %v4548_v42 = vmul.f32 %v4497_v17, %v4497_v17  ;;  %v4524_v17 = vadd.s32 120, %v7236_v36 }
 0x803   :  { %v4547_v62 = vmul.f32 %v4496_v18, %v4496_v18 }
 0x804   :  { %v4564_v16 = vsel %vm4532_vm2, 0.0, %v4548_v42  ;;  %vm4542_vm12 = vcmp.eq.s32.totalorder %v4524_v17, %v7239_v40 }
 0x805   :  { %v4563_v20 = vsel %vm4531_vm1, 0.0, %v4547_v62 }
 0x806   :  { %v4578_v21 = vadd.f32 %v4577_v63, %v4563_v20 }
 0x807   :  { %v5002_v28 = vpop.f32.mrb[78].mxu1 }
 0x808   :  { %v4499_v29 = vmul.f32 0.25, %v5002_v28  ;;  %v4443_v38 = vpop.f32.mrb[79].mxu1  ;;  %v4579_v47 = vadd.f32 %v4578_v21, %v4564_v16 }
 0x809   :  { %v4498_v11 = vmul.f32 0.25, %v4443_v38 }
 0x80a   :  { %v4550_v30 = vmul.f32 %v4499_v29, %v4499_v29 }
 0x80b   :  { %v4549_v57 = vmul.f32 %v4498_v11, %v4498_v11 }
 0x80c   :  { %v4566_v0 = vsel %vm4534_vm4, 0.0, %v4550_v30 }
 0x80d   :  { %v4565_v9 = vsel %vm4533_vm3, 0.0, %v4549_v57 }
 0x80e   :  { %v4580_v4 = vadd.f32 %v4579_v47, %v4565_v9 }
 0x80f   :  { %v5005_v22 = vpop.f32.mrb[80].mxu1 }
 0x810   :  { %v4501_v32 = vmul.f32 0.25, %v5005_v22  ;;  %v4453_v41 = vpop.f32.mrb[81].mxu1  ;;  %v4581_v23 = vadd.f32 %v4580_v4, %v4566_v0 }
 0x811   :  { %v4500_v53 = vmul.f32 0.25, %v4453_v41 }
 0x812   :  { %v4552_v50 = vmul.f32 %v4501_v32, %v4501_v32 }
 0x813   :  { %v4551_v37 = vmul.f32 %v4500_v53, %v4500_v53 }
 0x814   :  { %v4568_v48 = vsel %vm4536_vm6, 0.0, %v4552_v50 }
 0x815   :  { %v4567_v5 = vsel %vm4535_vm5, 0.0, %v4551_v37 }
 0x816   :  { %v4582_v26 = vadd.f32 %v4581_v23, %v4567_v5 }
 0x817   :  { %v5008_v25 = vpop.f32.mrb[82].mxu1 }
 0x818   :  { %v4503_v45 = vmul.f32 0.25, %v5008_v25  ;;  %v4463_v59 = vpop.f32.mrb[83].mxu1  ;;  %v4583_v52 = vadd.f32 %v4582_v26, %v4568_v48 }
 0x819   :  { %v4502_v19 = vmul.f32 0.25, %v4463_v59 }
 0x81a   :  { %v4554_v24 = vmul.f32 %v4503_v45, %v4503_v45 }
 0x81b   :  { %v4553_v49 = vmul.f32 %v4502_v19, %v4502_v19 }
 0x81c   :  { %v4570_v35 = vsel %vm4538_vm8, 0.0, %v4554_v24 }
 0x81d   :  { %v4569_v31 = vsel %vm4537_vm7, 0.0, %v4553_v49 }
 0x81e   :  { %v4584_v14 = vadd.f32 %v4583_v52, %v4569_v31 }
 0x81f   :  { %v5011_v6 = vpop.f32.mrb[84].mxu1 }
 0x820   :  { %v4505_v2 = vmul.f32 0.25, %v5011_v6  ;;  %v4473_v13 = vpop.f32.mrb[85].mxu1  ;;  %v4585_v43 = vadd.f32 %v4584_v14, %v4570_v35 }
 0x821   :  { %v4504_v44 = vmul.f32 0.25, %v4473_v13 }
 0x822   :  { %v4556_v54 = vmul.f32 %v4505_v2, %v4505_v2 }
 0x823   :  { %v4555_v12 = vmul.f32 %v4504_v44, %v4504_v44 }
 0x824   :  { %v4572_v56 = vsel %vm4540_vm10, 0.0, %v4556_v54 }
 0x825   :  { %v4571_v61 = vsel %vm4539_vm9, 0.0, %v4555_v12 }
 0x826   :  { %v4586_v33 = vadd.f32 %v4585_v43, %v4571_v61 }
 0x827   :  { %v5014_v58 = vpop.f32.mrb[86].mxu1 }
 0x828   :  { %v4507_v60 = vmul.f32 0.25, %v5014_v58  ;;  %v4483_v34 = vpop.f32.mrb[87].mxu1  ;;  %v4587_v63 = vadd.f32 %v4586_v33, %v4572_v56 }
 0x829   :  { %v4506_v1 = vmul.f32 0.25, %v4483_v34 }
 0x82a   :  { %v4558_v55 = vmul.f32 %v4507_v60, %v4507_v60 }
 0x82b   :  { %v4557_v18 = vmul.f32 %v4506_v1, %v4506_v1 }
 0x82c   :  { %v4574_v20 = vsel %vm4542_vm12, 0.0, %v4558_v55 }
 0x82d   :  { %v4573_v42 = vsel %vm4541_vm11, 0.0, %v4557_v18 }
 0x82e   :  { %v4588_v62 = vadd.f32 %v4587_v63, %v4573_v42 }
 0x830   :  { %v4589_v21 = vadd.f32 %v4588_v62, %v4574_v20 }
 0x832   :  { %4590 = vadd.xlane.f32.xlu0 %v4589_v21 }
 0x8bf   :  { %v4591_v7 = vpop.xlane.xlu0 %4590 }
 0x8c0   :  { %v4592_v16 = vrot.slane %v4591_v7, 4 }
 0x8c2   :  { %v4593_v28 = vadd.f32 %v4592_v16, %v4591_v7 }
 0x8c4   :  { %v4594_v29 = vrot.slane %v4593_v28, 2 }
 0x8c6   :  { %v4595_v51 = vadd.f32 %v4594_v29, %v4593_v28 }
 0x8c8   :  { %v4596_v38 = vrot.slane %v4595_v51, 1 }
 0x8ca   :  { %v4597_v47 = vadd.f32 %v4596_v38, %v4595_v51 }
 0x8cc   :  { %5019 = vpush %v4597_v47 }
 0x8fd   :  { %s5020_s15 = spop %5019 }
 0x8fe   :  { %s4601_s16 = smul.f32 6.151575e-05, %s5020_s15 }
 0x900   :  { %s4602_s18 = smul.f32 0.0051, %s4601_s16 }
 0x902   :  { %s4603_s1 = sadd.f32 %s4602_s18, %s4262_s17 }
 0x904   :  { %4605 = sst [smem:[#allocation8]] %s4603_s1 }
 0x905   :  { %5242 = shalt.err (!%p5239_p5)
}
 0x906   :  { %s5260_s24 = smov [#allocation8]  }
 0x907   :  { %4613 = dma.smem_to_hbm %s5260_s24, 16, %s7291_s7, [#allocation5]  }
 0x908   :  { %5247 = dma.done.wait [#allocation5], 16  }
 0x909   :  { %5248 = vsyncadd [#allocation5], 4294967280 }
 0x90a   :  { %4617 = sfence }
 0x90b   :  { %4618 = vsyncpa [#allocation4], 1 }
 0x90c   :  { %4619 = vsyncpa [#allocation7], 1 }
 0x90d   :  { %4620 = vsyncpa [#allocation5], 1 }

</bundles_post_ra>
